<compile_context>
chip_gen: v7x
topology: tpu7x:2x2x1
jax: 0.10.0
libtpu: 0.0.40
codegen_flags: <defaults>
</compile_context>

<pallas_src>
import functools

import jax
import jax.numpy as jnp
from jax import lax
from jax.experimental import pallas as pl
from jax.experimental.pallas import tpu as pltpu

BN_EPS = 1e-5
MXU_DTYPE = jnp.bfloat16            # activation-path / MXU dtype; accumulation f32


def _vmem_limit_bytes():
    """Per-generation scoped-VMEM budget: v7x has 64 MiB physical, v5e/v6e 128 MiB."""
    try:
        kind = jax.devices()[0].device_kind.lower()
    except Exception:
        kind = ""
    if "7" in kind:                       # v7x-class parts
        return 40 * 1024 * 1024
    return 96 * 1024 * 1024               # v5e / v6e (128 MiB physical VMEM)


def _compiler_params():
    return pltpu.CompilerParams(
        dimension_semantics=("parallel",),      # batch-grid steps are independent
        vmem_limit_bytes=_vmem_limit_bytes())


# ----------------------------- Pallas kernels ------------------------------ #

def _conv1_kernel(*refs, stride, ho, wo, cout, has_ds):
    """One grid step = one batch element.

    Builds a (ho, wo, 9*Cin) bf16 im2col slab via direct slice-to-slice copies
    from the phase-decomposed zero-padded bf16 input and runs ONE MXU matmul
    against the (9*Cin, Cout_total) weights.  When `has_ds`, the fused 1x1
    downsample occupies extra output columns (zero except the center-tap rows),
    so both branches share the same MXU push.  Emits raw bf16 conv outputs plus
    per-batch f32 [sum, sum_sq] channel stats for the two-pass BatchNorm.
    """
    if has_ds:
        xph_ref, w_ref, y_ref, st_ref, yd_ref, std_ref, col_ref = refs
    else:
        xph_ref, w_ref, y_ref, st_ref, col_ref = refs
        yd_ref = std_ref = None

    s = stride
    cin = xph_ref.shape[-1]
    m = ho * wo

    for di in range(3):
        for dj in range(3):
            ph = (di % s) * s + (dj % s)          # stride phase of this tap
            ro, co = di // s, dj // s             # offset inside the phase
            t = di * 3 + dj
            col_ref[:, :, t * cin:(t + 1) * cin] = \
                xph_ref[ph, 0, ro:ro + ho, co:co + wo, :]

    # Single wide-K bf16 matmul, f32 accumulation.
    acc = jnp.dot(col_ref[...].reshape(m, 9 * cin), w_ref[...],
                  preferred_element_type=jnp.float32)

    a1 = acc[:, :cout]
    y_ref[0] = a1.astype(y_ref.dtype)
    st_ref[0] = jnp.concatenate(
        [jnp.sum(a1, axis=0, keepdims=True),
         jnp.sum(a1 * a1, axis=0, keepdims=True)], axis=0)

    if has_ds:
        ad = acc[:, cout:]
        yd_ref[0] = ad.astype(yd_ref.dtype)
        std_ref[0] = jnp.concatenate(
            [jnp.sum(ad, axis=0, keepdims=True),
             jnp.sum(ad * ad, axis=0, keepdims=True)], axis=0)


def _conv2_fused_kernel(y1_ref, sc_ref, sh_ref, w_ref, y2_ref, st_ref,
                        act_ref, col_ref, *, ho, wo):
    """conv2 (stride 1) with bn1 + ReLU + zero padding fused into the slab build.

    The BN1-normalized activation only ever exists in VMEM: it is written once
    (f32 math, bf16 storage) into a zero-initialized padded scratch, then the
    nine taps are sliced straight into the im2col slab.  The scratch keeps the
    padded interior at an even sublane offset so the bf16 store stays aligned.
    """
    c1 = y1_ref.shape[-1]
    m = ho * wo

    act_ref[...] = jnp.zeros_like(act_ref)                     # zero padding
    a = jnp.maximum(y1_ref[0].astype(jnp.float32) * sc_ref[...] + sh_ref[...],
                    0.0)                                       # bn1 + relu (f32)
    act_ref[1:1 + ho, 2:2 + wo, :] = a.reshape(ho, wo, c1).astype(act_ref.dtype)

    for di in range(3):
        for dj in range(3):
            t = di * 3 + dj
            col_ref[:, :, t * c1:(t + 1) * c1] = \
                act_ref[di:di + ho, 1 + dj:1 + dj + wo, :]

    acc = jnp.dot(col_ref[...].reshape(m, 9 * c1), w_ref[...],
                  preferred_element_type=jnp.float32)
    y2_ref[0] = acc.astype(y2_ref.dtype)
    st_ref[0] = jnp.concatenate(
        [jnp.sum(acc, axis=0, keepdims=True),
         jnp.sum(acc * acc, axis=0, keepdims=True)], axis=0)


def _bn2_residual_kernel(*refs, res_bn):
    """bn2 finalize + shortcut + ReLU; emits a lane-dense (Cout, M) NCHW tile."""
    if res_bn:
        y_ref, sc_ref, sh_ref, r_ref, dsc_ref, dsh_ref, o_ref = refs
    else:
        y_ref, sc_ref, sh_ref, r_ref, o_ref = refs
        dsc_ref = dsh_ref = None

    y = y_ref[0].astype(jnp.float32) * sc_ref[...] + sh_ref[...]
    if res_bn:
        y = y + (r_ref[0].astype(jnp.float32) * dsc_ref[...] + dsh_ref[...])
    else:
        y = y + r_ref[0].astype(jnp.float32)
    # (M, Cout) -> (Cout, M): M (multiple of 128 at real sizes) on the lane
    # axis -> unmasked stores, and the result is already NCHW-flattened.
    o_ref[0] = jnp.maximum(y, 0.0).T.astype(o_ref.dtype)


# ----------------------------- Pallas wrappers ----------------------------- #

def conv1_raw(x, w1, wd=None, *, stride):
    """conv3x3 (padding=1, given stride) [+ fused 1x1 downsample] raw outputs.

    x : (N, H, W, Cin) NHWC f32,  w1: (3,3,Cin,Cout) HWIO,  wd: (Cin, Cout)|None
    Returns (y1, st1[, yd, std]):
      y1/yd : (N, Ho*Wo, Cout) bf16   pre-BN conv outputs
      st*   : (N, 2, Cout)     f32    per-batch [sum, sum_sq]
    """
    n, hin, win, cin = x.shape
    cout = w1.shape[-1]
    s = stride
    assert s in (1, 2), "padding/phase decomposition only derived for stride 1/2"
    ho = (hin - 1) // s + 1
    wo = (win - 1) // s + 1
    hp = s * (ho + 2 // s)
    wp = s * (wo + 2 // s)

    # Pad / phase-decompose in bf16 (halves the wrapper-side copy + HBM read).
    xpad = jnp.pad(x.astype(MXU_DTYPE),
                   ((0, 0), (1, hp - hin - 1), (1, wp - win - 1), (0, 0)))
    if s == 1:
        xph = xpad[None]                                     # (1, N, hp, wp, C)
    else:
        xph = xpad.reshape(n, hp // s, s, wp // s, s, cin)
        xph = jnp.transpose(xph, (2, 4, 0, 1, 3, 5))
        xph = xph.reshape(s * s, n, hp // s, wp // s, cin)

    m = ho * wo
    k = 9 * cin
    has_ds = wd is not None

    wflat = w1.reshape(k, cout)
    if has_ds:
        # 1x1 downsample == center tap: embed wd into rows [4*cin, 5*cin) and
        # concatenate along N so it rides the same MXU matmul.
        wds = jnp.zeros((k, cout), w1.dtype).at[4 * cin:5 * cin, :].set(wd)
        wcat = jnp.concatenate([wflat, wds], axis=1)
    else:
        wcat = wflat
    wcat = wcat.astype(MXU_DTYPE)
    cout_tot = wcat.shape[-1]

    tile3 = lambda i: (i, 0, 0)
    out_shapes = [jax.ShapeDtypeStruct((n, m, cout), MXU_DTYPE),
                  jax.ShapeDtypeStruct((n, 2, cout), jnp.float32)]
    out_specs = [pl.BlockSpec((1, m, cout), tile3),
                 pl.BlockSpec((1, 2, cout), tile3)]
    if has_ds:
        out_shapes += [jax.ShapeDtypeStruct((n, m, cout), MXU_DTYPE),
                       jax.ShapeDtypeStruct((n, 2, cout), jnp.float32)]
        out_specs += [pl.BlockSpec((1, m, cout), tile3),
                      pl.BlockSpec((1, 2, cout), tile3)]

    kernel = functools.partial(_conv1_kernel, stride=s, ho=ho, wo=wo,
                               cout=cout, has_ds=has_ds)
    return pl.pallas_call(
        kernel,
        out_shape=tuple(out_shapes),
        grid_spec=pltpu.PrefetchScalarGridSpec(
            num_scalar_prefetch=0, grid=(n,),
            in_specs=[pl.BlockSpec((s * s, 1, hp // s, wp // s, cin),
                                   lambda i: (0, i, 0, 0, 0)),
                      pl.BlockSpec((k, cout_tot), lambda i: (0, 0))],
            out_specs=tuple(out_specs),
            scratch_shapes=[pltpu.VMEM((ho, wo, k), MXU_DTYPE)]),   # im2col slab
        compiler_params=_compiler_params(),
    )(xph, wcat)


def conv2_fused_bn1(y1, scale1, shift1, w2, *, ho, wo):
    """bn1 + ReLU + zero-pad + conv3x3(stride 1), all inside one kernel."""
    n, m, c1 = y1.shape
    c2 = w2.shape[-1]
    k = 9 * c1
    tile3 = lambda i: (i, 0, 0)
    full2 = lambda i: (0, 0)

    kernel = functools.partial(_conv2_fused_kernel, ho=ho, wo=wo)
    return pl.pallas_call(
        kernel,
        out_shape=(jax.ShapeDtypeStruct((n, m, c2), MXU_DTYPE),
                   jax.ShapeDtypeStruct((n, 2, c2), jnp.float32)),
        grid_spec=pltpu.PrefetchScalarGridSpec(
            num_scalar_prefetch=0, grid=(n,),
            in_specs=[pl.BlockSpec((1, m, c1), tile3),
                      pl.BlockSpec((1, c1), full2),
                      pl.BlockSpec((1, c1), full2),
                      pl.BlockSpec((k, c2), full2)],
            out_specs=(pl.BlockSpec((1, m, c2), tile3),
                       pl.BlockSpec((1, 2, c2), tile3)),
            scratch_shapes=[pltpu.VMEM((ho + 2, wo + 3, c1), MXU_DTYPE),  # padded act
                            pltpu.VMEM((ho, wo, k), MXU_DTYPE)]),          # im2col slab
        compiler_params=_compiler_params(),
    )(y1, scale1, shift1, w2.reshape(k, c2).astype(MXU_DTYPE))


def bn2_residual_relu(y2, scale2, shift2, residual, dscale=None, dshift=None):
    """bn2 + shortcut (+ downsample BN) + ReLU; output is (N, Cout, M) == NCHW."""
    n, m, c2 = y2.shape
    res_bn = dscale is not None
    tile3 = lambda i: (i, 0, 0)
    full2 = lambda i: (0, 0)

    in_specs = [pl.BlockSpec((1, m, c2), tile3),
                pl.BlockSpec((1, c2), full2),
                pl.BlockSpec((1, c2), full2),
                pl.BlockSpec((1, m, residual.shape[-1]), tile3)]
    args = [y2, scale2, shift2, residual]
    if res_bn:
        in_specs += [pl.BlockSpec((1, c2), full2), pl.BlockSpec((1, c2), full2)]
        args += [dscale, dshift]

    kernel = functools.partial(_bn2_residual_kernel, res_bn=res_bn)
    return pl.pallas_call(
        kernel,
        out_shape=jax.ShapeDtypeStruct((n, c2, m), jnp.float32),
        grid_spec=pltpu.PrefetchScalarGridSpec(
            num_scalar_prefetch=0, grid=(n,),
            in_specs=in_specs,
            out_specs=pl.BlockSpec((1, c2, m), tile3)),
        compiler_params=_compiler_params(),
    )(*args)


def _bn_scale_shift(stats, gamma, beta, m_total):
    """Finalize BN scale/shift from per-batch [sum, sum_sq] partials (tiny reduce)."""
    tot = jnp.sum(stats, axis=0)                 # (2, C)
    mean = tot[0] / m_total
    var = tot[1] / m_total - mean * mean         # one-pass biased variance (f32)
    scale = gamma * lax.rsqrt(var + BN_EPS)
    shift = beta - mean * scale
    return scale.reshape(1, -1), shift.reshape(1, -1)


# ------------------------------ BasicBlockIFD ------------------------------ #

def init_block_params(key, inplanes, planes, stride):
    """Deterministic synthetic parameters for BasicBlockIFD(inplanes, planes, stride)."""
    k1, k2, k3 = jax.random.split(key, 3)
    p = {
        'stride': stride,
        'w1': jax.random.normal(k1, (3, 3, inplanes, planes), jnp.float32)
              * (2.0 / (9 * inplanes)) ** 0.5,
        'g1': jnp.ones((planes,), jnp.float32),
        'b1': jnp.zeros((planes,), jnp.float32),
        'w2': jax.random.normal(k2, (3, 3, planes, planes), jnp.float32)
              * (2.0 / (9 * planes)) ** 0.5,
        'g2': jnp.ones((planes,), jnp.float32),
        'b2': jnp.zeros((planes,), jnp.float32),
    }
    if stride != 1 or inplanes != planes:                      # downsample branch
        p['wd'] = jax.random.normal(k3, (inplanes, planes), jnp.float32) \
                  * (2.0 / inplanes) ** 0.5
        p['gd'] = jnp.ones((planes,), jnp.float32)
        p['bd'] = jnp.zeros((planes,), jnp.float32)
    return p


def basic_block_forward(x, p, use_info_dropout=False):
    """x: (N, H, W, Cin) NHWC.  Mirrors BasicBlockIFD.forward (no info-dropout).

    Returns the block output directly in NCHW (N, Cout, Ho, Wo).
    """
    # TODO(synk): Info_Dropout branch not implemented (module default is off).
    del use_info_dropout
    n, h, w, cin = x.shape
    s = p['stride']
    cout = p['w1'].shape[-1]
    ho = (h - 1) // s + 1
    wo = (w - 1) // s + 1
    m_total = n * ho * wo
    has_ds = 'wd' in p

    # conv1 (+ fused 1x1 downsample riding the same matmul)
    if has_ds:
        y1, st1, yd, std = conv1_raw(x, p['w1'], p['wd'], stride=s)
    else:
        y1, st1 = conv1_raw(x, p['w1'], None, stride=s)

    # bn1 scale/shift (tiny XLA reduce); bn1+relu are applied inside conv2.
    scale1, shift1 = _bn_scale_shift(st1, p['g1'], p['b1'], m_total)
    y2, st2 = conv2_fused_bn1(y1, scale1, shift1, p['w2'], ho=ho, wo=wo)

    # bn2 + shortcut + relu
    scale2, shift2 = _bn_scale_shift(st2, p['g2'], p['b2'], m_total)
    if has_ds:
        dscale, dshift = _bn_scale_shift(std, p['gd'], p['bd'], m_total)
        out = bn2_residual_relu(y2, scale2, shift2, yd, dscale, dshift)
    else:
        out = bn2_residual_relu(y2, scale2, shift2, x.reshape(n, h * w, cin))
    return out.reshape(n, cout, ho, wo)          # already NCHW (lane-dense store)


def basic_block_ifd_forward(x_nchw, params, use_info_dropout=False):
    x = jnp.transpose(x_nchw, (0, 2, 3, 1))      # NCHW -> NHWC at module boundary
    return basic_block_forward(x, params, use_info_dropout)   # output is NCHW


# ------------------------------ JAX reference ------------------------------- #
# Mirrors the kernel's storage policy (bf16 conv inputs/outputs, f32 accumulation,
# BN stats from the full-precision accumulator, f32 BN math) so the comparison
# is apples-to-apples.

def _conv_ref(x, w, stride, padding):
    return lax.conv_general_dilated(
        x.astype(MXU_DTYPE), w.astype(MXU_DTYPE), (stride, stride), padding,
        dimension_numbers=('NHWC', 'HWIO', 'NHWC'),
        preferred_element_type=jnp.float32)


def _bn_apply_ref(raw, g, b):
    mean = jnp.mean(raw, axis=(0, 1, 2))
    var = jnp.mean(raw * raw, axis=(0, 1, 2)) - mean * mean
    scale = g * lax.rsqrt(var + BN_EPS)
    shift = b - mean * scale
    y = raw.astype(MXU_DTYPE).astype(jnp.float32)       # bf16-stored values
    return y * scale + shift


def block_ref(x_nchw, p):
    x = jnp.transpose(x_nchw, (0, 2, 3, 1))
    s = p['stride']
    raw1 = _conv_ref(x, p['w1'], s, ((1, 1), (1, 1)))
    out1 = jnp.maximum(_bn_apply_ref(raw1, p['g1'], p['b1']), 0.0)
    raw2 = _conv_ref(out1, p['w2'], 1, ((1, 1), (1, 1)))
    out2 = _bn_apply_ref(raw2, p['g2'], p['b2'])
    if 'wd' in p:
        rawd = _conv_ref(x, p['wd'].reshape(1, 1, *p['wd'].shape), s, 'VALID')
        iden = _bn_apply_ref(rawd, p['gd'], p['bd'])
    else:
        iden = x
    out = jnp.maximum(out2 + iden, 0.0)
    return jnp.transpose(out, (0, 3, 1, 2))


# ----------------------------------- main ----------------------------------- #

if __name__ == "__main__":
    key = jax.random.PRNGKey(0)
    kx1, kx2, kp1, kp2 = jax.random.split(key, 4)

    # Case 1: stride-2 block with downsample (like layer2..4 block0).
    N, Cin, H, W = 2, 4, 16, 16
    planes, stride = 8, 2
    x1 = jax.random.normal(kx1, (N, Cin, H, W), jnp.float32)   # NCHW like PyTorch
    p1 = init_block_params(kp1, Cin, planes, stride)
    out1 = jax.block_until_ready(
        jax.jit(lambda xx: basic_block_ifd_forward(xx, p1))(x1))
    assert out1.shape == (N, planes, H // stride, W // stride), out1.shape
    err1 = float(jnp.max(jnp.abs(out1 - block_ref(x1, p1))))

    # Case 2: stride-1 identity block, no downsample (like layer1 blocks).
    C2 = 8
    x2 = jax.random.normal(kx2, (N, C2, H, W), jnp.float32)
    p2 = init_block_params(kp2, C2, C2, 1)
    out2 = jax.block_until_ready(
        jax.jit(lambda xx: basic_block_ifd_forward(xx, p2))(x2))
    assert out2.shape == (N, C2, H, W), out2.shape
    err2 = float(jnp.max(jnp.abs(out2 - block_ref(x2, p2))))

    # Tolerance covers bf16 storage rounding of intermediates plus matmul
    # accumulation-order differences between the im2col dot and lax.conv.
    tol = 1e-2
    if not (err1 < tol and err2 < tol):
        raise AssertionError(f"mismatch vs reference: err1={err1}, err2={err2}")
    print("KERNEL_OK")
</pallas_src>

<mosaic_0001>
module attributes {stable_mosaic.version = 11 : i64} {
  func.func @_conv1_kernel(%arg0: i32, %arg1: memref<4x1x9x9x4xbf16, #tpu.memory_space<vmem>>, %arg2: memref<36x16xbf16, #tpu.memory_space<vmem>>, %arg3: memref<1x64x8xbf16, #tpu.memory_space<vmem>>, %arg4: memref<1x2x8xf32, #tpu.memory_space<vmem>>, %arg5: memref<1x64x8xbf16, #tpu.memory_space<vmem>>, %arg6: memref<1x2x8xf32, #tpu.memory_space<vmem>>, %arg7: memref<8x8x36xbf16, #tpu.memory_space<vmem>>) attributes {dimension_semantics = [#tpu.dimension_semantics<parallel>], iteration_bounds = array<i64: 2>, scalar_prefetch = 0 : i64, scratch_operands = 1 : i64, tpu.core_type = #tpu.core_type<tc>, window_params = [{transform_indices = @transform_0, window_bounds = array<i64: 4, 1, 9, 9, 4>}, {pipeline_mode = #tpu.pipeline_mode<synchronous>, transform_indices = @transform_1, window_bounds = array<i64: 36, 16>}, {transform_indices = @transform_2, window_bounds = array<i64: 1, 64, 8>}, {transform_indices = @transform_3, window_bounds = array<i64: 1, 2, 8>}, {transform_indices = @transform_4, window_bounds = array<i64: 1, 64, 8>}, {transform_indices = @transform_5, window_bounds = array<i64: 1, 2, 8>}]} {
    %c0 = arith.constant 0 : index
    %c0_0 = arith.constant 0 : index
    %c0_1 = arith.constant 0 : index
    %c0_2 = arith.constant 0 : index
    %c0_3 = arith.constant 0 : index
    %0 = vector.load %arg1[%c0, %c0_0, %c0_1, %c0_2, %c0_3] : memref<4x1x9x9x4xbf16, #tpu.memory_space<vmem>>, vector<1x1x8x8x4xbf16>
    %1 = vector.shape_cast %0 : vector<1x1x8x8x4xbf16> to vector<8x8x4xbf16>
    %c0_4 = arith.constant 0 : index
    %c0_5 = arith.constant 0 : index
    %c0_6 = arith.constant 0 : index
    %2 = vector.load %arg7[%c0_4, %c0_5, %c0_6] : memref<8x8x36xbf16, #tpu.memory_space<vmem>>, vector<8x8x4xbf16>
    tpu.vector_store %arg7[%c0_4, %c0_5, %c0_6], %1 {strides = array<i32>} : memref<8x8x36xbf16, #tpu.memory_space<vmem>>, vector<8x8x4xbf16>,
    %c1 = arith.constant 1 : index
    %c0_7 = arith.constant 0 : index
    %c0_8 = arith.constant 0 : index
    %c0_9 = arith.constant 0 : index
    %c0_10 = arith.constant 0 : index
    %3 = vector.load %arg1[%c1, %c0_7, %c0_8, %c0_9, %c0_10] : memref<4x1x9x9x4xbf16, #tpu.memory_space<vmem>>, vector<1x1x8x8x4xbf16>
    %4 = vector.shape_cast %3 : vector<1x1x8x8x4xbf16> to vector<8x8x4xbf16>
    %c0_11 = arith.constant 0 : index
    %c0_12 = arith.constant 0 : index
    %c4 = arith.constant 4 : index
    %5 = vector.load %arg7[%c0_11, %c0_12, %c4] : memref<8x8x36xbf16, #tpu.memory_space<vmem>>, vector<8x8x4xbf16>
    tpu.vector_store %arg7[%c0_11, %c0_12, %c4], %4 {strides = array<i32>} : memref<8x8x36xbf16, #tpu.memory_space<vmem>>, vector<8x8x4xbf16>,
    %c0_13 = arith.constant 0 : index
    %c0_14 = arith.constant 0 : index
    %c0_15 = arith.constant 0 : index
    %c1_16 = arith.constant 1 : index
    %c0_17 = arith.constant 0 : index
    %6 = vector.load %arg1[%c0_13, %c0_14, %c0_15, %c1_16, %c0_17] : memref<4x1x9x9x4xbf16, #tpu.memory_space<vmem>>, vector<1x1x8x8x4xbf16>
    %7 = vector.shape_cast %6 : vector<1x1x8x8x4xbf16> to vector<8x8x4xbf16>
    %c0_18 = arith.constant 0 : index
    %c0_19 = arith.constant 0 : index
    %c8 = arith.constant 8 : index
    %8 = vector.load %arg7[%c0_18, %c0_19, %c8] : memref<8x8x36xbf16, #tpu.memory_space<vmem>>, vector<8x8x4xbf16>
    tpu.vector_store %arg7[%c0_18, %c0_19, %c8], %7 {strides = array<i32>} : memref<8x8x36xbf16, #tpu.memory_space<vmem>>, vector<8x8x4xbf16>,
    %c2 = arith.constant 2 : index
    %c0_20 = arith.constant 0 : index
    %c0_21 = arith.constant 0 : index
    %c0_22 = arith.constant 0 : index
    %c0_23 = arith.constant 0 : index
    %9 = vector.load %arg1[%c2, %c0_20, %c0_21, %c0_22, %c0_23] : memref<4x1x9x9x4xbf16, #tpu.memory_space<vmem>>, vector<1x1x8x8x4xbf16>
    %10 = vector.shape_cast %9 : vector<1x1x8x8x4xbf16> to vector<8x8x4xbf16>
    %c0_24 = arith.constant 0 : index
    %c0_25 = arith.constant 0 : index
    %c12 = arith.constant 12 : index
    %11 = vector.load %arg7[%c0_24, %c0_25, %c12] : memref<8x8x36xbf16, #tpu.memory_space<vmem>>, vector<8x8x4xbf16>
    tpu.vector_store %arg7[%c0_24, %c0_25, %c12], %10 {strides = array<i32>} : memref<8x8x36xbf16, #tpu.memory_space<vmem>>, vector<8x8x4xbf16>,
    %c3 = arith.constant 3 : index
    %c0_26 = arith.constant 0 : index
    %c0_27 = arith.constant 0 : index
    %c0_28 = arith.constant 0 : index
    %c0_29 = arith.constant 0 : index
    %12 = vector.load %arg1[%c3, %c0_26, %c0_27, %c0_28, %c0_29] : memref<4x1x9x9x4xbf16, #tpu.memory_space<vmem>>, vector<1x1x8x8x4xbf16>
    %13 = vector.shape_cast %12 : vector<1x1x8x8x4xbf16> to vector<8x8x4xbf16>
    %c0_30 = arith.constant 0 : index
    %c0_31 = arith.constant 0 : index
    %c16 = arith.constant 16 : index
    %14 = vector.load %arg7[%c0_30, %c0_31, %c16] : memref<8x8x36xbf16, #tpu.memory_space<vmem>>, vector<8x8x4xbf16>
    tpu.vector_store %arg7[%c0_30, %c0_31, %c16], %13 {strides = array<i32>} : memref<8x8x36xbf16, #tpu.memory_space<vmem>>, vector<8x8x4xbf16>,
    %c2_32 = arith.constant 2 : index
    %c0_33 = arith.constant 0 : index
    %c0_34 = arith.constant 0 : index
    %c1_35 = arith.constant 1 : index
    %c0_36 = arith.constant 0 : index
    %15 = vector.load %arg1[%c2_32, %c0_33, %c0_34, %c1_35, %c0_36] : memref<4x1x9x9x4xbf16, #tpu.memory_space<vmem>>, vector<1x1x8x8x4xbf16>
    %16 = vector.shape_cast %15 : vector<1x1x8x8x4xbf16> to vector<8x8x4xbf16>
    %c0_37 = arith.constant 0 : index
    %c0_38 = arith.constant 0 : index
    %c20 = arith.constant 20 : index
    %17 = vector.load %arg7[%c0_37, %c0_38, %c20] : memref<8x8x36xbf16, #tpu.memory_space<vmem>>, vector<8x8x4xbf16>
    tpu.vector_store %arg7[%c0_37, %c0_38, %c20], %16 {strides = array<i32>} : memref<8x8x36xbf16, #tpu.memory_space<vmem>>, vector<8x8x4xbf16>,
    %c0_39 = arith.constant 0 : index
    %c0_40 = arith.constant 0 : index
    %c1_41 = arith.constant 1 : index
    %c0_42 = arith.constant 0 : index
    %c0_43 = arith.constant 0 : index
    %18 = vector.load %arg1[%c0_39, %c0_40, %c1_41, %c0_42, %c0_43] : memref<4x1x9x9x4xbf16, #tpu.memory_space<vmem>>, vector<1x1x8x8x4xbf16>
    %19 = vector.shape_cast %18 : vector<1x1x8x8x4xbf16> to vector<8x8x4xbf16>
    %c0_44 = arith.constant 0 : index
    %c0_45 = arith.constant 0 : index
    %c24 = arith.constant 24 : index
    %20 = vector.load %arg7[%c0_44, %c0_45, %c24] : memref<8x8x36xbf16, #tpu.memory_space<vmem>>, vector<8x8x4xbf16>
    tpu.vector_store %arg7[%c0_44, %c0_45, %c24], %19 {strides = array<i32>} : memref<8x8x36xbf16, #tpu.memory_space<vmem>>, vector<8x8x4xbf16>,
    %c1_46 = arith.constant 1 : index
    %c0_47 = arith.constant 0 : index
    %c1_48 = arith.constant 1 : index
    %c0_49 = arith.constant 0 : index
    %c0_50 = arith.constant 0 : index
    %21 = vector.load %arg1[%c1_46, %c0_47, %c1_48, %c0_49, %c0_50] : memref<4x1x9x9x4xbf16, #tpu.memory_space<vmem>>, vector<1x1x8x8x4xbf16>
    %22 = vector.shape_cast %21 : vector<1x1x8x8x4xbf16> to vector<8x8x4xbf16>
    %c0_51 = arith.constant 0 : index
    %c0_52 = arith.constant 0 : index
    %c28 = arith.constant 28 : index
    %23 = vector.load %arg7[%c0_51, %c0_52, %c28] : memref<8x8x36xbf16, #tpu.memory_space<vmem>>, vector<8x8x4xbf16>
    tpu.vector_store %arg7[%c0_51, %c0_52, %c28], %22 {strides = array<i32>} : memref<8x8x36xbf16, #tpu.memory_space<vmem>>, vector<8x8x4xbf16>,
    %c0_53 = arith.constant 0 : index
    %c0_54 = arith.constant 0 : index
    %c1_55 = arith.constant 1 : index
    %c1_56 = arith.constant 1 : index
    %c0_57 = arith.constant 0 : index
    %24 = vector.load %arg1[%c0_53, %c0_54, %c1_55, %c1_56, %c0_57] : memref<4x1x9x9x4xbf16, #tpu.memory_space<vmem>>, vector<1x1x8x8x4xbf16>
    %25 = vector.shape_cast %24 : vector<1x1x8x8x4xbf16> to vector<8x8x4xbf16>
    %c0_58 = arith.constant 0 : index
    %c0_59 = arith.constant 0 : index
    %c32 = arith.constant 32 : index
    %26 = vector.load %arg7[%c0_58, %c0_59, %c32] : memref<8x8x36xbf16, #tpu.memory_space<vmem>>, vector<8x8x4xbf16>
    tpu.vector_store %arg7[%c0_58, %c0_59, %c32], %25 {strides = array<i32>} : memref<8x8x36xbf16, #tpu.memory_space<vmem>>, vector<8x8x4xbf16>,
    %c0_60 = arith.constant 0 : index
    %c0_61 = arith.constant 0 : index
    %c0_62 = arith.constant 0 : index
    %27 = vector.load %arg7[%c0_60, %c0_61, %c0_62] : memref<8x8x36xbf16, #tpu.memory_space<vmem>>, vector<8x8x36xbf16>
    %28 = vector.shape_cast %27 : vector<8x8x36xbf16> to vector<64x36xbf16>
    %c0_63 = arith.constant 0 : index
    %c0_64 = arith.constant 0 : index
    %29 = vector.load %arg2[%c0_63, %c0_64] : memref<36x16xbf16, #tpu.memory_space<vmem>>, vector<36x16xbf16>
    %cst = arith.constant dense<0.000000e+00> : vector<64x16xf32>
    %30 = tpu.matmul %28, %29, %cst {dimension_numbers = #tpu.dot_dimension_numbers<[1], [0], [0], [1], [0, 0, 1, 1], [], []>} : vector<64x36xbf16>, vector<36x16xbf16>, vector<64x16xf32> -> vector<64x16xf32>
    %31 = vector.extract_strided_slice %30 {offsets = [0, 0], sizes = [64, 8], strides = [1, 1]} : vector<64x16xf32> to vector<64x8xf32>
    %32 = arith.truncf %31 : vector<64x8xf32> to vector<64x8xbf16>
    %c0_65 = arith.constant 0 : index
    %c0_66 = arith.constant 0 : index
    %c0_67 = arith.constant 0 : index
    %33 = vector.load %arg3[%c0_65, %c0_66, %c0_67] : memref<1x64x8xbf16, #tpu.memory_space<vmem>>, vector<1x64x8xbf16>
    %34 = vector.shape_cast %33 : vector<1x64x8xbf16> to vector<64x8xbf16>
    %35 = vector.shape_cast %32 : vector<64x8xbf16> to vector<1x64x8xbf16>
    tpu.vector_store %arg3[%c0_65, %c0_66, %c0_67], %35 {strides = array<i32>} : memref<1x64x8xbf16, #tpu.memory_space<vmem>>, vector<1x64x8xbf16>,
    %cst_68 = arith.constant dense<0.000000e+00> : vector<8xf32>
    %36 = vector.multi_reduction <add>, %31, %cst_68 [0] : vector<64x8xf32> to vector<8xf32>
    %37 = vector.shape_cast %36 : vector<8xf32> to vector<1x8xf32>
    %38 = arith.mulf %31, %31 : vector<64x8xf32>
    %cst_69 = arith.constant dense<0.000000e+00> : vector<8xf32>
    %39 = vector.multi_reduction <add>, %38, %cst_69 [0] : vector<64x8xf32> to vector<8xf32>
    %40 = vector.shape_cast %39 : vector<8xf32> to vector<1x8xf32>
    %41 = tpu.concatenate %37, %40 in 0 : vector<1x8xf32>, vector<1x8xf32> -> vector<2x8xf32>
    %c0_70 = arith.constant 0 : index
    %c0_71 = arith.constant 0 : index
    %c0_72 = arith.constant 0 : index
    %42 = vector.load %arg4[%c0_70, %c0_71, %c0_72] : memref<1x2x8xf32, #tpu.memory_space<vmem>>, vector<1x2x8xf32>
    %43 = vector.shape_cast %42 : vector<1x2x8xf32> to vector<2x8xf32>
    %44 = vector.shape_cast %41 : vector<2x8xf32> to vector<1x2x8xf32>
    tpu.vector_store %arg4[%c0_70, %c0_71, %c0_72], %44 {strides = array<i32>} : memref<1x2x8xf32, #tpu.memory_space<vmem>>, vector<1x2x8xf32>,
    %45 = vector.extract_strided_slice %30 {offsets = [0, 8], sizes = [64, 8], strides = [1, 1]} : vector<64x16xf32> to vector<64x8xf32>
    %46 = arith.truncf %45 : vector<64x8xf32> to vector<64x8xbf16>
    %c0_73 = arith.constant 0 : index
    %c0_74 = arith.constant 0 : index
    %c0_75 = arith.constant 0 : index
    %47 = vector.load %arg5[%c0_73, %c0_74, %c0_75] : memref<1x64x8xbf16, #tpu.memory_space<vmem>>, vector<1x64x8xbf16>
    %48 = vector.shape_cast %47 : vector<1x64x8xbf16> to vector<64x8xbf16>
    %49 = vector.shape_cast %46 : vector<64x8xbf16> to vector<1x64x8xbf16>
    tpu.vector_store %arg5[%c0_73, %c0_74, %c0_75], %49 {strides = array<i32>} : memref<1x64x8xbf16, #tpu.memory_space<vmem>>, vector<1x64x8xbf16>,
    %cst_76 = arith.constant dense<0.000000e+00> : vector<8xf32>
    %50 = vector.multi_reduction <add>, %45, %cst_76 [0] : vector<64x8xf32> to vector<8xf32>
    %51 = vector.shape_cast %50 : vector<8xf32> to vector<1x8xf32>
    %52 = arith.mulf %45, %45 : vector<64x8xf32>
    %cst_77 = arith.constant dense<0.000000e+00> : vector<8xf32>
    %53 = vector.multi_reduction <add>, %52, %cst_77 [0] : vector<64x8xf32> to vector<8xf32>
    %54 = vector.shape_cast %53 : vector<8xf32> to vector<1x8xf32>
    %55 = tpu.concatenate %51, %54 in 0 : vector<1x8xf32>, vector<1x8xf32> -> vector<2x8xf32>
    %c0_78 = arith.constant 0 : index
    %c0_79 = arith.constant 0 : index
    %c0_80 = arith.constant 0 : index
    %56 = vector.load %arg6[%c0_78, %c0_79, %c0_80] : memref<1x2x8xf32, #tpu.memory_space<vmem>>, vector<1x2x8xf32>
    %57 = vector.shape_cast %56 : vector<1x2x8xf32> to vector<2x8xf32>
    %58 = vector.shape_cast %55 : vector<2x8xf32> to vector<1x2x8xf32>
    tpu.vector_store %arg6[%c0_78, %c0_79, %c0_80], %58 {strides = array<i32>} : memref<1x2x8xf32, #tpu.memory_space<vmem>>, vector<1x2x8xf32>,
    return
  }
  func.func @transform_0(%arg0: i32) -> (i32, i32, i32, i32, i32) {
    %c0_i32 = arith.constant 0 : i32
    %c0_i32_0 = arith.constant 0 : i32
    %c0_i32_1 = arith.constant 0 : i32
    %c0_i32_2 = arith.constant 0 : i32
    %c0_i32_3 = arith.constant 0 : i32
    return %c0_i32, %arg0, %c0_i32_0, %c0_i32_1, %c0_i32_2 : i32, i32, i32, i32, i32
  }
  func.func @transform_1(%arg0: i32) -> (i32, i32) {
    %c0_i32 = arith.constant 0 : i32
    %c0_i32_0 = arith.constant 0 : i32
    %c0_i32_1 = arith.constant 0 : i32
    return %c0_i32, %c0_i32_0 : i32, i32
  }
  func.func @transform_2(%arg0: i32) -> (i32, i32, i32) {
    %c0_i32 = arith.constant 0 : i32
    %c0_i32_0 = arith.constant 0 : i32
    %c0_i32_1 = arith.constant 0 : i32
    return %arg0, %c0_i32, %c0_i32_0 : i32, i32, i32
  }
  func.func @transform_3(%arg0: i32) -> (i32, i32, i32) {
    %c0_i32 = arith.constant 0 : i32
    %c0_i32_0 = arith.constant 0 : i32
    %c0_i32_1 = arith.constant 0 : i32
    return %arg0, %c0_i32, %c0_i32_0 : i32, i32, i32
  }
  func.func @transform_4(%arg0: i32) -> (i32, i32, i32) {
    %c0_i32 = arith.constant 0 : i32
    %c0_i32_0 = arith.constant 0 : i32
    %c0_i32_1 = arith.constant 0 : i32
    return %arg0, %c0_i32, %c0_i32_0 : i32, i32, i32
  }
  func.func @transform_5(%arg0: i32) -> (i32, i32, i32) {
    %c0_i32 = arith.constant 0 : i32
    %c0_i32_0 = arith.constant 0 : i32
    %c0_i32_1 = arith.constant 0 : i32
    return %arg0, %c0_i32, %c0_i32_0 : i32, i32, i32
  }
}

module attributes {stable_mosaic.version = 11 : i64} {
  func.func @_conv2_fused_kernel(%arg0: i32, %arg1: memref<1x64x8xbf16, #tpu.memory_space<vmem>>, %arg2: memref<1x8xf32, #tpu.memory_space<vmem>>, %arg3: memref<1x8xf32, #tpu.memory_space<vmem>>, %arg4: memref<72x8xbf16, #tpu.memory_space<vmem>>, %arg5: memref<1x64x8xbf16, #tpu.memory_space<vmem>>, %arg6: memref<1x2x8xf32, #tpu.memory_space<vmem>>, %arg7: memref<10x11x8xbf16, #tpu.memory_space<vmem>>, %arg8: memref<8x8x72xbf16, #tpu.memory_space<vmem>>) attributes {dimension_semantics = [#tpu.dimension_semantics<parallel>], iteration_bounds = array<i64: 2>, scalar_prefetch = 0 : i64, scratch_operands = 2 : i64, tpu.core_type = #tpu.core_type<tc>, window_params = [{transform_indices = @transform_0, window_bounds = array<i64: 1, 64, 8>}, {pipeline_mode = #tpu.pipeline_mode<synchronous>, transform_indices = @transform_1, window_bounds = array<i64: 1, 8>}, {pipeline_mode = #tpu.pipeline_mode<synchronous>, transform_indices = @transform_2, window_bounds = array<i64: 1, 8>}, {pipeline_mode = #tpu.pipeline_mode<synchronous>, transform_indices = @transform_3, window_bounds = array<i64: 72, 8>}, {transform_indices = @transform_4, window_bounds = array<i64: 1, 64, 8>}, {transform_indices = @transform_5, window_bounds = array<i64: 1, 2, 8>}]} {
    %cst = arith.constant 0.000000e+00 : bf16
    %0 = vector.broadcast %cst : bf16 to vector<10x11x8xbf16>
    %c0 = arith.constant 0 : index
    %c0_0 = arith.constant 0 : index
    %c0_1 = arith.constant 0 : index
    %1 = vector.load %arg7[%c0, %c0_0, %c0_1] : memref<10x11x8xbf16, #tpu.memory_space<vmem>>, vector<10x11x8xbf16>
    tpu.vector_store %arg7[%c0, %c0_0, %c0_1], %0 {strides = array<i32>} : memref<10x11x8xbf16, #tpu.memory_space<vmem>>, vector<10x11x8xbf16>,
    %c0_2 = arith.constant 0 : index
    %c0_3 = arith.constant 0 : index
    %c0_4 = arith.constant 0 : index
    %2 = vector.load %arg1[%c0_2, %c0_3, %c0_4] : memref<1x64x8xbf16, #tpu.memory_space<vmem>>, vector<1x64x8xbf16>
    %3 = vector.shape_cast %2 : vector<1x64x8xbf16> to vector<64x8xbf16>
    %4 = arith.extf %3 : vector<64x8xbf16> to vector<64x8xf32>
    %c0_5 = arith.constant 0 : index
    %c0_6 = arith.constant 0 : index
    %5 = vector.load %arg2[%c0_5, %c0_6] : memref<1x8xf32, #tpu.memory_space<vmem>>, vector<1x8xf32>
    %6 = vector.broadcast %5 : vector<1x8xf32> to vector<64x8xf32>
    %7 = arith.mulf %4, %6 : vector<64x8xf32>
    %c0_7 = arith.constant 0 : index
    %c0_8 = arith.constant 0 : index
    %8 = vector.load %arg3[%c0_7, %c0_8] : memref<1x8xf32, #tpu.memory_space<vmem>>, vector<1x8xf32>
    %9 = vector.broadcast %8 : vector<1x8xf32> to vector<64x8xf32>
    %10 = arith.addf %7, %9 : vector<64x8xf32>
    %cst_9 = arith.constant 0.000000e+00 : f32
    %11 = vector.broadcast %cst_9 : f32 to vector<64x8xf32>
    %12 = arith.maximumf %10, %11 : vector<64x8xf32>
    %13 = vector.shape_cast %12 : vector<64x8xf32> to vector<8x8x8xf32>
    %14 = arith.truncf %13 : vector<8x8x8xf32> to vector<8x8x8xbf16>
    %c1 = arith.constant 1 : index
    %c2 = arith.constant 2 : index
    %c0_10 = arith.constant 0 : index
    %15 = vector.load %arg7[%c1, %c2, %c0_10] : memref<10x11x8xbf16, #tpu.memory_space<vmem>>, vector<8x8x8xbf16>
    tpu.vector_store %arg7[%c1, %c2, %c0_10], %14 {strides = array<i32>} : memref<10x11x8xbf16, #tpu.memory_space<vmem>>, vector<8x8x8xbf16>,
    %c0_11 = arith.constant 0 : index
    %c1_12 = arith.constant 1 : index
    %c0_13 = arith.constant 0 : index
    %16 = vector.load %arg7[%c0_11, %c1_12, %c0_13] : memref<10x11x8xbf16, #tpu.memory_space<vmem>>, vector<8x8x8xbf16>
    %c0_14 = arith.constant 0 : index
    %c0_15 = arith.constant 0 : index
    %c0_16 = arith.constant 0 : index
    %17 = vector.load %arg8[%c0_14, %c0_15, %c0_16] : memref<8x8x72xbf16, #tpu.memory_space<vmem>>, vector<8x8x8xbf16>
    tpu.vector_store %arg8[%c0_14, %c0_15, %c0_16], %16 {strides = array<i32>} : memref<8x8x72xbf16, #tpu.memory_space<vmem>>, vector<8x8x8xbf16>,
    %c0_17 = arith.constant 0 : index
    %c2_18 = arith.constant 2 : index
    %c0_19 = arith.constant 0 : index
    %18 = vector.load %arg7[%c0_17, %c2_18, %c0_19] : memref<10x11x8xbf16, #tpu.memory_space<vmem>>, vector<8x8x8xbf16>
    %c0_20 = arith.constant 0 : index
    %c0_21 = arith.constant 0 : index
    %c8 = arith.constant 8 : index
    %19 = vector.load %arg8[%c0_20, %c0_21, %c8] : memref<8x8x72xbf16, #tpu.memory_space<vmem>>, vector<8x8x8xbf16>
    tpu.vector_store %arg8[%c0_20, %c0_21, %c8], %18 {strides = array<i32>} : memref<8x8x72xbf16, #tpu.memory_space<vmem>>, vector<8x8x8xbf16>,
    %c0_22 = arith.constant 0 : index
    %c3 = arith.constant 3 : index
    %c0_23 = arith.constant 0 : index
    %20 = vector.load %arg7[%c0_22, %c3, %c0_23] : memref<10x11x8xbf16, #tpu.memory_space<vmem>>, vector<8x8x8xbf16>
    %c0_24 = arith.constant 0 : index
    %c0_25 = arith.constant 0 : index
    %c16 = arith.constant 16 : index
    %21 = vector.load %arg8[%c0_24, %c0_25, %c16] : memref<8x8x72xbf16, #tpu.memory_space<vmem>>, vector<8x8x8xbf16>
    tpu.vector_store %arg8[%c0_24, %c0_25, %c16], %20 {strides = array<i32>} : memref<8x8x72xbf16, #tpu.memory_space<vmem>>, vector<8x8x8xbf16>,
    %c1_26 = arith.constant 1 : index
    %c1_27 = arith.constant 1 : index
    %c0_28 = arith.constant 0 : index
    %22 = vector.load %arg7[%c1_26, %c1_27, %c0_28] : memref<10x11x8xbf16, #tpu.memory_space<vmem>>, vector<8x8x8xbf16>
    %c0_29 = arith.constant 0 : index
    %c0_30 = arith.constant 0 : index
    %c24 = arith.constant 24 : index
    %23 = vector.load %arg8[%c0_29, %c0_30, %c24] : memref<8x8x72xbf16, #tpu.memory_space<vmem>>, vector<8x8x8xbf16>
    tpu.vector_store %arg8[%c0_29, %c0_30, %c24], %22 {strides = array<i32>} : memref<8x8x72xbf16, #tpu.memory_space<vmem>>, vector<8x8x8xbf16>,
    %c1_31 = arith.constant 1 : index
    %c2_32 = arith.constant 2 : index
    %c0_33 = arith.constant 0 : index
    %24 = vector.load %arg7[%c1_31, %c2_32, %c0_33] : memref<10x11x8xbf16, #tpu.memory_space<vmem>>, vector<8x8x8xbf16>
    %c0_34 = arith.constant 0 : index
    %c0_35 = arith.constant 0 : index
    %c32 = arith.constant 32 : index
    %25 = vector.load %arg8[%c0_34, %c0_35, %c32] : memref<8x8x72xbf16, #tpu.memory_space<vmem>>, vector<8x8x8xbf16>
    tpu.vector_store %arg8[%c0_34, %c0_35, %c32], %24 {strides = array<i32>} : memref<8x8x72xbf16, #tpu.memory_space<vmem>>, vector<8x8x8xbf16>,
    %c1_36 = arith.constant 1 : index
    %c3_37 = arith.constant 3 : index
    %c0_38 = arith.constant 0 : index
    %26 = vector.load %arg7[%c1_36, %c3_37, %c0_38] : memref<10x11x8xbf16, #tpu.memory_space<vmem>>, vector<8x8x8xbf16>
    %c0_39 = arith.constant 0 : index
    %c0_40 = arith.constant 0 : index
    %c40 = arith.constant 40 : index
    %27 = vector.load %arg8[%c0_39, %c0_40, %c40] : memref<8x8x72xbf16, #tpu.memory_space<vmem>>, vector<8x8x8xbf16>
    tpu.vector_store %arg8[%c0_39, %c0_40, %c40], %26 {strides = array<i32>} : memref<8x8x72xbf16, #tpu.memory_space<vmem>>, vector<8x8x8xbf16>,
    %c2_41 = arith.constant 2 : index
    %c1_42 = arith.constant 1 : index
    %c0_43 = arith.constant 0 : index
    %28 = vector.load %arg7[%c2_41, %c1_42, %c0_43] : memref<10x11x8xbf16, #tpu.memory_space<vmem>>, vector<8x8x8xbf16>
    %c0_44 = arith.constant 0 : index
    %c0_45 = arith.constant 0 : index
    %c48 = arith.constant 48 : index
    %29 = vector.load %arg8[%c0_44, %c0_45, %c48] : memref<8x8x72xbf16, #tpu.memory_space<vmem>>, vector<8x8x8xbf16>
    tpu.vector_store %arg8[%c0_44, %c0_45, %c48], %28 {strides = array<i32>} : memref<8x8x72xbf16, #tpu.memory_space<vmem>>, vector<8x8x8xbf16>,
    %c2_46 = arith.constant 2 : index
    %c2_47 = arith.constant 2 : index
    %c0_48 = arith.constant 0 : index
    %30 = vector.load %arg7[%c2_46, %c2_47, %c0_48] : memref<10x11x8xbf16, #tpu.memory_space<vmem>>, vector<8x8x8xbf16>
    %c0_49 = arith.constant 0 : index
    %c0_50 = arith.constant 0 : index
    %c56 = arith.constant 56 : index
    %31 = vector.load %arg8[%c0_49, %c0_50, %c56] : memref<8x8x72xbf16, #tpu.memory_space<vmem>>, vector<8x8x8xbf16>
    tpu.vector_store %arg8[%c0_49, %c0_50, %c56], %30 {strides = array<i32>} : memref<8x8x72xbf16, #tpu.memory_space<vmem>>, vector<8x8x8xbf16>,
    %c2_51 = arith.constant 2 : index
    %c3_52 = arith.constant 3 : index
    %c0_53 = arith.constant 0 : index
    %32 = vector.load %arg7[%c2_51, %c3_52, %c0_53] : memref<10x11x8xbf16, #tpu.memory_space<vmem>>, vector<8x8x8xbf16>
    %c0_54 = arith.constant 0 : index
    %c0_55 = arith.constant 0 : index
    %c64 = arith.constant 64 : index
    %33 = vector.load %arg8[%c0_54, %c0_55, %c64] : memref<8x8x72xbf16, #tpu.memory_space<vmem>>, vector<8x8x8xbf16>
    tpu.vector_store %arg8[%c0_54, %c0_55, %c64], %32 {strides = array<i32>} : memref<8x8x72xbf16, #tpu.memory_space<vmem>>, vector<8x8x8xbf16>,
    %c0_56 = arith.constant 0 : index
    %c0_57 = arith.constant 0 : index
    %c0_58 = arith.constant 0 : index
    %34 = vector.load %arg8[%c0_56, %c0_57, %c0_58] : memref<8x8x72xbf16, #tpu.memory_space<vmem>>, vector<8x8x72xbf16>
    %35 = vector.shape_cast %34 : vector<8x8x72xbf16> to vector<64x72xbf16>
    %c0_59 = arith.constant 0 : index
    %c0_60 = arith.constant 0 : index
    %36 = vector.load %arg4[%c0_59, %c0_60] : memref<72x8xbf16, #tpu.memory_space<vmem>>, vector<72x8xbf16>
    %cst_61 = arith.constant dense<0.000000e+00> : vector<64x8xf32>
    %37 = tpu.matmul %35, %36, %cst_61 {dimension_numbers = #tpu.dot_dimension_numbers<[1], [0], [0], [1], [0, 0, 1, 1], [], []>} : vector<64x72xbf16>, vector<72x8xbf16>, vector<64x8xf32> -> vector<64x8xf32>
    %38 = arith.truncf %37 : vector<64x8xf32> to vector<64x8xbf16>
    %c0_62 = arith.constant 0 : index
    %c0_63 = arith.constant 0 : index
    %c0_64 = arith.constant 0 : index
    %39 = vector.load %arg5[%c0_62, %c0_63, %c0_64] : memref<1x64x8xbf16, #tpu.memory_space<vmem>>, vector<1x64x8xbf16>
    %40 = vector.shape_cast %39 : vector<1x64x8xbf16> to vector<64x8xbf16>
    %41 = vector.shape_cast %38 : vector<64x8xbf16> to vector<1x64x8xbf16>
    tpu.vector_store %arg5[%c0_62, %c0_63, %c0_64], %41 {strides = array<i32>} : memref<1x64x8xbf16, #tpu.memory_space<vmem>>, vector<1x64x8xbf16>,
    %cst_65 = arith.constant dense<0.000000e+00> : vector<8xf32>
    %42 = vector.multi_reduction <add>, %37, %cst_65 [0] : vector<64x8xf32> to vector<8xf32>
    %43 = vector.shape_cast %42 : vector<8xf32> to vector<1x8xf32>
    %44 = arith.mulf %37, %37 : vector<64x8xf32>
    %cst_66 = arith.constant dense<0.000000e+00> : vector<8xf32>
    %45 = vector.multi_reduction <add>, %44, %cst_66 [0] : vector<64x8xf32> to vector<8xf32>
    %46 = vector.shape_cast %45 : vector<8xf32> to vector<1x8xf32>
    %47 = tpu.concatenate %43, %46 in 0 : vector<1x8xf32>, vector<1x8xf32> -> vector<2x8xf32>
    %c0_67 = arith.constant 0 : index
    %c0_68 = arith.constant 0 : index
    %c0_69 = arith.constant 0 : index
    %48 = vector.load %arg6[%c0_67, %c0_68, %c0_69] : memref<1x2x8xf32, #tpu.memory_space<vmem>>, vector<1x2x8xf32>
    %49 = vector.shape_cast %48 : vector<1x2x8xf32> to vector<2x8xf32>
    %50 = vector.shape_cast %47 : vector<2x8xf32> to vector<1x2x8xf32>
    tpu.vector_store %arg6[%c0_67, %c0_68, %c0_69], %50 {strides = array<i32>} : memref<1x2x8xf32, #tpu.memory_space<vmem>>, vector<1x2x8xf32>,
    return
  }
  func.func @transform_0(%arg0: i32) -> (i32, i32, i32) {
    %c0_i32 = arith.constant 0 : i32
    %c0_i32_0 = arith.constant 0 : i32
    %c0_i32_1 = arith.constant 0 : i32
    return %arg0, %c0_i32, %c0_i32_0 : i32, i32, i32
  }
  func.func @transform_1(%arg0: i32) -> (i32, i32) {
    %c0_i32 = arith.constant 0 : i32
    %c0_i32_0 = arith.constant 0 : i32
    %c0_i32_1 = arith.constant 0 : i32
    return %c0_i32, %c0_i32_0 : i32, i32
  }
  func.func @transform_2(%arg0: i32) -> (i32, i32) {
    %c0_i32 = arith.constant 0 : i32
    %c0_i32_0 = arith.constant 0 : i32
    %c0_i32_1 = arith.constant 0 : i32
    return %c0_i32, %c0_i32_0 : i32, i32
  }
  func.func @transform_3(%arg0: i32) -> (i32, i32) {
    %c0_i32 = arith.constant 0 : i32
    %c0_i32_0 = arith.constant 0 : i32
    %c0_i32_1 = arith.constant 0 : i32
    return %c0_i32, %c0_i32_0 : i32, i32
  }
  func.func @transform_4(%arg0: i32) -> (i32, i32, i32) {
    %c0_i32 = arith.constant 0 : i32
    %c0_i32_0 = arith.constant 0 : i32
    %c0_i32_1 = arith.constant 0 : i32
    return %arg0, %c0_i32, %c0_i32_0 : i32, i32, i32
  }
  func.func @transform_5(%arg0: i32) -> (i32, i32, i32) {
    %c0_i32 = arith.constant 0 : i32
    %c0_i32_0 = arith.constant 0 : i32
    %c0_i32_1 = arith.constant 0 : i32
    return %arg0, %c0_i32, %c0_i32_0 : i32, i32, i32
  }
}

module attributes {stable_mosaic.version = 11 : i64} {
  func.func @_bn2_residual_kernel(%arg0: i32, %arg1: memref<1x64x8xbf16, #tpu.memory_space<vmem>>, %arg2: memref<1x8xf32, #tpu.memory_space<vmem>>, %arg3: memref<1x8xf32, #tpu.memory_space<vmem>>, %arg4: memref<1x64x8xbf16, #tpu.memory_space<vmem>>, %arg5: memref<1x8xf32, #tpu.memory_space<vmem>>, %arg6: memref<1x8xf32, #tpu.memory_space<vmem>>, %arg7: memref<1x8x64xf32, #tpu.memory_space<vmem>>) attributes {dimension_semantics = [#tpu.dimension_semantics<parallel>], iteration_bounds = array<i64: 2>, scalar_prefetch = 0 : i64, scratch_operands = 0 : i64, tpu.core_type = #tpu.core_type<tc>, window_params = [{transform_indices = @transform_0, window_bounds = array<i64: 1, 64, 8>}, {pipeline_mode = #tpu.pipeline_mode<synchronous>, transform_indices = @transform_1, window_bounds = array<i64: 1, 8>}, {pipeline_mode = #tpu.pipeline_mode<synchronous>, transform_indices = @transform_2, window_bounds = array<i64: 1, 8>}, {transform_indices = @transform_3, window_bounds = array<i64: 1, 64, 8>}, {pipeline_mode = #tpu.pipeline_mode<synchronous>, transform_indices = @transform_4, window_bounds = array<i64: 1, 8>}, {pipeline_mode = #tpu.pipeline_mode<synchronous>, transform_indices = @transform_5, window_bounds = array<i64: 1, 8>}, {transform_indices = @transform_6, window_bounds = array<i64: 1, 8, 64>}]} {
    %c0 = arith.constant 0 : index
    %c0_0 = arith.constant 0 : index
    %c0_1 = arith.constant 0 : index
    %0 = vector.load %arg1[%c0, %c0_0, %c0_1] : memref<1x64x8xbf16, #tpu.memory_space<vmem>>, vector<1x64x8xbf16>
    %1 = vector.shape_cast %0 : vector<1x64x8xbf16> to vector<64x8xbf16>
    %2 = arith.extf %1 : vector<64x8xbf16> to vector<64x8xf32>
    %c0_2 = arith.constant 0 : index
    %c0_3 = arith.constant 0 : index
    %3 = vector.load %arg2[%c0_2, %c0_3] : memref<1x8xf32, #tpu.memory_space<vmem>>, vector<1x8xf32>
    %4 = vector.broadcast %3 : vector<1x8xf32> to vector<64x8xf32>
    %5 = arith.mulf %2, %4 : vector<64x8xf32>
    %c0_4 = arith.constant 0 : index
    %c0_5 = arith.constant 0 : index
    %6 = vector.load %arg3[%c0_4, %c0_5] : memref<1x8xf32, #tpu.memory_space<vmem>>, vector<1x8xf32>
    %7 = vector.broadcast %6 : vector<1x8xf32> to vector<64x8xf32>
    %8 = arith.addf %5, %7 : vector<64x8xf32>
    %c0_6 = arith.constant 0 : index
    %c0_7 = arith.constant 0 : index
    %c0_8 = arith.constant 0 : index
    %9 = vector.load %arg4[%c0_6, %c0_7, %c0_8] : memref<1x64x8xbf16, #tpu.memory_space<vmem>>, vector<1x64x8xbf16>
    %10 = vector.shape_cast %9 : vector<1x64x8xbf16> to vector<64x8xbf16>
    %11 = arith.extf %10 : vector<64x8xbf16> to vector<64x8xf32>
    %c0_9 = arith.constant 0 : index
    %c0_10 = arith.constant 0 : index
    %12 = vector.load %arg5[%c0_9, %c0_10] : memref<1x8xf32, #tpu.memory_space<vmem>>, vector<1x8xf32>
    %13 = vector.broadcast %12 : vector<1x8xf32> to vector<64x8xf32>
    %14 = arith.mulf %11, %13 : vector<64x8xf32>
    %c0_11 = arith.constant 0 : index
    %c0_12 = arith.constant 0 : index
    %15 = vector.load %arg6[%c0_11, %c0_12] : memref<1x8xf32, #tpu.memory_space<vmem>>, vector<1x8xf32>
    %16 = vector.broadcast %15 : vector<1x8xf32> to vector<64x8xf32>
    %17 = arith.addf %14, %16 : vector<64x8xf32>
    %18 = arith.addf %8, %17 : vector<64x8xf32>
    %cst = arith.constant 0.000000e+00 : f32
    %19 = vector.broadcast %cst : f32 to vector<64x8xf32>
    %20 = arith.maximumf %18, %19 : vector<64x8xf32>
    %21 = tpu.transpose %20, [1, 0] : vector<64x8xf32> -> vector<8x64xf32>
    %c0_13 = arith.constant 0 : index
    %c0_14 = arith.constant 0 : index
    %c0_15 = arith.constant 0 : index
    %22 = vector.load %arg7[%c0_13, %c0_14, %c0_15] : memref<1x8x64xf32, #tpu.memory_space<vmem>>, vector<1x8x64xf32>
    %23 = vector.shape_cast %22 : vector<1x8x64xf32> to vector<8x64xf32>
    %24 = vector.shape_cast %21 : vector<8x64xf32> to vector<1x8x64xf32>
    tpu.vector_store %arg7[%c0_13, %c0_14, %c0_15], %24 {strides = array<i32>} : memref<1x8x64xf32, #tpu.memory_space<vmem>>, vector<1x8x64xf32>,
    return
  }
  func.func @transform_0(%arg0: i32) -> (i32, i32, i32) {
    %c0_i32 = arith.constant 0 : i32
    %c0_i32_0 = arith.constant 0 : i32
    %c0_i32_1 = arith.constant 0 : i32
    return %arg0, %c0_i32, %c0_i32_0 : i32, i32, i32
  }
  func.func @transform_1(%arg0: i32) -> (i32, i32) {
    %c0_i32 = arith.constant 0 : i32
    %c0_i32_0 = arith.constant 0 : i32
    %c0_i32_1 = arith.constant 0 : i32
    return %c0_i32, %c0_i32_0 : i32, i32
  }
  func.func @transform_2(%arg0: i32) -> (i32, i32) {
    %c0_i32 = arith.constant 0 : i32
    %c0_i32_0 = arith.constant 0 : i32
    %c0_i32_1 = arith.constant 0 : i32
    return %c0_i32, %c0_i32_0 : i32, i32
  }
  func.func @transform_3(%arg0: i32) -> (i32, i32, i32) {
    %c0_i32 = arith.constant 0 : i32
    %c0_i32_0 = arith.constant 0 : i32
    %c0_i32_1 = arith.constant 0 : i32
    return %arg0, %c0_i32, %c0_i32_0 : i32, i32, i32
  }
  func.func @transform_4(%arg0: i32) -> (i32, i32) {
    %c0_i32 = arith.constant 0 : i32
    %c0_i32_0 = arith.constant 0 : i32
    %c0_i32_1 = arith.constant 0 : i32
    return %c0_i32, %c0_i32_0 : i32, i32
  }
  func.func @transform_5(%arg0: i32) -> (i32, i32) {
    %c0_i32 = arith.constant 0 : i32
    %c0_i32_0 = arith.constant 0 : i32
    %c0_i32_1 = arith.constant 0 : i32
    return %c0_i32, %c0_i32_0 : i32, i32
  }
  func.func @transform_6(%arg0: i32) -> (i32, i32, i32) {
    %c0_i32 = arith.constant 0 : i32
    %c0_i32_0 = arith.constant 0 : i32
    %c0_i32_1 = arith.constant 0 : i32
    return %arg0, %c0_i32, %c0_i32_0 : i32, i32, i32
  }
}

</mosaic_0001>

<bundles_post_ra>
// kernel: _lambda_.3
= control target key start
LH: loop header
LB: loop body
LE: loop exit
PB: predicated region body
PF: predicated region fallthrough
CT: control target
= control target key end

     0   :  { %s2786_s0 = inlined_call_operand.hbm [shape: bf16[4,2,9,9,4], index: 0, kind: input, shape index: {}]   ;;  %s2787_s1 = inlined_call_operand.hbm [shape: bf16[36,16], index: 1, kind: input, shape index: {}]   ;;  %s2788_s2 = inlined_call_operand.hbm [shape: bf16[2,64,8], index: 2, kind: output, shape index: {0}]   ;;  %s2789_s3 = inlined_call_operand.hbm [shape: f32[2,2,8], index: 3, kind: output, shape index: {1}]   ;;  %s2790_s4 = inlined_call_operand.hbm [shape: bf16[2,64,8], index: 4, kind: output, shape index: {2}]   ;;  %s2791_s5 = inlined_call_operand.hbm [shape: f32[2,2,8], index: 5, kind: output, shape index: {3}]  }
   0x1   :  { %2799 = sst [smem:[#allocation22_spill]] %s2787_s1 }
   0x2   :  { %11 = vsyncpa [#allocation4], 0 }
   0x3   :  { %13 = vsyncpa [#allocation4 + $0x1], 0 }
   0x4   :  { %14 = vsyncpa [#allocation7], 0 }
   0x5   :  { %15 = vsyncpa [#allocation5], 0 }
   0x6   :  { %17 = vsyncpa [#allocation5 + $0x1], 0 }
   0x7   :  { %18 = vsyncpa [#allocation10], 0 }
   0x8   :  { %20 = vsyncpa [#allocation10 + $0x1], 0 }
   0x9   :  { %21 = vsyncpa [#allocation13], 0 }
   0xa   :  { %23 = vsyncpa [#allocation13 + $0x1], 0  ;;  %s2121_s18 = smov 0   ;;  %s2123_s19 = smov 0  }
   0xb   :  { %s2125_s20 = smov 0   ;;  %s2127_s21 = smov 0  }
   0xc LB: > { %s2142_s22 = sadd.s32 4294967295, %s2066_s21   ;;  %s2797_s23 = sadd.s32 4294967294, %s2066_s21   ;;  %s2066_s21 = sphi %s2127_s21, %s2821_s21   ;;  %s2062_s20 = sphi %s2125_s20, %s2820_s20   ;;  %s2058_s19 = sphi %s2123_s19, %s2819_s19   ;;  %s2054_s18 = sphi %s2121_s18, %s2818_s18  }
   0xd   : > { %s2146_s24 = sadd.s32 1, %s2066_s21   ;;  %s36_s25 = sadd.s32 1, %s2062_s20 }
   0xe   : > { %s33_s26 = ssub.s32 %s2066_s21, %s2146_s24  ;;  %p43_p0 = scmp.ne.s32.totalorder %s2062_s20, %s2058_s19 }
   0xf   : > { %p34_p1 = scmp.eq.s32.totalorder %s33_s26, 0  ;;  %p44_p2 = scmp.eq.s32.totalorder %s2066_s21, 0 }
  0x10   : > { %p49_p3 = scmp.ne.s32.totalorder %s2058_s19, %s2054_s18  ;;  %p2792_p4 = scmp.eq.s32.totalorder %s2142_s22, 0 }
  0x11   : > { %s2158_s27 = scalar_select %p34_p1, %s2062_s20, %s36_s25  }
  0x12   : > { %p2160_p5 = por %p44_p2, %p43_p0  ;;  %p2166_p6 = por %p2792_p4, %p49_p3 }
  0x13   : > { %p94_p7 = scmp.eq.s32.totalorder %s2142_s22, 1  ;;  %p100_p8 = scmp.eq.s32.totalorder %s2797_s23, 1 }
  0x14   : > { %s2800_s28 = scalar_select %p2160_p5, 1, 0 }
  0x15   : > { %s2801_s29 = scalar_select %p2166_p6, 1, 0 }
  0x16   : > { %p1620_p9 = scmp.ge.s32.totalorder %s2066_s21, 1  ;;  %p185_p10 = scmp.lt.s32.totalorder %s2066_s21, 3 }
  0x17   : > { %p2175_p11 = por %p94_p7, %p43_p0  ;;  %p2179_p12 = por %p100_p8, %p49_p3 }
  0x18   : > { %p2183_p13 = pnand %p1620_p9, %p185_p10  ;;  %s2068_s8 = smov [#allocation6]  }
  0x19   : > { %s2802_s30 = scalar_select %p2175_p11, 1, 0 }
  0x1a   : > { %s2803_s6 = scalar_select %p2179_p12, 1, 0 }
  0x1b   : > { %s2804_s7 = scalar_select %p2183_p13, 1, 0 }
  0x1c   : > { %p1798_p1 = pneg %p2183_p13  ;;  %s197_s9 = sshll.u32 %s2068_s8, 4  ;;  %s198_s9 = int_to_ptr.vmem [resolvable:$true] %s197_s9 }
  0x1d   : > { %s2806_s1 = sld [smem:[#allocation22_spill]] }
  0x1e   : > { %p2191_p2 = pnand %p1798_p1, %p2792_p4 }
  0x20   : > { %p1878_p3 = pneg %p2191_p2 }
  0x23   : > { %s1876_s13 = scalar_lea.hbm %s2806_s1, 320 }
  0x24   : > { %p1877_p0 = scmp.ne.s32.totalorder %s2806_s1, %s1876_s13  ;;  %p1883_p9 = scmp.lt.u32.totalorder %s1876_s13, %s2806_s1 }
  0x26   : > { %p1879_p7 = pnand %p1878_p3, %p1877_p0 }
  0x28   : > { %p1880_p8 = pneg %p1879_p7 }
  0x2a   : > { %p1885_p10 = pnand %p1883_p9, %p1880_p8 }
  0x2c   : > { %1888 = shalt.err (!%p1885_p10)
}
  0x2d   : > { %s1889_s25 = scalar_lea.vmem %s198_s9, 320  ;;  %p1897_p11 = scmp.lt.s32.totalorder %s198_s9, %s198_s9 }
  0x2e   : > { %p1890_p1 = scmp.ne.s32.totalorder %s198_s9, %s1889_s25  ;;  %p1898_p6 = scmp.lt.s32.totalorder %s1889_s25, %s1889_s25 }
  0x30   : > { %p1892_p4 = pnand %p1890_p1, %p1878_p3  ;;  %p1899_p13 = por %p1898_p6, %p1897_p11 }
  0x32   : > { %p1893_p12 = pneg %p1892_p4 }
  0x34   : > { %p1900_p5 = pnand %p1899_p13, %p1893_p12 }
  0x36   : > { %1903 = shalt.err (!%p1900_p5)
}
  0x37   : > { %s2069_s26 = smov 64   ;;  %s2070_s8 = smov 4  }
  0x38   : > { %1801 = dma.hbm_to_vmem [thread:$0]  (!%p2191_p2), %s2806_s1, 320, %s198_s9, [#allocation7], %s2069_s26, %s2069_s26, %s2070_s8  }
  0x39   : > { %p1622_p0 = scmp.ge.s32.totalorder %s2066_s21, 2 }
  0x3b   : > { %207 = sbr.rel (%p1622_p0) target bundleno = 82 (0x52), region = 20 }
  0x42   : > { %s211_s13 = sand.u32 1, %s2062_s20   ;;  %s1775_s14 = smul.u32 1152, %s2066_s21 }
  0x43   : > { %s1774_s10 = smul.u32 288, %s211_s13  ;;  %s2071_s15 = smov 2304  }
  0x44   : > { %p2807_p4 = scmp.ne.s32.totalorder %s2800_s28, 0  ;;  %s221_s25 = scalar_lea.hbm %s2786_s0, %s1775_s14 }
  0x45   : > { %s215_s8 = scalar_lea.vmem [#allocation3], %s1774_s10  ;;  %s2072_s12 = smov 1152  }
  0x46   : > { %1780 = sst [smem:[#allocation15]] (%p2807_p4), %s2071_s15  ;;  %s234_s11 = sshll.u32 %s215_s8, 4  ;;  %s235_s11 = int_to_ptr.vmem [resolvable:$true] %s234_s11 }
  0x47   : > { %s1779_s9 = scalar_select %p2807_p4, [#allocation0], [#allocation16] }
  0x48   : > { %1781 = sst [smem:[#allocation15 + $0x1]] (%p2807_p4), %s2072_s12  ;;  %s2073_s23 = smov 18  }
  0x49   : > { %s226_s26 = sld [smem:[%s1779_s9]]   ;;  %s2074_s1 = smov 64  }
  0x4a   : > { %1782 = sst [smem:[#allocation15 + $0x2]] (%p2807_p4), %s2073_s23  ;;  %s2075_s15 = smov 4  }
  0x4b   : > { %1783 = sst [smem:[#allocation15 + $0x3]] (%p2807_p4), %s2074_s1  ;;  %s212_s10 = scalar_lea.sflag [#allocation4], %s211_s13 }
  0x4c   : > { %1784 = sst [smem:[#allocation15 + $0x4]] (%p2807_p4), %s2074_s1  ;;  %s2076_s16 = smov [#allocation14]  }
  0x4d   : > { %1785 = sst [smem:[#allocation15 + $0x5]] (%p2807_p4), %s2075_s15 }
  0x4f   : > { %s1624_s14 = sshll.u32 %s226_s26, 26 }
  0x50   : > { %s1625_s9 = sadd.s32 134217728, %s1624_s14 }
  0x51   : > { %1786 = dma.general (%p2807_p4), %s221_s25, 4608, %s235_s11, %s212_s10, %s2076_s16, [#allocation15], %s1625_s9, 0  }
  0x52 PF: > { %p2808_p5 = scmp.ne.s32.totalorder %s2804_s7, 0 }
  0x53   : > { %s2238_s23 = sand.u32 (!%p2808_p5), 1, %s2058_s19   ;;  %p2809_p6 = scmp.ne.s32.totalorder (!%p2808_p5), %s2801_s29, 0 }
  0x54   : > { %259 = sbr.rel (%p2808_p5) target bundleno = 722 (0x2d2), region = 28  ;;  %s262_s17 = scalar_lea.sflag (!%p2808_p5), [#allocation4], %s2238_s23 }
  0x55   : > { %s1776_s1 = smul.u32 (!%p2808_p5), 288, %s2238_s23 }
  0x57   : > { %s2242_s8 = scalar_lea.vmem (!%p2808_p5), [#allocation3], %s1776_s1 }
  0x5b   : > { %2033 = dma.done.wait (%p2809_p6), %s262_s17, 4608  }
  0x5c   : > { %2035 = vsyncadd (%p2809_p6), %s262_s17, 4294962688  ;;  %p2810_p11 = scmp.eq.s32.totalorder %s2142_s22, 0 }
  0x5e   : > { %2037 = dma.done.wait (%p2810_p11), [#allocation7], 320   ;;  %p2811_p12 = pmov %p2810_p11 }
  0x5f   : > { %v1634_v0 = vld [vmem:[%s2242_s8 + $0x58] sm:$0xf]  ;;  %v1632_v1 = vld [vmem:[%s2242_s8 + $0x48] sm:$0xf]  ;;  %s2077_s28 = smov 4   ;;  %s2078_s29 = smov 12  }
  0x60   : > { %2039 = vsyncadd (%p2811_p12), [#allocation7], 4294966976  ;;  %350 = vrot.lane.b32.xlu1 %v1634_v0, %s2077_s28  ;;  %346 = vrot.lane.b32.xlu0 %v1632_v1, %s2077_s28  ;;  %v1635_v2 = vld [vmem:[%s2242_s8 + $0x60] sm:$0xf]  ;;  %vm395_vm0 = vsmask.f32 3328 }
  0x61   : > { %vm396_vm1 = vsmask.f32 7440  ;;  %v1633_v3 = vld [vmem:[%s2242_s8 + $0x50] sm:$0xf]  ;;  %v381_v4 = vld [vmem:[%s2242_s8 + $0x8] sm:$0xf] }
  0x62   : > { %v382_v5 = vld [vmem:[%s2242_s8 + $0xc] sm:$0x1]  ;;  %v413_v6 = vshrl.u32 %v381_v4, 16  ;;  %v416_v7 = vshll.u32 %v381_v4, 16  ;;  %v379_v9 = vld [vmem:[%s2242_s8] sm:$0xf]  ;;  %vm2272_vm2 = vmor %vm395_vm0, %vm396_vm1 }
  0x63   : > { %v422_v8 = vshll.u32 %v382_v5, 16  ;;  %v1641_v10 = vld [vmem:[%s2242_s8 + $0x98] sm:$0xf]  ;;  %v1640_v11 = vld [vmem:[%s2242_s8 + $0x90] sm:$0xf]  ;;  %v399_v13 = vshrl.u32 %v379_v9, 16 }
  0x64   : > { %v380_v12 = vld [vmem:[%s2242_s8 + $0x4] sm:$0x1]  ;;  %v402_v14 = vshll.u32 %v379_v9, 16  ;;  %v385_v15 = vld [vmem:[%s2242_s8 + $0x18] sm:$0xf]  ;;  %352 = vrot.lane.b32.xlu1 %v1635_v2, %s2077_s28  ;;  %348 = vrot.lane.b32.xlu0 %v1633_v3, %s2077_s28  ;;  %v415_v16 = vrot.slane %v413_v6, 4 }
  0x65   : > { %v418_v17 = vrot.slane %v416_v7, 5  ;;  %v424_v18 = vrot.slane %v422_v8, 5  ;;  %v408_v19 = vshll.u32 %v380_v12, 16  ;;  %v386_v20 = vld [vmem:[%s2242_s8 + $0x1c] sm:$0x1]  ;;  %v401_v21 = vrot.slane %v399_v13, 4 }
  0x66   : > { %v404_v22 = vrot.slane %v402_v14, 5  ;;  %v441_v23 = vshrl.u32 %v385_v15, 16  ;;  %v444_v24 = vshll.u32 %v385_v15, 16  ;;  %v383_v25 = vld [vmem:[%s2242_s8 + $0x10] sm:$0xf]  ;;  %v450_v28 = vshll.u32 %v386_v20, 16 }
  0x67   : > { %v419_v26 = vor.u32 %v418_v17, %v415_v16  ;;  %v410_v27 = vrot.slane %v408_v19, 5  ;;  %v384_v29 = vld [vmem:[%s2242_s8 + $0x14] sm:$0x1]  ;;  %v427_v30 = vshrl.u32 %v383_v25, 16  ;;  %v430_v35 = vshll.u32 %v383_v25, 16  ;;  %s2079_s7 = smov 8  }
  0x68   : > { %v405_v32 = vor.u32 %v404_v22, %v401_v21  ;;  %v443_v33 = vrot.slane %v441_v23, 4  ;;  %v446_v34 = vrot.slane %v444_v24, 5  ;;  %562 = vrot.lane.b32.xlu1 %v1641_v10, %s2078_s29  ;;  %560 = vrot.lane.b32.xlu0 %v1640_v11, %s2078_s29  ;;  %v436_v38 = vshll.u32 %v384_v29, 16  ;;  %v1658_v48 = vld [vmem:[%s2242_s8 + $0x98] sm:$0xf]  ;;  %s2080_s13 = smov 16  }
  0x69   : > { %v420_v36 = vrot.slane %v419_v26, 4  ;;  %v429_v37 = vrot.slane %v427_v30, 4  ;;  %v452_v41 = vrot.slane %v450_v28, 5  ;;  %v432_v42 = vrot.slane %v430_v35, 5  ;;  %v1656_v51 = vld [vmem:[%s2242_s8 + $0x90] sm:$0xf] }
  0x6a   : > { %v406_v39 = vrot.slane %v405_v32, 4  ;;  %v447_v40 = vor.u32 %v446_v34, %v443_v33  ;;  %v438_v47 = vrot.slane %v436_v38, 5  ;;  %v674_v49 = vshrl.u32 %v1658_v48, 16  ;;  %v1662_v56 = vld [vmem:[%s2242_s8 + $0xa8] sm:$0xf]  ;;  %s2081_s25 = smov 20  }
  0x6b   : > { %v425_v43 = vsel %vm2272_vm2, %v420_v36, %v424_v18  ;;  %v433_v46 = vor.u32 %v432_v42, %v429_v37  ;;  %v677_v50 = vshll.u32 %v1658_v48, 16  ;;  %v660_v54 = vshrl.u32 %v1656_v51, 16  ;;  %v1643_v58 = vld [vmem:[%s2242_s8 + $0xa8] sm:$0xf]  ;;  %v1642_v59 = vld [vmem:[%s2242_s8 + $0xa0] sm:$0xf] }
  0x6c   : > { %v411_v44 = vsel %vm2272_vm2, %v406_v39, %v410_v27  ;;  %v448_v45 = vrot.slane %v447_v40, 4  ;;  %512 = vrot.lane.b32.xlu1 %v425_v43, %s2079_s7  ;;  %v663_v55 = vshll.u32 %v1656_v51, 16  ;;  %v1659_v60 = vld [vmem:[%s2242_s8 + $0x9c] sm:$0x1]  ;;  %v676_v61 = vrot.slane %v674_v49, 4  ;;  %s2082_s26 = smov 24  }
  0x6d   : > { %510 = vrot.lane.b32.xlu0 %v411_v44, %s2079_s7  ;;  %v434_v53 = vrot.slane %v433_v46, 4  ;;  %v679_v62 = vrot.slane %v677_v50, 5  ;;  %v662_v63 = vrot.slane %v660_v54, 4  ;;  %v1660_v1 = vld [vmem:[%s2242_s8 + $0xa0] sm:$0xf]  ;;  %v702_v3 = vshrl.u32 %v1662_v56, 16 }
  0x6e   : > { %v453_v52 = vsel %vm2272_vm2, %v448_v45, %v452_v41  ;;  %v665_v0 = vrot.slane %v663_v55, 5  ;;  %v1657_v2 = vld [vmem:[%s2242_s8 + $0x94] sm:$0x1]  ;;  %v705_v4 = vshll.u32 %v1662_v56, 16  ;;  %v688_v5 = vshrl.u32 %v1660_v1, 16  ;;  %s2083_s11 = smov 28  }
  0x6f   : > { %v439_v57 = vsel %vm2272_vm2, %v434_v53, %v438_v47  ;;  %v691_v6 = vshll.u32 %v1660_v1, 16  ;;  %v1649_v7 = vld [vmem:[%s2242_s8 + $0xe0] sm:$0xf]  ;;  %v1648_v8 = vld [vmem:[%s2242_s8 + $0xd8] sm:$0xf]  ;;  %v680_v9 = vor.u32 %v679_v62, %v676_v61  ;;  %v683_v10 = vshll.u32 %v1659_v60, 16 }
  0x70   : > { %516 = vrot.lane.b32.xlu1 %v453_v52, %s2079_s7  ;;  %v666_v11 = vor.u32 %v665_v0, %v662_v63  ;;  %v669_v12 = vshll.u32 %v1657_v2, 16  ;;  %v1663_v13 = vld [vmem:[%s2242_s8 + $0xac] sm:$0x1]  ;;  %v704_v14 = vrot.slane %v702_v3, 4  ;;  %v707_v15 = vrot.slane %v705_v4, 5  ;;  %s2084_s12 = smov 32  }
  0x71   : > { %514 = vrot.lane.b32.xlu0 %v439_v57, %s2079_s7  ;;  %v690_v16 = vrot.slane %v688_v5, 4  ;;  %v693_v17 = vrot.slane %v691_v6, 5  ;;  %v1661_v18 = vld [vmem:[%s2242_s8 + $0xa4] sm:$0x1]  ;;  %v681_v19 = vrot.slane %v680_v9, 4  ;;  %v685_v20 = vrot.slane %v683_v10, 5 }
  0x72   : > { %v671_v21 = vrot.slane %v669_v12, 5  ;;  %v711_v22 = vshll.u32 %v1663_v13, 16  ;;  %v1651_v23 = vld [vmem:[%s2242_s8 + $0xf0] sm:$0xf]  ;;  %v1650_v24 = vld [vmem:[%s2242_s8 + $0xe8] sm:$0xf]  ;;  %v708_v26 = vor.u32 %v707_v15, %v704_v14 }
  0x73   : > { %v667_v25 = vrot.slane %v666_v11, 4  ;;  %v694_v27 = vor.u32 %v693_v17, %v690_v16  ;;  %v697_v28 = vshll.u32 %v1661_v18, 16  ;;  %v686_v29 = vsel %vm2272_vm2, %v681_v19, %v685_v20  ;;  %v1690_v38 = vld [vmem:[%s2242_s8 + $0x10] sm:$0xf]  ;;  %v1688_v39 = vld [vmem:[%s2242_s8 + $0x8] sm:$0xf] }
  0x74   : > { %566 = vrot.lane.b32.xlu1 %v1643_v58, %s2078_s29  ;;  %v713_v30 = vrot.slane %v711_v22, 5  ;;  %v709_v33 = vrot.slane %v708_v26, 4  ;;  %v1673_v40 = vld [vmem:[%s2242_s8 + $0x10] sm:$0xf]  ;;  %v1672_v41 = vld [vmem:[%s2242_s8 + $0x8] sm:$0xf] }
  0x75   : > { %564 = vrot.lane.b32.xlu0 %v1642_v59, %s2078_s29  ;;  %v672_v32 = vsel %vm2272_vm2, %v667_v25, %v671_v21  ;;  %v695_v34 = vrot.slane %v694_v27, 4  ;;  %v699_v35 = vrot.slane %v697_v28, 5  ;;  %v935_v42 = vshrl.u32 %v1690_v38, 16  ;;  %v1675_v46 = vld [vmem:[%s2242_s8 + $0x20] sm:$0xf]  ;;  %v1870_v19 = vld [vmem:[#allocation6 + $0x8] sm:$0xff]  }
  0x76   : > { %v714_v36 = vsel %vm2272_vm2, %v709_v33, %v713_v30  ;;  %v938_v43 = vshll.u32 %v1690_v38, 16  ;;  %v921_v44 = vshrl.u32 %v1688_v39, 16  ;;  %v924_v45 = vshll.u32 %v1688_v39, 16  ;;  %v1674_v47 = vld [vmem:[%s2242_s8 + $0x18] sm:$0xf]  ;;  %v1869_v9 = vld [vmem:[#allocation6] sm:$0xff]  }
  0x77   : > { %v700_v37 = vsel %vm2272_vm2, %v695_v34, %v699_v35  ;;  %v1691_v48 = vld [vmem:[%s2242_s8 + $0x14] sm:$0x1]  ;;  %v1694_v49 = vld [vmem:[%s2242_s8 + $0x20] sm:$0xf]  ;;  %v1692_v50 = vld [vmem:[%s2242_s8 + $0x18] sm:$0xf]  ;;  %1752 = vmatprep.subr.bf16.mxu0 %v1869_v9  ;;  %1766 = vmatprep.subr.bf16.mxu1 %v1869_v9 }
  0x78   : > { %612 = vrot.lane.b32.xlu1 %v1649_v7, %s2080_s13  ;;  %v937_v51 = vrot.slane %v935_v42, 4  ;;  %v940_v52 = vrot.slane %v938_v43, 5  ;;  %v1689_v53 = vld [vmem:[%s2242_s8 + $0xc] sm:$0x1]  ;;  %v923_v54 = vrot.slane %v921_v44, 4  ;;  %v926_v55 = vrot.slane %v924_v45, 5  ;;  %1753 = vmatpush3.bf16.msra.mxu0 %v1869_v9 }
  0x79   : > { %610 = vrot.lane.b32.xlu0 %v1648_v8, %s2080_s13  ;;  %v963_v56 = vshrl.u32 %v1694_v49, 16  ;;  %v966_v57 = vshll.u32 %v1694_v49, 16  ;;  %v949_v58 = vshrl.u32 %v1692_v50, 16  ;;  %v952_v59 = vshll.u32 %v1692_v50, 16  ;;  %v1681_v62 = vld [vmem:[%s2242_s8 + $0x58] sm:$0xf]  ;;  %1769 = vmatpush3.bf16.msra.mxu1 %v1869_v9 }
  0x7a   : > { %v944_v60 = vshll.u32 %v1691_v48, 16  ;;  %v930_v61 = vshll.u32 %v1689_v53, 16  ;;  %v1680_v63 = vld [vmem:[%s2242_s8 + $0x50] sm:$0xf]  ;;  %v941_v0 = vor.u32 %v940_v52, %v937_v51  ;;  %v927_v1 = vor.u32 %v926_v55, %v923_v54  ;;  %v1695_v2 = vld [vmem:[%s2242_s8 + $0x24] sm:$0x1]  ;;  %1754 = vmatprep.subr.bf16.mxu0 %v1870_v19  ;;  %1767 = vmatprep.subr.bf16.mxu1 %v1870_v19 }
  0x7b   : > { %v1693_v3 = vld [vmem:[%s2242_s8 + $0x1c] sm:$0x1]  ;;  %v1683_v4 = vld [vmem:[%s2242_s8 + $0x68] sm:$0xf]  ;;  %v965_v5 = vrot.slane %v963_v56, 4  ;;  %v968_v6 = vrot.slane %v966_v57, 5 }
  0x7c   : > { %616 = vrot.lane.b32.xlu1 %v1651_v23, %s2080_s13  ;;  %v951_v7 = vrot.slane %v949_v58, 4  ;;  %v954_v8 = vrot.slane %v952_v59, 5  ;;  %v1682_v10 = vld [vmem:[%s2242_s8 + $0x60] sm:$0xf]  ;;  %v946_v11 = vrot.slane %v944_v60, 5  ;;  %v932_v12 = vrot.slane %v930_v61, 5  ;;  %1755 = vmatpush3.bf16.msra.mxu0 %v1870_v19 }
  0x7d   : > { %614 = vrot.lane.b32.xlu0 %v1650_v24, %s2080_s13  ;;  %v389_v13 = vld [vmem:[%s2242_s8 + $0x28] sm:$0xf]  ;;  %v942_v14 = vrot.slane %v941_v0, 4  ;;  %v928_v15 = vrot.slane %v927_v1, 4  ;;  %v972_v16 = vshll.u32 %v1695_v2, 16  ;;  %v958_v17 = vshll.u32 %v1693_v3, 16  ;;  %1770 = vmatpush3.bf16.msra.mxu1 %v1870_v19 }
  0x7e   : > { %v387_v18 = vld [vmem:[%s2242_s8 + $0x20] sm:$0xf]  ;;  %vm320_vm3 = vcmask 27648   ;;  %v969_v20 = vor.u32 %v968_v6, %v965_v5  ;;  %v955_v21 = vor.u32 %v954_v8, %v951_v7  ;;  %v469_v22 = vshrl.u32 %v389_v13, 16  ;;  %v314_v30 = vld [vmem:[%s2242_s8 + $0x10] sm:$0xf] }
  0x7f   : > { %v472_v23 = vshll.u32 %v389_v13, 16  ;;  %v455_v24 = vshrl.u32 %v387_v18, 16  ;;  %v458_v25 = vshll.u32 %v387_v18, 16  ;;  %v947_v26 = vsel %vm2272_vm2, %v942_v14, %v946_v11  ;;  %v393_v33 = vld [vmem:[%s2242_s8 + $0x38] sm:$0xf]  ;;  %s1628_s15 = sshll.u32 %s2238_s23, 5 }
  0x80   : > { %773 = vrot.lane.b32.xlu1 %v686_v29, %s2081_s25  ;;  %v933_v27 = vsel %vm2272_vm2, %v928_v15, %v932_v12  ;;  %v974_v28 = vrot.slane %v972_v16, 5  ;;  %v960_v29 = vrot.slane %v958_v17, 5  ;;  %v391_v34 = vld [vmem:[%s2242_s8 + $0x30] sm:$0xf]  ;;  %323 = vst.msk [vmem:[#allocation2 + $0x8] sm:$0xf] %vm320_vm3, %v314_v30 }
  0x81   : > { %771 = vrot.lane.b32.xlu0 %v672_v32, %s2081_s25  ;;  %v390_v32 = vld [vmem:[%s2242_s8 + $0x2c] sm:$0x1]  ;;  %v312_v35 = vld [vmem:[%s2242_s8] sm:$0xf]  ;;  %v970_v38 = vrot.slane %v969_v20, 4  ;;  %v956_v39 = vrot.slane %v955_v21, 4 }
  0x82   : > { %321 = vst.msk [vmem:[#allocation2] sm:$0xf] %vm320_vm3, %v312_v35  ;;  %v315_v42 = vld [vmem:[%s2242_s8 + $0x18] sm:$0xf]  ;;  %v457_v43 = vrot.slane %v455_v24, 4  ;;  %v460_v44 = vrot.slane %v458_v25, 5 }
  0x83   : > { %324 = vst.msk [vmem:[#allocation2 + $0xc] sm:$0xf] %vm320_vm3, %v315_v42  ;;  %v313_v45 = vld [vmem:[%s2242_s8 + $0x8] sm:$0xf]  ;;  %v500_v48 = vshll.u32 %v393_v33, 16  ;;  %v483_v49 = vshrl.u32 %v391_v34, 16  ;;  %v975_v51 = vsel %vm2272_vm2, %v970_v38, %v974_v28  ;;  %v961_v53 = vsel %vm2272_vm2, %v956_v39, %v960_v29 }
  0x84   : > { %777 = vrot.lane.b32.xlu1 %v714_v36, %s2081_s25  ;;  %v1637_v36 = vld [vmem:[%s2242_s8 + $0x70] sm:$0xf]  ;;  %v486_v50 = vshll.u32 %v391_v34, 16  ;;  %322 = vst.msk [vmem:[#allocation2 + $0x4] sm:$0xf] %vm320_vm3, %v313_v45  ;;  %v478_v52 = vshll.u32 %v390_v32, 16  ;;  %v461_v55 = vor.u32 %v460_v44, %v457_v43 }
  0x85   : > { %775 = vrot.lane.b32.xlu0 %v700_v37, %s2081_s25  ;;  %v1636_v37 = vld [vmem:[%s2242_s8 + $0x68] sm:$0xf]  ;;  %v394_v57 = vld [vmem:[%s2242_s8 + $0x3c] sm:$0x1]  ;;  %v502_v59 = vrot.slane %v500_v48, 5  ;;  %v485_v60 = vrot.slane %v483_v49, 4 }
  0x86   : > { %v488_v61 = vrot.slane %v486_v50, 5  ;;  %v1638_v0 = vld [vmem:[%s2242_s8 + $0x78] sm:$0xf]  ;;  %v480_v1 = vrot.slane %v478_v52, 5  ;;  %v317_v2 = vld [vmem:[%s2242_s8 + $0x28] sm:$0xf] }
  0x87   : > { %v506_v6 = vshll.u32 %v394_v57, 16  ;;  %326 = vst.msk [vmem:[#allocation2 + $0x14] sm:$0xf] %vm320_vm3, %v317_v2  ;;  %v316_v7 = vld [vmem:[%s2242_s8 + $0x20] sm:$0xf]  ;;  %vm1126_vm4 = vcmask 1041408  }
  0x88   : > { %823 = vrot.lane.b32.xlu1 %v1673_v40, %s2082_s26  ;;  %v471_v40 = vrot.slane %v469_v22, 4  ;;  %v489_v9 = vor.u32 %v488_v61, %v485_v60  ;;  %325 = vst.msk [vmem:[#allocation2 + $0x10] sm:$0xf] %vm320_vm3, %v316_v7  ;;  %v319_v11 = vld [vmem:[%s2242_s8 + $0x38] sm:$0xf]  ;;  %vm370_vm5 = vcmask 60448  }
  0x89   : > { %821 = vrot.lane.b32.xlu0 %v1672_v41, %s2082_s26  ;;  %v474_v41 = vrot.slane %v472_v23, 5  ;;  %v318_v12 = vld [vmem:[%s2242_s8 + $0x30] sm:$0xf]  ;;  %328 = vst.msk [vmem:[#allocation2 + $0x1c] sm:$0xf] %vm320_vm3, %v319_v11  ;;  %v508_v16 = vrot.slane %v506_v6, 5 }
  0x8a   : > { %327 = vst.msk [vmem:[#allocation2 + $0x18] sm:$0xf] %vm320_vm3, %v318_v12  ;;  %v1872_v13 = vld [vmem:[#allocation6 + $0x10] ss:$0 sps:$4 sm:$0x33]   ;;  %v490_v18 = vrot.slane %v489_v9, 4 }
  0x8b   : > { %v475_v54 = vor.u32 %v474_v41, %v471_v40  ;;  %1772 = vmatprep.subr.msk.bf16.mxu0 %vm1126_vm4, %v1872_v13  ;;  %v1128_v20 = vsel %vm1126_vm4, %v1872_v13, 0  ;;  %1773 = vmatprep.subr.msk.bf16.mxu1 %vm1126_vm4, %v1872_v13  ;;  %v1666_v23 = vld [vmem:[%s2242_s8 + $0xb8] sm:$0xf]  ;;  %v1664_v24 = vld [vmem:[%s2242_s8 + $0xb0] sm:$0xf]  ;;  %vm534_vm6 = vcmask 93248  }
  0x8c   : > { %827 = vrot.lane.b32.xlu1 %v1675_v46, %s2082_s26  ;;  %v388_v46 = vld [vmem:[%s2242_s8 + $0x24] sm:$0x1]  ;;  %1757 = vmatpush3.bf16.msra.mxu0 %v1128_v20  ;;  %v1645_v25 = vld [vmem:[%s2242_s8 + $0xb8] sm:$0xf]  ;;  %v716_v28 = vshrl.u32 %v1664_v24, 16  ;;  %v719_v30 = vshll.u32 %v1664_v24, 16 }
  0x8d   : > { %825 = vrot.lane.b32.xlu0 %v1674_v47, %s2082_s26  ;;  %v497_v47 = vshrl.u32 %v393_v33, 16  ;;  %v464_v56 = vshll.u32 %v388_v46, 16  ;;  %v476_v3 = vrot.slane %v475_v54, 4  ;;  %1771 = vmatpush3.bf16.msra.mxu1 %v1128_v20  ;;  %v1644_v29 = vld [vmem:[%s2242_s8 + $0xb0] sm:$0xf]  ;;  %vm584_vm7 = vcmask 126048  }
  0x8e   : > { %v1670_v32 = vld [vmem:[%s2242_s8 + $0xc8] sm:$0xf]  ;;  %v1668_v33 = vld [vmem:[%s2242_s8 + $0xc0] sm:$0xf]  ;;  %v718_v39 = vrot.slane %v716_v28, 4  ;;  %v721_v42 = vrot.slane %v719_v30, 5 }
  0x8f   : > { %v499_v58 = vrot.slane %v497_v47, 4  ;;  %v466_v5 = vrot.slane %v464_v56, 5  ;;  %v481_v14 = vsel %vm2272_vm2, %v476_v3, %v480_v1  ;;  %v1647_v34 = vld [vmem:[%s2242_s8 + $0xc8] sm:$0xf]  ;;  %v1646_v35 = vld [vmem:[%s2242_s8 + $0xc0] sm:$0xf] }
  0x90   : > { %873 = vrot.lane.b32.xlu1 %v1681_v62, %s2083_s11  ;;  %v392_v62 = vld [vmem:[%s2242_s8 + $0x34] sm:$0x1]  ;;  %v758_v40 = vshrl.u32 %v1670_v32, 16  ;;  %v761_v43 = vshll.u32 %v1670_v32, 16  ;;  %v744_v44 = vshrl.u32 %v1668_v33, 16  ;;  %v747_v45 = vshll.u32 %v1668_v33, 16 }
  0x91   : > { %871 = vrot.lane.b32.xlu0 %v1680_v63, %s2083_s11  ;;  %v1639_v63 = vld [vmem:[%s2242_s8 + $0x80] sm:$0xf]  ;;  %v503_v8 = vor.u32 %v502_v59, %v499_v58  ;;  %v1665_v41 = vld [vmem:[%s2242_s8 + $0xb4] sm:$0x1]  ;;  %v1652_v47 = vld [vmem:[%s2242_s8 + $0xf8] sm:$0xf]  ;;  %v722_v52 = vor.u32 %v721_v42, %v718_v39 }
  0x92   : > { %v1653_v46 = vld [vmem:[%s2242_s8 + $0x100] sm:$0xf]  ;;  %v725_v50 = vshll.u32 %v1665_v41, 16  ;;  %v763_v54 = vrot.slane %v761_v43, 5  ;;  %v749_v56 = vrot.slane %v747_v45, 5  ;;  %vm634_vm8 = vcmask 158848  }
  0x93   : > { %v504_v17 = vrot.slane %v503_v8, 4  ;;  %v1669_v57 = vld [vmem:[%s2242_s8 + $0xc4] sm:$0x1]  ;;  %v1698_v12 = vld [vmem:[%s2242_s8 + $0x30] sm:$0xf]  ;;  %vm795_vm9 = vcmask 191648  }
  0x94   : > { %877 = vrot.lane.b32.xlu1 %v1683_v4, %s2083_s11  ;;  %v462_v4 = vrot.slane %v461_v55, 4  ;;  %v746_v55 = vrot.slane %v744_v44, 4  ;;  %v727_v60 = vrot.slane %v725_v50, 5  ;;  %v753_v3 = vshll.u32 %v1669_v57, 16  ;;  %v1696_v13 = vld [vmem:[%s2242_s8 + $0x28] sm:$0xf] }
  0x95   : > { %875 = vrot.lane.b32.xlu0 %v1682_v10, %s2083_s11  ;;  %v492_v10 = vshll.u32 %v392_v62, 16  ;;  %v509_v21 = vsel %vm2272_vm2, %v504_v17, %v508_v16  ;;  %v1655_v62 = vld [vmem:[%s2242_s8 + $0x110] sm:$0xf]  ;;  %v977_v16 = vshrl.u32 %v1696_v13, 16  ;;  %v980_v17 = vshll.u32 %v1696_v13, 16  ;;  %s2085_s14 = smov 120  }
  0x96   : > { %v467_v15 = vsel %vm2272_vm2, %v462_v4, %v466_v5  ;;  %v750_v2 = vor.u32 %v749_v56, %v746_v55  ;;  %v755_v9 = vrot.slane %v753_v3, 5  ;;  %v1702_v20 = vld [vmem:[%s2242_s8 + $0x40] sm:$0xf]  ;;  %v1699_v24 = vld [vmem:[%s2242_s8 + $0x34] sm:$0x1]  ;;  %vm845_vm10 = vcmask 224448  }
  0x97   : > { %v494_v19 = vrot.slane %v492_v10, 5  ;;  %v982_v28 = vrot.slane %v980_v17, 5  ;;  %v1019_v30 = vshrl.u32 %v1702_v20, 16  ;;  %v1022_v32 = vshll.u32 %v1702_v20, 16  ;;  %v1703_v41 = vld [vmem:[%s2242_s8 + $0x44] sm:$0x1] }
  0x98   : > { %1034 = vrot.lane.b32.xlu1 %v947_v26, %s2084_s12  ;;  %v730_v26 = vshrl.u32 %v1666_v23, 16  ;;  %v751_v8 = vrot.slane %v750_v2, 4  ;;  %v1028_v50 = vshll.u32 %v1703_v41, 16  ;;  %vm895_vm11 = vcmask 257248   ;;  %s2553_s9 = scalar_lea.vmem [#allocation8], %s1628_s15  ;;  %s1629_s10 = sshll.u32 %s2238_s23, 1 }
  0x99   : > { %1032 = vrot.lane.b32.xlu0 %v933_v27, %s2084_s12  ;;  %v495_v22 = vsel %vm2272_vm2, %v490_v18, %v494_v19  ;;  %v733_v27 = vshll.u32 %v1666_v23, 16  ;;  %v1677_v18 = vld [vmem:[%s2242_s8 + $0x30] sm:$0xf]  ;;  %v1676_v19 = vld [vmem:[%s2242_s8 + $0x28] sm:$0xf]  ;;  %v1021_v42 = vrot.slane %v1019_v30, 4 }
  0x9a   : > { %v756_v11 = vsel %vm2272_vm2, %v751_v8, %v755_v9  ;;  %v1678_v23 = vld [vmem:[%s2242_s8 + $0x38] sm:$0xf]  ;;  %v1024_v43 = vrot.slane %v1022_v32, 5  ;;  %vm1056_vm12 = vcmask 290048   ;;  %vm1113_vm13 = vcmask 293888   ;;  %s1743_s16 = sshll.u32 %s2142_s22, 9 }
  0x9b   : > { %v735_v38 = vrot.slane %v733_v27, 5  ;;  %v979_v27 = vrot.slane %v977_v16, 4  ;;  %vm1236_vm14 = vcmask 64512   ;;  %vm1323_vm15 = vcmask 130112   ;;  %p2814_p2 = scmp.ne.s32.totalorder %s2802_s30, 0 }
  0x9c   : > { %356 = vrot.lane.b32.xlu1 %v1637_v36, %s2077_s28  ;;  %v1667_v36 = vld [vmem:[%s2242_s8 + $0xbc] sm:$0x1]  ;;  %vm1227_vm0 = vcmask 60416  }
  0x9d   : > { %354 = vrot.lane.b32.xlu0 %v1636_v37, %s2077_s28  ;;  %v732_v37 = vrot.slane %v730_v26, 4  ;;  %v739_v49 = vshll.u32 %v1667_v36, 16  ;;  %v1684_v36 = vld [vmem:[%s2242_s8 + $0x70] sm:$0xf]  ;;  %v983_v39 = vor.u32 %v982_v28, %v979_v27 }
  0x9f   : > { %v736_v48 = vor.u32 %v735_v38, %v732_v37  ;;  %v741_v59 = vrot.slane %v739_v49, 5  ;;  %v1000_v38 = vshll.u32 %v1699_v24, 16 }
  0xa0   : > { %1038 = vrot.lane.b32.xlu1 %v975_v51, %s2084_s12  ;;  %v760_v51 = vrot.slane %v758_v40, 4 }
  0xa1   : > { %1036 = vrot.lane.b32.xlu0 %v961_v53, %s2084_s12  ;;  %v1671_v53 = vld [vmem:[%s2242_s8 + $0xcc] sm:$0x1]  ;;  %v737_v58 = vrot.slane %v736_v48, 4  ;;  %v1002_v48 = vrot.slane %v1000_v38, 5 }
  0xa2   : > { %v767_v61 = vshll.u32 %v1671_v53, 16  ;;  %v764_v1 = vor.u32 %v763_v54, %v760_v51  ;;  %v1687_v51 = vld [vmem:[%s2242_s8 + $0x88] sm:$0xf]  ;;  %v984_v53 = vrot.slane %v983_v39, 4  ;;  %v1025_v54 = vor.u32 %v1024_v43, %v1021_v42 }
  0xa3   : > { %v742_v4 = vsel %vm2272_vm2, %v737_v58, %v741_v59 }
  0xa4   : > { %360 = vrot.lane.b32.xlu1 %v1639_v63, %s2077_s28  ;;  %v1654_v63 = vld [vmem:[%s2242_s8 + $0x108] sm:$0xf]  ;;  %v769_v5 = vrot.slane %v767_v61, 5  ;;  %v765_v7 = vrot.slane %v764_v1, 4 }
  0xa5   : > { %358 = vrot.lane.b32.xlu0 %v1638_v0, %s2077_s28  ;;  %v723_v0 = vrot.slane %v722_v52, 4  ;;  %v1686_v52 = vld [vmem:[%s2242_s8 + $0x80] sm:$0xf] }
  0xa6   : > { %v770_v10 = vsel %vm2272_vm2, %v765_v7, %v769_v5 }
  0xa7   : > { %v728_v6 = vsel %vm2272_vm2, %v723_v0, %v727_v60  ;;  %v1030_v60 = vrot.slane %v1028_v50, 5 }
  0xa8   : > { %520 = vrot.lane.b32.xlu1 %v481_v14, %s2079_s7  ;;  %v991_v14 = vshrl.u32 %v1698_v12, 16 }
  0xa9   : > { %518 = vrot.lane.b32.xlu0 %v467_v15, %s2079_s7  ;;  %v994_v15 = vshll.u32 %v1698_v12, 16 }
  0xab   : > { %v996_v26 = vrot.slane %v994_v15, 5 }
  0xac   : > { %524 = vrot.lane.b32.xlu1 %v509_v21, %s2079_s7  ;;  %v1700_v21 = vld [vmem:[%s2242_s8 + $0x38] sm:$0xf] }
  0xad   : > { %522 = vrot.lane.b32.xlu0 %v495_v22, %s2079_s7  ;;  %v1679_v22 = vld [vmem:[%s2242_s8 + $0x40] sm:$0xf]  ;;  %v1005_v33 = vshrl.u32 %v1700_v21, 16  ;;  %s1373_s7 = scalar_lea.sflag [#allocation5], %s2238_s23 }
  0xaf   : > { %v1007_v44 = vrot.slane %v1005_v33, 4 }
  0xb0   : > { %570 = vrot.lane.b32.xlu1 %v1645_v25, %s2078_s29  ;;  %v993_v25 = vrot.slane %v991_v14, 4 }
  0xb1   : > { %568 = vrot.lane.b32.xlu0 %v1644_v29, %s2078_s29  ;;  %v1697_v29 = vld [vmem:[%s2242_s8 + $0x2c] sm:$0x1] }
  0xb2   : > { %v997_v37 = vor.u32 %v996_v26, %v993_v25  ;;  %v986_v40 = vshll.u32 %v1697_v29, 16 }
  0xb4   : > { %574 = vrot.lane.b32.xlu1 %v1647_v34, %s2078_s29  ;;  %v1008_v34 = vshll.u32 %v1700_v21, 16  ;;  %v988_v49 = vrot.slane %v986_v40, 5 }
  0xb5   : > { %572 = vrot.lane.b32.xlu0 %v1646_v35, %s2078_s29  ;;  %v1685_v35 = vld [vmem:[%s2242_s8 + $0x78] sm:$0xf]  ;;  %s1401_s29 = sshll.u32 %s2553_s9, 4  ;;  %s2620_s29 = int_to_ptr.vmem [resolvable:$true] %s1401_s29 }
  0xb6   : > { %v1010_v45 = vrot.slane %v1008_v34, 5  ;;  %v989_v61 = vsel %vm2272_vm2, %v984_v53, %v988_v49 }
  0xb8   : > { %620 = vrot.lane.b32.xlu1 %v1653_v46, %s2080_s13  ;;  %v1701_v46 = vld [vmem:[%s2242_s8 + $0x3c] sm:$0x1]  ;;  %v1011_v55 = vor.u32 %v1010_v45, %v1007_v44  ;;  %s2617_s8 = scalar_lea.hbm %s2788_s2, %s1743_s16 }
  0xb9   : > { %618 = vrot.lane.b32.xlu0 %v1652_v47, %s2080_s13  ;;  %v998_v47 = vrot.slane %v997_v37, 4  ;;  %v1014_v56 = vshll.u32 %v1701_v46, 16 }
  0xbb   : > { %v1003_v59 = vsel %vm2272_vm2, %v998_v47, %v1002_v48  ;;  %v1016_v0 = vrot.slane %v1014_v56, 5 }
  0xbc   : > { %624 = vrot.lane.b32.xlu1 %v1655_v62, %s2080_s13  ;;  %v1026_v62 = vrot.slane %v1025_v54, 4 }
  0xbd   : > { %622 = vrot.lane.b32.xlu0 %v1654_v63, %s2080_s13  ;;  %v1012_v63 = vrot.slane %v1011_v55, 4  ;;  %s1904_s13 = scalar_lea.vmem %s2620_s29, 512 }
  0xbe   : > { %v1031_v3 = vsel %vm2272_vm2, %v1026_v62, %v1030_v60  ;;  %p1905_p13 = scmp.ne.s32.totalorder %s2620_s29, %s1904_s13 }
  0xc0   : > { %781 = vrot.lane.b32.xlu1 %v742_v4, %s2081_s25  ;;  %v1017_v4 = vsel %vm2272_vm2, %v1012_v63, %v1016_v0  ;;  %p1906_p3 = pnand %p1905_p13, %p2814_p2 }
  0xc1   : > { %779 = vrot.lane.b32.xlu0 %v728_v6, %s2081_s25 }
  0xc2   : > { %p1907_p7 = pneg %p1906_p3 }
  0xc4   : > { %785 = vrot.lane.b32.xlu1 %v770_v10, %s2081_s25 }
  0xc5   : > { %783 = vrot.lane.b32.xlu0 %v756_v11, %s2081_s25  ;;  %s2086_s25 = smov [#allocation8]  }
  0xc8   : > { %831 = vrot.lane.b32.xlu1 %v1677_v18, %s2082_s26 }
  0xc9   : > { %829 = vrot.lane.b32.xlu0 %v1676_v19, %s2082_s26 }
  0xcc   : > { %835 = vrot.lane.b32.xlu1 %v1679_v22, %s2082_s26 }
  0xcd   : > { %833 = vrot.lane.b32.xlu0 %v1678_v23, %s2082_s26  ;;  %s1908_s26 = sshll.u32 %s2086_s25, 4  ;;  %s1909_s26 = int_to_ptr.vmem [resolvable:$false] %s1908_s26 }
  0xce   : > { %p1911_p8 = scmp.lt.s32.totalorder %s2620_s29, %s1909_s26 }
  0xd0   : > { %881 = vrot.lane.b32.xlu1 %v1685_v35, %s2083_s11 }
  0xd1   : > { %879 = vrot.lane.b32.xlu0 %v1684_v36, %s2083_s11 }
  0xd2   : > { %v351_v57 = vpop.permute.xlu1 %350  ;;  %v347_v58 = vpop.permute.xlu0 %346 }
  0xd3   : > { %373 = vst.msk [vmem:[#allocation2 + $0x8] sm:$0xf] %vm370_vm5, %v351_v57  ;;  %371 = vst.msk [vmem:[#allocation2] sm:$0xf] %vm370_vm5, %v347_v58 }
  0xd4   : > { %885 = vrot.lane.b32.xlu1 %v1687_v51, %s2083_s11 }
  0xd5   : > { %883 = vrot.lane.b32.xlu0 %v1686_v52, %s2083_s11  ;;  %s1910_s11 = scalar_lea.vmem %s1909_s26, 1024 }
  0xd6   : > { %v353_v1 = vpop.permute.xlu1 %352  ;;  %v349_v2 = vpop.permute.xlu0 %348  ;;  %p1912_p9 = scmp.lt.s32.totalorder %s1910_s11, %s1904_s13 }
  0xd7   : > { %374 = vst.msk [vmem:[#allocation2 + $0xc] sm:$0xf] %vm370_vm5, %v353_v1  ;;  %372 = vst.msk [vmem:[#allocation2 + $0x4] sm:$0xf] %vm370_vm5, %v349_v2 }
  0xd8   : > { %1042 = vrot.lane.b32.xlu1 %v1003_v59, %s2084_s12  ;;  %p1913_p10 = por %p1912_p9, %p1911_p8 }
  0xd9   : > { %1040 = vrot.lane.b32.xlu0 %v989_v61, %s2084_s12 }
  0xda   : > { %v563_v5 = vpop.permute.xlu1 %562  ;;  %v561_v6 = vpop.permute.xlu0 %560  ;;  %p1914_p1 = pnand %p1913_p10, %p1907_p7 }
  0xdc   : > { %1046 = vrot.lane.b32.xlu1 %v1031_v3, %s2084_s12 }
  0xdd   : > { %1044 = vrot.lane.b32.xlu0 %v1017_v4, %s2084_s12 }
  0xde   : > { %v513_v7 = vpop.permute.xlu1 %512 }
  0xdf   : > { %v511_v8 = vpop.permute.xlu0 %510  ;;  %536 = vst.msk [vmem:[#allocation2 + $0x4] sm:$0xf] %vm534_vm6, %v513_v7 }
  0xe0   : > { %535 = vst.msk [vmem:[#allocation2] sm:$0xf] %vm534_vm6, %v511_v8 }
  0xe1   : > { %585 = vst.msk [vmem:[#allocation2] sm:$0xf] %vm584_vm7, %v561_v6  ;;  %586 = vst.msk [vmem:[#allocation2 + $0x4] sm:$0xf] %vm584_vm7, %v563_v5 }
  0xe2   : > { %v517_v31 = vpop.permute.xlu1 %516 }
  0xe3   : > { %v515_v9 = vpop.permute.xlu0 %514  ;;  %538 = vst.msk [vmem:[#allocation2 + $0xc] sm:$0xf] %vm534_vm6, %v517_v31 }
  0xe4   : > { %537 = vst.msk [vmem:[#allocation2 + $0x8] sm:$0xf] %vm534_vm6, %v515_v9 }
  0xe6   : > { %v567_v10 = vpop.permute.xlu1 %566 }
  0xe7   : > { %v565_v11 = vpop.permute.xlu0 %564  ;;  %588 = vst.msk [vmem:[#allocation2 + $0xc] sm:$0xf] %vm584_vm7, %v567_v10 }
  0xe8   : > { %587 = vst.msk [vmem:[#allocation2 + $0x8] sm:$0xf] %vm584_vm7, %v565_v11 }
  0xea   : > { %v613_v12 = vpop.permute.xlu1 %612 }
  0xeb   : > { %v611_v13 = vpop.permute.xlu0 %610  ;;  %636 = vst.msk [vmem:[#allocation2 + $0x4] sm:$0xf] %vm634_vm8, %v613_v12 }
  0xec   : > { %635 = vst.msk [vmem:[#allocation2] sm:$0xf] %vm634_vm8, %v611_v13 }
  0xee   : > { %v617_v14 = vpop.permute.xlu1 %616 }
  0xef   : > { %v615_v15 = vpop.permute.xlu0 %614  ;;  %638 = vst.msk [vmem:[#allocation2 + $0xc] sm:$0xf] %vm634_vm8, %v617_v14 }
  0xf0   : > { %637 = vst.msk [vmem:[#allocation2 + $0x8] sm:$0xf] %vm634_vm8, %v615_v15 }
  0xf2   : > { %v774_v16 = vpop.permute.xlu1 %773 }
  0xf3   : > { %v772_v17 = vpop.permute.xlu0 %771  ;;  %797 = vst.msk [vmem:[#allocation2 + $0x4] sm:$0xf] %vm795_vm9, %v774_v16 }
  0xf4   : > { %796 = vst.msk [vmem:[#allocation2] sm:$0xf] %vm795_vm9, %v772_v17 }
  0xf6   : > { %v778_v18 = vpop.permute.xlu1 %777 }
  0xf7   : > { %v776_v19 = vpop.permute.xlu0 %775  ;;  %799 = vst.msk [vmem:[#allocation2 + $0xc] sm:$0xf] %vm795_vm9, %v778_v18 }
  0xf8   : > { %798 = vst.msk [vmem:[#allocation2 + $0x8] sm:$0xf] %vm795_vm9, %v776_v19 }
  0xfa   : > { %v824_v20 = vpop.permute.xlu1 %823 }
  0xfb   : > { %v822_v21 = vpop.permute.xlu0 %821  ;;  %847 = vst.msk [vmem:[#allocation2 + $0x4] sm:$0xf] %vm845_vm10, %v824_v20 }
  0xfc   : > { %846 = vst.msk [vmem:[#allocation2] sm:$0xf] %vm845_vm10, %v822_v21 }
  0xfe   : > { %v828_v22 = vpop.permute.xlu1 %827 }
  0xff   : > { %v826_v23 = vpop.permute.xlu0 %825  ;;  %849 = vst.msk [vmem:[#allocation2 + $0xc] sm:$0xf] %vm845_vm10, %v828_v22 }
 0x100   : > { %848 = vst.msk [vmem:[#allocation2 + $0x8] sm:$0xf] %vm845_vm10, %v826_v23 }
 0x102   : > { %v874_v24 = vpop.permute.xlu1 %873 }
 0x103   : > { %v872_v25 = vpop.permute.xlu0 %871  ;;  %897 = vst.msk [vmem:[#allocation2 + $0x4] sm:$0xf] %vm895_vm11, %v874_v24 }
 0x104   : > { %896 = vst.msk [vmem:[#allocation2] sm:$0xf] %vm895_vm11, %v872_v25 }
 0x106   : > { %v878_v26 = vpop.permute.xlu1 %877 }
 0x107   : > { %v876_v27 = vpop.permute.xlu0 %875  ;;  %899 = vst.msk [vmem:[#allocation2 + $0xc] sm:$0xf] %vm895_vm11, %v878_v26 }
 0x108   : > { %898 = vst.msk [vmem:[#allocation2 + $0x8] sm:$0xf] %vm895_vm11, %v876_v27 }
 0x10a   : > { %v1035_v28 = vpop.permute.xlu1 %1034 }
 0x10b   : > { %v1033_v29 = vpop.permute.xlu0 %1032  ;;  %1058 = vst.msk [vmem:[#allocation2 + $0x4] sm:$0xf] %vm1056_vm12, %v1035_v28 }
 0x10c   : > { %1057 = vst.msk [vmem:[#allocation2] sm:$0xf] %vm1056_vm12, %v1033_v29 }
 0x10e   : > { %v357_v30 = vpop.permute.xlu1 %356 }
 0x10f   : > { %v355_v32 = vpop.permute.xlu0 %354  ;;  %376 = vst.msk [vmem:[#allocation2 + $0x14] sm:$0xf] %vm370_vm5, %v357_v30 }
 0x110   : > { %375 = vst.msk [vmem:[#allocation2 + $0x10] sm:$0xf] %vm370_vm5, %v355_v32 }
 0x112   : > { %v1039_v33 = vpop.permute.xlu1 %1038 }
 0x113   : > { %v1037_v34 = vpop.permute.xlu0 %1036  ;;  %v1871_v35 = vld [vmem:[#allocation2] sm:$0xff]   ;;  %1060 = vst.msk [vmem:[#allocation2 + $0xc] sm:$0xf] %vm1056_vm12, %v1039_v33 }
 0x114   : > { %1059 = vst.msk [vmem:[#allocation2 + $0x8] sm:$0xf] %vm1056_vm12, %v1037_v34  ;;  %1758 = vmatprep.mubr.msk.bf16.mxu0 %vm1113_vm13, %v1871_v35 }
 0x116   : > { %v361_v36 = vpop.permute.xlu1 %360 }
 0x117   : > { %v359_v37 = vpop.permute.xlu0 %358  ;;  %378 = vst.msk [vmem:[#allocation2 + $0x1c] sm:$0xf] %vm370_vm5, %v361_v36 }
 0x118   : > { %377 = vst.msk [vmem:[#allocation2 + $0x18] sm:$0xf] %vm370_vm5, %v359_v37 }
 0x11a   : > { %v521_v38 = vpop.permute.xlu1 %520 }
 0x11b   : > { %v519_v39 = vpop.permute.xlu0 %518  ;;  %v1873_v40 = vld [vmem:[#allocation2 + $0x8] sm:$0xff]   ;;  %540 = vst.msk [vmem:[#allocation2 + $0x14] sm:$0xf] %vm534_vm6, %v521_v38 }
 0x11c   : > { %539 = vst.msk [vmem:[#allocation2 + $0x10] sm:$0xf] %vm534_vm6, %v519_v39  ;;  %1759 = vmatmul.mubr.msk.bf16.vlgmr.msra.gmra.mrb[0].mxu0 %vm1113_vm13, %v1873_v40 }
 0x11e   : > { %v525_v41 = vpop.permute.xlu1 %524 }
 0x11f   : > { %v523_v42 = vpop.permute.xlu0 %522  ;;  %542 = vst.msk [vmem:[#allocation2 + $0x1c] sm:$0xf] %vm534_vm6, %v525_v41 }
 0x120   : > { %541 = vst.msk [vmem:[#allocation2 + $0x18] sm:$0xf] %vm534_vm6, %v523_v42 }
 0x122   : > { %v571_v43 = vpop.permute.xlu1 %570 }
 0x123   : > { %v569_v44 = vpop.permute.xlu0 %568  ;;  %590 = vst.msk [vmem:[#allocation2 + $0x14] sm:$0xf] %vm584_vm7, %v571_v43 }
 0x124   : > { %589 = vst.msk [vmem:[#allocation2 + $0x10] sm:$0xf] %vm584_vm7, %v569_v44 }
 0x126   : > { %v575_v45 = vpop.permute.xlu1 %574 }
 0x127   : > { %v573_v46 = vpop.permute.xlu0 %572  ;;  %592 = vst.msk [vmem:[#allocation2 + $0x1c] sm:$0xf] %vm584_vm7, %v575_v45 }
 0x128   : > { %591 = vst.msk [vmem:[#allocation2 + $0x18] sm:$0xf] %vm584_vm7, %v573_v46 }
 0x12a   : > { %v621_v47 = vpop.permute.xlu1 %620 }
 0x12b   : > { %v619_v48 = vpop.permute.xlu0 %618  ;;  %640 = vst.msk [vmem:[#allocation2 + $0x14] sm:$0xf] %vm634_vm8, %v621_v47 }
 0x12c   : > { %639 = vst.msk [vmem:[#allocation2 + $0x10] sm:$0xf] %vm634_vm8, %v619_v48 }
 0x12e   : > { %v625_v49 = vpop.permute.xlu1 %624 }
 0x12f   : > { %v623_v50 = vpop.permute.xlu0 %622  ;;  %642 = vst.msk [vmem:[#allocation2 + $0x1c] sm:$0xf] %vm634_vm8, %v625_v49 }
 0x130   : > { %641 = vst.msk [vmem:[#allocation2 + $0x18] sm:$0xf] %vm634_vm8, %v623_v50 }
 0x132   : > { %v782_v51 = vpop.permute.xlu1 %781 }
 0x133   : > { %v780_v52 = vpop.permute.xlu0 %779  ;;  %801 = vst.msk [vmem:[#allocation2 + $0x14] sm:$0xf] %vm795_vm9, %v782_v51 }
 0x134   : > { %800 = vst.msk [vmem:[#allocation2 + $0x10] sm:$0xf] %vm795_vm9, %v780_v52 }
 0x136   : > { %v786_v53 = vpop.permute.xlu1 %785 }
 0x137   : > { %v784_v54 = vpop.permute.xlu0 %783  ;;  %803 = vst.msk [vmem:[#allocation2 + $0x1c] sm:$0xf] %vm795_vm9, %v786_v53 }
 0x138   : > { %802 = vst.msk [vmem:[#allocation2 + $0x18] sm:$0xf] %vm795_vm9, %v784_v54 }
 0x13a   : > { %v832_v55 = vpop.permute.xlu1 %831 }
 0x13b   : > { %v830_v56 = vpop.permute.xlu0 %829  ;;  %851 = vst.msk [vmem:[#allocation2 + $0x14] sm:$0xf] %vm845_vm10, %v832_v55 }
 0x13c   : > { %850 = vst.msk [vmem:[#allocation2 + $0x10] sm:$0xf] %vm845_vm10, %v830_v56 }
 0x13e   : > { %v836_v57 = vpop.permute.xlu1 %835 }
 0x13f   : > { %v834_v58 = vpop.permute.xlu0 %833  ;;  %853 = vst.msk [vmem:[#allocation2 + $0x1c] sm:$0xf] %vm845_vm10, %v836_v57 }
 0x140   : > { %852 = vst.msk [vmem:[#allocation2 + $0x18] sm:$0xf] %vm845_vm10, %v834_v58 }
 0x142   : > { %v882_v59 = vpop.permute.xlu1 %881 }
 0x143   : > { %v880_v60 = vpop.permute.xlu0 %879  ;;  %901 = vst.msk [vmem:[#allocation2 + $0x14] sm:$0xf] %vm895_vm11, %v882_v59 }
 0x144   : > { %900 = vst.msk [vmem:[#allocation2 + $0x10] sm:$0xf] %vm895_vm11, %v880_v60 }
 0x146   : > { %v886_v61 = vpop.permute.xlu1 %885 }
 0x147   : > { %v884_v62 = vpop.permute.xlu0 %883  ;;  %903 = vst.msk [vmem:[#allocation2 + $0x1c] sm:$0xf] %vm895_vm11, %v886_v61 }
 0x148   : > { %902 = vst.msk [vmem:[#allocation2 + $0x18] sm:$0xf] %vm895_vm11, %v884_v62 }
 0x14a   : > { %v1043_v63 = vpop.permute.xlu1 %1042 }
 0x14b   : > { %v1041_v0 = vpop.permute.xlu0 %1040  ;;  %1062 = vst.msk [vmem:[#allocation2 + $0x14] sm:$0xf] %vm1056_vm12, %v1043_v63 }
 0x14c   : > { %1061 = vst.msk [vmem:[#allocation2 + $0x10] sm:$0xf] %vm1056_vm12, %v1041_v0 }
 0x14e   : > { %v1047_v1 = vpop.permute.xlu1 %1046 }
 0x14f   : > { %v1045_v2 = vpop.permute.xlu0 %1044  ;;  %1064 = vst.msk [vmem:[#allocation2 + $0x1c] sm:$0xf] %vm1056_vm12, %v1047_v1 }
 0x150   : > { %1063 = vst.msk [vmem:[#allocation2 + $0x18] sm:$0xf] %vm1056_vm12, %v1045_v2 }
 0x153   : > { %v1874_v3 = vld [vmem:[#allocation2 + $0x10] sm:$0xff]  }
 0x154   : > { %1762 = vmatprep.mubr.msk.bf16.mxu1 %vm1113_vm13, %v1874_v3 }
 0x157   : > { %v1875_v4 = vld [vmem:[#allocation2 + $0x18] sm:$0xff]  }
 0x158   : > { %1763 = vmatmul.mubr.msk.bf16.vlgmr.msra.gmra.mrb[0].mxu1 %vm1113_vm13, %v1875_v4 }
 0x1ef   : > { %v1760_v5 = vpop.f32.mrb[0].mxu0 }
 0x1f0   : > { %v1164_v6 = vpop.f32.mrb[1].mxu0  ;;  %v1737_v7 = vpack.c.bf16 %v1760_v5, %v1760_v5  ;;  %v1240_v10 = vsel %vm1236_vm14, %v1760_v5, 0.0  ;;  %v1260_v11 = vmul.f32 %v1760_v5, %v1760_v5  ;;  %v1327_v12 = vsel %vm1323_vm15, %v1760_v5, 0.0 }
 0x1f1   : > { %v1258_v8 = vmul.f32 %v1164_v6, %v1164_v6  ;;  %v1761_v31 = vpop.f32.mrb[2].mxu0  ;;  %v2546_v9 = vpack.c.bf16 %v1164_v6, %v1164_v6  ;;  %v1237_v15 = vsel %vm1236_vm14, %v1164_v6, 0.0  ;;  %v1324_v21 = vsel %vm1323_vm15, %v1164_v6, 0.0 }
 0x1f2   : > { %1295 = vrot.lane.b32.xlu0 %v1737_v7, %s2085_s14  ;;  %1230 = vst.msk [vmem:[%s2553_s9 + $0x8] sm:$0xf] %vm1227_vm0, %v1737_v7  ;;  %v1167_v13 = vpop.f32.mrb[3].mxu0  ;;  %v1261_v18 = vmul.f32 %v1761_v31, %v1761_v31  ;;  %v1269_v30 = vsel %vm1236_vm14, %v1260_v11, 0.0  ;;  %v1348_v32 = vsel %vm1323_vm15, %v1260_v11, 0.0  ;;  %v1242_v33 = vsel %vm1236_vm14, %v1761_v31, 0.0 }
 0x1f3   : > { %v1736_v14 = vpack.c.bf16 %v1167_v13, %v1167_v13  ;;  %v1238_v16 = vsel %vm1236_vm14, %v1167_v13, 0.0  ;;  %v1259_v17 = vmul.f32 %v1167_v13, %v1167_v13  ;;  %1228 = vst.msk [vmem:[%s2553_s9] sm:$0xf] %vm1227_vm0, %v2546_v9  ;;  %v1266_v20 = vsel %vm1236_vm14, %v1258_v8, 0.0 }
 0x1f4   : > { %v1239_v19 = vadd.f32 %v1238_v16, %v1237_v15  ;;  %v1325_v23 = vsel %vm1323_vm15, %v1167_v13, 0.0  ;;  %v1345_v24 = vsel %vm1323_vm15, %v1258_v8, 0.0  ;;  %v1738_v34 = vpack.c.bf16 %v1761_v31, %v1761_v31 }
 0x1f5   : > { %1229 = vst.msk [vmem:[%s2553_s9 + $0x4] sm:$0xf] %vm1227_vm0, %v1736_v14  ;;  %v1267_v22 = vsel %vm1236_vm14, %v1259_v17, 0.0  ;;  %v1346_v25 = vsel %vm1323_vm15, %v1259_v17, 0.0  ;;  %v1326_v28 = vadd.f32 %v1325_v23, %v1324_v21  ;;  %v1271_v39 = vsel %vm1236_vm14, %v1261_v18, 0.0 }
 0x1f6   : > { %v1241_v26 = vadd.f32 %v1240_v10, %v1239_v19  ;;  %v1268_v27 = vadd.f32 %v1267_v22, %v1266_v20  ;;  %v1347_v29 = vadd.f32 %v1346_v25, %v1345_v24  ;;  %v1329_v40 = vsel %vm1323_vm15, %v1761_v31, 0.0  ;;  %1297 = vrot.lane.b32.xlu1 %v1738_v34, %s2085_s14  ;;  %1231 = vst.msk [vmem:[%s2553_s9 + $0xc] sm:$0xf] %vm1227_vm0, %v1738_v34 }
 0x1f7   : > { %v1328_v36 = vadd.f32 %v1327_v12, %v1326_v28  ;;  %v1350_v41 = vsel %vm1323_vm15, %v1261_v18, 0.0 }
 0x1f8   : > { %v1270_v35 = vadd.f32 %v1269_v30, %v1268_v27  ;;  %v1349_v37 = vadd.f32 %v1348_v32, %v1347_v29  ;;  %v1243_v38 = vadd.f32 %v1242_v33, %v1241_v26 }
 0x1f9   : > { %v1330_v43 = vadd.f32 %v1329_v40, %v1328_v36 }
 0x1fa   : > { %v1272_v42 = vadd.f32 %v1271_v39, %v1270_v35  ;;  %v1351_v44 = vadd.f32 %v1350_v41, %v1349_v37  ;;  %1293 = vrot.lane.b32.xlu1 %v1736_v14, %s2085_s14 }
 0x22b   : > { %v1764_v45 = vpop.f32.mrb[0].mxu1 }
 0x22c   : > { %v1180_v46 = vpop.f32.mrb[1].mxu1  ;;  %v1741_v47 = vpack.c.bf16 %v1764_v45, %v1764_v45  ;;  %v1264_v57 = vmul.f32 %v1764_v45, %v1764_v45  ;;  %v1248_v0 = vsel %vm1236_vm14, %v1764_v45, 0.0  ;;  %v1335_v8 = vsel %vm1323_vm15, %v1764_v45, 0.0 }
 0x22d   : > { %v1244_v48 = vsel %vm1236_vm14, %v1180_v46, 0.0  ;;  %v1262_v49 = vmul.f32 %v1180_v46, %v1180_v46  ;;  %v1765_v50 = vpop.f32.mrb[2].mxu1  ;;  %v1739_v51 = vpack.c.bf16 %v1180_v46, %v1180_v46  ;;  %v1331_v52 = vsel %vm1323_vm15, %v1180_v46, 0.0 }
 0x22e   : > { %v1183_v53 = vpop.f32.mrb[3].mxu1  ;;  %1234 = vst.msk [vmem:[%s2553_s9 + $0x18] sm:$0xf] %vm1227_vm0, %v1741_v47  ;;  %1303 = vrot.lane.b32.xlu0 %v1741_v47, %s2085_s14  ;;  %v1245_v58 = vadd.f32 %v1244_v48, %v1243_v38  ;;  %v1332_v62 = vadd.f32 %v1331_v52, %v1330_v43  ;;  %v1742_v3 = vpack.c.bf16 %v1765_v50, %v1765_v50  ;;  %v1277_v12 = vsel %vm1236_vm14, %v1264_v57, 0.0 }
 0x22f   : > { %v1273_v54 = vsel %vm1236_vm14, %v1262_v49, 0.0  ;;  %v1352_v55 = vsel %vm1323_vm15, %v1262_v49, 0.0  ;;  %v1740_v56 = vpack.c.bf16 %v1183_v53, %v1183_v53  ;;  %1232 = vst.msk [vmem:[%s2553_s9 + $0x10] sm:$0xf] %vm1227_vm0, %v1739_v51  ;;  %v1246_v59 = vsel %vm1236_vm14, %v1183_v53, 0.0 }
 0x230   : > { %v1263_v60 = vmul.f32 %v1183_v53, %v1183_v53  ;;  %v1274_v61 = vadd.f32 %v1273_v54, %v1272_v42  ;;  %v1333_v63 = vsel %vm1323_vm15, %v1183_v53, 0.0  ;;  %v1247_v1 = vadd.f32 %v1246_v59, %v1245_v58  ;;  %1235 = vst.msk [vmem:[%s2553_s9 + $0x1c] sm:$0xf] %vm1227_vm0, %v1742_v3 }
 0x231   : > { %1233 = vst.msk [vmem:[%s2553_s9 + $0x14] sm:$0xf] %vm1227_vm0, %v1740_v56  ;;  %1301 = vrot.lane.b32.xlu1 %v1740_v56, %s2085_s14  ;;  %v1353_v2 = vadd.f32 %v1352_v55, %v1351_v44  ;;  %v1265_v4 = vmul.f32 %v1765_v50, %v1765_v50  ;;  %v1334_v6 = vadd.f32 %v1333_v63, %v1332_v62  ;;  %v1356_v13 = vsel %vm1323_vm15, %v1264_v57, 0.0 }
 0x232   : > { %1291 = vrot.lane.b32.xlu0 %v2546_v9, %s2085_s14  ;;  %v1275_v5 = vsel %vm1236_vm14, %v1263_v60, 0.0  ;;  %v1354_v7 = vsel %vm1323_vm15, %v1263_v60, 0.0  ;;  %v1249_v31 = vadd.f32 %v1248_v0, %v1247_v1  ;;  %v1250_v9 = vsel %vm1236_vm14, %v1765_v50, 0.0 }
 0x233   : > { %v1276_v10 = vadd.f32 %v1275_v5, %v1274_v61  ;;  %v1355_v11 = vadd.f32 %v1354_v7, %v1353_v2  ;;  %v1336_v14 = vadd.f32 %v1335_v8, %v1334_v6  ;;  %v1337_v15 = vsel %vm1323_vm15, %v1765_v50, 0.0 }
 0x234   : > { %v1251_v16 = vadd.f32 %v1250_v9, %v1249_v31  ;;  %v1279_v19 = vsel %vm1236_vm14, %v1265_v4, 0.0  ;;  %v1358_v20 = vsel %vm1323_vm15, %v1265_v4, 0.0 }
 0x235   : > { %1305 = vrot.lane.b32.xlu1 %v1742_v3, %s2085_s14  ;;  %v1278_v17 = vadd.f32 %v1277_v12, %v1276_v10  ;;  %v1357_v18 = vadd.f32 %v1356_v13, %v1355_v11  ;;  %v1338_v21 = vadd.f32 %v1337_v15, %v1336_v14 }
 0x236   : > { %1299 = vrot.lane.b32.xlu0 %v1739_v51, %s2085_s14  ;;  %v1252_v22 = vrot.slane %v1251_v16, 4 }
 0x237   : > { %v1280_v23 = vadd.f32 %v1279_v19, %v1278_v17  ;;  %v1359_v24 = vadd.f32 %v1358_v20, %v1357_v18  ;;  %v1339_v25 = vrot.slane %v1338_v21, 4 }
 0x238   : > { %v1253_v26 = vadd.f32 %v1252_v22, %v1251_v16 }
 0x239   : > { %v1281_v27 = vrot.slane %v1280_v23, 4  ;;  %v1360_v28 = vrot.slane %v1359_v24, 4  ;;  %v1340_v29 = vadd.f32 %v1339_v25, %v1338_v21 }
 0x23a   : > { %v1254_v30 = vrot.slane %v1253_v26, 2 }
 0x23b   : > { %v1282_v32 = vadd.f32 %v1281_v27, %v1280_v23  ;;  %v1361_v33 = vadd.f32 %v1360_v28, %v1359_v24  ;;  %v1341_v34 = vrot.slane %v1340_v29, 2 }
 0x23c   : > { %v1255_v35 = vadd.f32 %v1254_v30, %v1253_v26 }
 0x23d   : > { %v1283_v36 = vrot.slane %v1282_v32, 2  ;;  %v1362_v37 = vrot.slane %v1361_v33, 2  ;;  %v1342_v38 = vadd.f32 %v1341_v34, %v1340_v29 }
 0x23e   : > { %v1256_v40 = vrot.slane %v1255_v35, 1 }
 0x23f   : > { %v1363_v39 = vadd.f32 %v1362_v37, %v1361_v33  ;;  %v1284_v41 = vadd.f32 %v1283_v36, %v1282_v32 }
 0x240   : > { %1917 = shalt.err (!%p1914_p1)
}
 0x241   : > { %s1918_s12 = scalar_lea.hbm %s2617_s8, 512  ;;  %s1922_s17 = scalar_lea.hbm %s2788_s2, 1024 }
 0x242   : > { %p1919_p4 = scmp.ne.s32.totalorder %s2617_s8, %s1918_s12  ;;  %p1923_p11 = scmp.lt.u32.totalorder %s2617_s8, %s2788_s2 }
 0x243   : > { %p1924_p12 = scmp.lt.u32.totalorder %s1922_s17, %s1918_s12  ;;  %p1926_p3 = scmp.lt.u32.totalorder %s1918_s12, %s2617_s8 }
 0x244   : > { %p1920_p5 = pnand %p1919_p4, %p2814_p2 }
 0x245   : > { %p1925_p13 = por %p1924_p12, %p1923_p11 }
 0x246   : > { %p1921_p6 = pneg %p1920_p5 }
 0x247   : > { %p1927_p7 = por %p1926_p3, %p1925_p13 }
 0x249   : > { %p1928_p8 = pnand %p1927_p7, %p1921_p6 }
 0x24b   : > { %1931 = shalt.err (!%p1928_p8)
}
 0x24c   : > { %s2087_s13 = smov 64   ;;  %v1343_v42 = vrot.slane %v1342_v38, 1  ;;  %s1377_s11 = sand.u32 1, %s2142_s22   ;;  %v1364_v43 = vrot.slane %v1363_v39, 1  ;;  %v1285_v44 = vrot.slane %v1284_v41, 1  ;;  %vm1287_vm1 = vcmask 1040384  }
 0x24d   : > { %1790 = dma.vmem_to_hbm [thread:$0]  (%p2814_p2), %s2620_s29, 512, %s2617_s8, %s1373_s7, %s2087_s13, %s2087_s13, %s2077_s28   ;;  %vm1289_vm2 = vcmask 58368   ;;  %v1257_v47 = vadd.f32 %v1256_v40, %v1255_v35 }
 0x24e   : > { %s2798_s12 = sshll.u32 %s2142_s22, 5  ;;  %s296_s9 = scalar_lea.vmem [#allocation9], %s1629_s10  ;;  %v1344_v45 = vadd.f32 %v1343_v42, %v1342_v38  ;;  %v1365_v46 = vadd.f32 %v1364_v43, %v1363_v39  ;;  %v1286_v48 = vadd.f32 %v1285_v44, %v1284_v41 }
 0x24f   : > { %s1417_s1 = sshll.u32 %s296_s9, 4  ;;  %s2658_s8 = scalar_lea.hbm %s2789_s3, %s2798_s12  ;;  %s2660_s1 = int_to_ptr.vmem [resolvable:$true] %s1417_s1 }
 0x250   : > { %v1366_v49 = vsel %vm1287_vm1, %v1344_v45, %v1365_v46  ;;  %v1288_v50 = vsel %vm1287_vm1, %v1257_v47, %v1286_v48  ;;  %s2664_s29 = scalar_lea.sflag [#allocation10], %s1377_s11  ;;  %s1932_s7 = scalar_lea.vmem %s2660_s1, 32 }
 0x251   : > { %1368 = vrot.lane.b32.xlu0 %v1366_v49, %s2085_s14  ;;  %1290 = vst.msk [vmem:[%s296_s9] sm:$0x3] %vm1289_vm2, %v1288_v50  ;;  %p1933_p9 = scmp.ne.s32.totalorder %s2660_s1, %s1932_s7  ;;  %s2088_s26 = smov [#allocation9]  }
 0x252   : > { %s1936_s17 = sshll.u32 %s2088_s26, 4  ;;  %s1937_s17 = int_to_ptr.vmem [resolvable:$false] %s1936_s17 }
 0x253   : > { %p1934_p10 = pnand %p1933_p9, %p2814_p2  ;;  %s1938_s25 = scalar_lea.vmem %s1937_s17, 64 }
 0x254   : > { %p1939_p4 = scmp.lt.s32.totalorder %s2660_s1, %s1937_s17  ;;  %p1940_p5 = scmp.lt.s32.totalorder %s1938_s25, %s1932_s7 }
 0x255   : > { %p1935_p1 = pneg %p1934_p10 }
 0x256   : > { %p1941_p6 = por %p1940_p5, %p1939_p4 }
 0x258   : > { %p1942_p11 = pnand %p1941_p6, %p1935_p1 }
 0x25a   : > { %1945 = shalt.err (!%p1942_p11)
}
 0x25b   : > { %s1946_s14 = scalar_lea.hbm %s2658_s8, 32  ;;  %s1950_s26 = scalar_lea.hbm %s2789_s3, 64 }
 0x25c   : > { %p1947_p12 = scmp.ne.s32.totalorder %s2658_s8, %s1946_s14  ;;  %p1951_p7 = scmp.lt.u32.totalorder %s2658_s8, %s2789_s3 }
 0x25d   : > { %p1952_p8 = scmp.lt.u32.totalorder %s1950_s26, %s1946_s14  ;;  %p1954_p10 = scmp.lt.u32.totalorder %s1946_s14, %s2658_s8 }
 0x25e   : > { %p1948_p13 = pnand %p1947_p12, %p2814_p2 }
 0x25f   : > { %p1953_p9 = por %p1952_p8, %p1951_p7 }
 0x260   : > { %p1949_p3 = pneg %p1948_p13 }
 0x261   : > { %p1955_p1 = por %p1954_p10, %p1953_p9 }
 0x263   : > { %p1956_p4 = pnand %p1955_p1, %p1949_p3 }
 0x265   : > { %1959 = shalt.err (!%p1956_p4)
}
 0x266   : > { %1791 = dma.vmem_to_hbm [thread:$0]  (%p2814_p2), %s2660_s1, 32, %s2658_s8, %s2664_s29   ;;  %v1296_v51 = vpop.permute.xlu0 %1295 }
 0x267   : > { %s303_s7 = scalar_lea.vmem [#allocation11], %s1628_s15  ;;  %s2703_s8 = scalar_lea.hbm %s2790_s4, %s1743_s16 }
 0x268   : > { %1317 = vst.msk [vmem:[%s303_s7 + $0x8] sm:$0xf] %vm1227_vm0, %v1296_v51  ;;  %v1298_v52 = vpop.permute.xlu1 %1297  ;;  %s1430_s12 = sshll.u32 %s303_s7, 4  ;;  %s2089_s14 = smov [#allocation11]   ;;  %s2696_s12 = int_to_ptr.vmem [resolvable:$true] %s1430_s12 }
 0x269   : > { %1318 = vst.msk [vmem:[%s303_s7 + $0xc] sm:$0xf] %vm1227_vm0, %v1298_v52  ;;  %s1960_s25 = scalar_lea.vmem %s2696_s12, 512  ;;  %s1964_s11 = sshll.u32 %s2089_s14, 4  ;;  %s1965_s11 = int_to_ptr.vmem [resolvable:$false] %s1964_s11 }
 0x26a   : > { %p1961_p5 = scmp.ne.s32.totalorder %s2696_s12, %s1960_s25  ;;  %s1966_s9 = scalar_lea.vmem %s1965_s11, 1024 }
 0x26b   : > { %p1967_p12 = scmp.lt.s32.totalorder %s2696_s12, %s1965_s11  ;;  %p1968_p13 = scmp.lt.s32.totalorder %s1966_s9, %s1960_s25 }
 0x26c   : > { %v1294_v53 = vpop.permute.xlu1 %1293  ;;  %p1962_p6 = pnand %p1961_p5, %p2814_p2 }
 0x26d   : > { %1316 = vst.msk [vmem:[%s303_s7 + $0x4] sm:$0xf] %vm1227_vm0, %v1294_v53  ;;  %p1969_p3 = por %p1968_p13, %p1967_p12 }
 0x26e   : > { %p1963_p11 = pneg %p1962_p6 }
 0x270   : > { %p1970_p7 = pnand %p1969_p3, %p1963_p11 }
 0x2a0   : > { %v1304_v54 = vpop.permute.xlu0 %1303 }
 0x2a1   : > { %1321 = vst.msk [vmem:[%s303_s7 + $0x18] sm:$0xf] %vm1227_vm0, %v1304_v54 }
 0x2a3   : > { %v1302_v55 = vpop.permute.xlu1 %1301 }
 0x2a4   : > { %1320 = vst.msk [vmem:[%s303_s7 + $0x14] sm:$0xf] %vm1227_vm0, %v1302_v55  ;;  %v1292_v56 = vpop.permute.xlu0 %1291 }
 0x2a5   : > { %1315 = vst.msk [vmem:[%s303_s7] sm:$0xf] %vm1227_vm0, %v1292_v56 }
 0x2a7   : > { %v1306_v57 = vpop.permute.xlu1 %1305 }
 0x2a8   : > { %1322 = vst.msk [vmem:[%s303_s7 + $0x1c] sm:$0xf] %vm1227_vm0, %v1306_v57  ;;  %v1300_v58 = vpop.permute.xlu0 %1299 }
 0x2a9   : > { %1319 = vst.msk [vmem:[%s303_s7 + $0x10] sm:$0xf] %vm1227_vm0, %v1300_v58 }
 0x2aa   : > { %1973 = shalt.err (!%p1970_p7)
}
 0x2ab   : > { %s1974_s16 = scalar_lea.hbm %s2703_s8, 512  ;;  %s1978_s7 = scalar_lea.hbm %s2790_s4, 1024 }
 0x2ac   : > { %p1975_p8 = scmp.ne.s32.totalorder %s2703_s8, %s1974_s16  ;;  %p1979_p1 = scmp.lt.u32.totalorder %s2703_s8, %s2790_s4 }
 0x2ad   : > { %p1980_p4 = scmp.lt.u32.totalorder %s1978_s7, %s1974_s16  ;;  %p1982_p6 = scmp.lt.u32.totalorder %s1974_s16, %s2703_s8 }
 0x2ae   : > { %p1976_p9 = pnand %p1975_p8, %p2814_p2 }
 0x2af   : > { %p1981_p5 = por %p1980_p4, %p1979_p1 }
 0x2b0   : > { %p1977_p10 = pneg %p1976_p9 }
 0x2b1   : > { %p1983_p11 = por %p1982_p6, %p1981_p5 }
 0x2b3   : > { %p1984_p12 = pnand %p1983_p11, %p1977_p10 }
 0x2b5   : > { %1987 = shalt.err (!%p1984_p12)
}
 0x2b6   : > { %1792 = dma.vmem_to_hbm [thread:$0]  (%p2814_p2), %s2696_s12, 512, %s2703_s8, %s2664_s29, %s2087_s13, %s2087_s13, %s2077_s28  }
 0x2b7   : > { %s310_s25 = scalar_lea.vmem [#allocation12], %s1629_s10  ;;  %s2815_s11 = sshll.u32 %s2142_s22, 5 }
 0x2b8   : > { %s1446_s14 = sshll.u32 %s310_s25, 4  ;;  %s2739_s26 = scalar_lea.hbm %s2791_s5, %s2815_s11  ;;  %s2741_s14 = int_to_ptr.vmem [resolvable:$true] %s1446_s14 }
 0x2b9   : > { %s1388_s17 = scalar_lea.sflag [#allocation13], %s2238_s23  ;;  %s1988_s7 = scalar_lea.vmem %s2741_s14, 32 }
 0x2ba   : > { %p1989_p13 = scmp.ne.s32.totalorder %s2741_s14, %s1988_s7  ;;  %s2090_s22 = smov [#allocation12]  }
 0x2bb   : > { %s1992_s28 = sshll.u32 %s2090_s22, 4  ;;  %s1993_s28 = int_to_ptr.vmem [resolvable:$false] %s1992_s28 }
 0x2bc   : > { %p1990_p3 = pnand %p1989_p13, %p2814_p2  ;;  %s1994_s10 = scalar_lea.vmem %s1993_s28, 64 }
 0x2bd   : > { %p1995_p8 = scmp.lt.s32.totalorder %s2741_s14, %s1993_s28  ;;  %p1996_p9 = scmp.lt.s32.totalorder %s1994_s10, %s1988_s7 }
 0x2be   : > { %p1991_p7 = pneg %p1990_p3 }
 0x2bf   : > { %p1997_p10 = por %p1996_p9, %p1995_p8 }
 0x2c1   : > { %p1998_p1 = pnand %p1997_p10, %p1991_p7 }
 0x2c3   : > { %v1369_v59 = vpop.permute.xlu0 %1368 }
 0x2c4   : > { %1371 = vst.msk [vmem:[%s310_s25] sm:$0x3] %vm1289_vm2, %v1369_v59 }
 0x2c5   : > { %2001 = shalt.err (!%p1998_p1)
}
 0x2c6   : > { %s2002_s23 = scalar_lea.hbm %s2739_s26, 32  ;;  %s2006_s12 = scalar_lea.hbm %s2791_s5, 64 }
 0x2c7   : > { %p2003_p4 = scmp.ne.s32.totalorder %s2739_s26, %s2002_s23  ;;  %p2007_p11 = scmp.lt.u32.totalorder %s2739_s26, %s2791_s5 }
 0x2c8   : > { %p2008_p12 = scmp.lt.u32.totalorder %s2006_s12, %s2002_s23  ;;  %p2010_p3 = scmp.lt.u32.totalorder %s2002_s23, %s2739_s26 }
 0x2c9   : > { %p2004_p5 = pnand %p2003_p4, %p2814_p2 }
 0x2ca   : > { %p2009_p13 = por %p2008_p12, %p2007_p11 }
 0x2cb   : > { %p2005_p6 = pneg %p2004_p5 }
 0x2cc   : > { %p2011_p7 = por %p2010_p3, %p2009_p13 }
 0x2ce   : > { %p2012_p8 = pnand %p2011_p7, %p2005_p6 }
 0x2d0   : > { %2015 = shalt.err (!%p2012_p8)
}
 0x2d1   : > { %1793 = dma.vmem_to_hbm [thread:$0]  (%p2814_p2), %s2741_s14, 32, %s2739_s26, %s1388_s17  }
 0x2d2 PF: > { %s1458_s1 = sand.u32 1, %s2054_s18   ;;  %p2816_p9 = scmp.ne.s32.totalorder %s2803_s6, 0 }
 0x2d3   : > { %s1459_s25 = scalar_lea.sflag [#allocation5], %s1458_s1 }
 0x2d4   : > { %p1803_p10 = pnand %p1622_p0, %p2816_p9 }
 0x2d6   : > { %2041 = dma.done.wait (!%p1803_p10), %s1459_s25, 512  }
 0x2d7   : > { %2043 = vsyncadd (!%p1803_p10), %s1459_s25, 4294966784  ;;  %s2817_s11 = sadd.s32 4294967294, %s2066_s21  }
 0x2d8   : > { %s1467_s9 = sand.u32 1, %s2817_s11  }
 0x2d9   : > { %s1468_s16 = scalar_lea.sflag [#allocation10], %s1467_s9 }
 0x2da   : > { %2045 = dma.done.wait (!%p1803_p10), %s1468_s16, 544  }
 0x2db   : > { %2047 = vsyncadd (!%p1803_p10), %s1468_s16, 4294966752  ;;  %s1486_s30 = scalar_lea.sflag [#allocation13], %s1458_s1 }
 0x2dc   : > { %2049 = dma.done.wait (!%p1803_p10), %s1486_s30, 32  }
 0x2dd   : > { %2051 = vsyncadd (!%p1803_p10), %s1486_s30, 4294967264  ;;  %p26_p2 = scmp.ge.s32.totalorder %s2146_s24, 4   ;;  %s2818_s18 = smov %s2058_s19 }
 0x2de   : > { %s2819_s19 = smov %s2062_s20  ;;  %s2820_s20 = smov %s2158_s27 }
 0x2df   : > { %s2821_s21 = smov %s2146_s24  ;;  %28 = sbr.rel (!%p26_p2) target bundleno = 12 (0xc), region = 136 }
 0x2e6   :  { %1491 = vsyncpa [#allocation4], 1 }
 0x2e7   :  { %1493 = vsyncpa [#allocation4 + $0x1], 1 }
 0x2e8   :  { %1494 = vsyncpa [#allocation7], 1 }
 0x2e9   :  { %1495 = vsyncpa [#allocation5], 1 }
 0x2ea   :  { %1497 = vsyncpa [#allocation5 + $0x1], 1 }
 0x2eb   :  { %1498 = vsyncpa [#allocation10], 1 }
 0x2ec   :  { %1500 = vsyncpa [#allocation10 + $0x1], 1 }
 0x2ed   :  { %1501 = vsyncpa [#allocation13], 1 }
 0x2ee   :  { %1503 = vsyncpa [#allocation13 + $0x1], 1 }

// kernel: _lambda_.5
= control target key start
LH: loop header
LB: loop body
LE: loop exit
PB: predicated region body
PF: predicated region fallthrough
CT: control target
= control target key end

     0   :  { %s1495_s0 = inlined_call_operand.hbm [shape: bf16[2,64,8], index: 0, kind: input, shape index: {}]   ;;  %s1496_s1 = inlined_call_operand.hbm [shape: f32[1,8], index: 1, kind: input, shape index: {}]   ;;  %s1497_s2 = inlined_call_operand.hbm [shape: f32[1,8], index: 2, kind: input, shape index: {}]   ;;  %s1498_s3 = inlined_call_operand.hbm [shape: bf16[2,64,8], index: 3, kind: input, shape index: {}]   ;;  %s1499_s4 = inlined_call_operand.hbm [shape: f32[1,8], index: 4, kind: input, shape index: {}]   ;;  %s1500_s5 = inlined_call_operand.hbm [shape: f32[1,8], index: 5, kind: input, shape index: {}]   ;;  %s1501_s6 = inlined_call_operand.hbm [shape: f32[2,8,64], index: 6, kind: output, shape index: {}]  }
   0x1   :  { %1505 = sst [smem:[#allocation20_spill]] %s1495_s0 }
   0x2   :  { %1506 = sst [smem:[#allocation21_spill]] %s1496_s1 }
   0x3   :  { %1507 = sst [smem:[#allocation22_spill]] %s1497_s2 }
   0x4   :  { %11 = vsyncpa [#allocation3], 0 }
   0x5   :  { %13 = vsyncpa [#allocation3 + $0x1], 0 }
   0x6   :  { %14 = vsyncpa [#allocation6], 0 }
   0x7   :  { %15 = vsyncpa [#allocation9], 0 }
   0x8   :  { %17 = vsyncpa [#allocation9 + $0x1], 0 }
   0x9   :  { %18 = vsyncpa [#allocation12], 0 }
   0xa   :  { %19 = vsyncpa [#allocation4], 0 }
   0xb   :  { %21 = vsyncpa [#allocation4 + $0x1], 0  ;;  %s1111_s21 = smov 0   ;;  %s1113_s22 = smov 0  }
   0xc   :  { %s1115_s23 = smov 0   ;;  %s1117_s24 = smov 0  }
   0xd LB: > { %s1132_s25 = sadd.s32 4294967295, %s1065_s24   ;;  %s647_s26 = sadd.s32 4294967294, %s1065_s24   ;;  %s1065_s24 = sphi %s1117_s24, %s1532_s24   ;;  %s1061_s23 = sphi %s1115_s23, %s1531_s23   ;;  %s1057_s22 = sphi %s1113_s22, %s1530_s22   ;;  %s1053_s21 = sphi %s1111_s21, %s1529_s21  }
   0xe   : > { %p47_p0 = scmp.ne.s32.totalorder %s1057_s22, %s1053_s21  ;;  %p1502_p1 = scmp.eq.s32.totalorder %s1132_s25, 0 }
   0xf   : > { %p187_p3 = scmp.eq.s32.totalorder %s647_s26, 1  ;;  %p648_p5 = scmp.ge.s32.totalorder %s1065_s24, 1 }
  0x10   : > { %p1141_p4 = por %p1502_p1, %p47_p0  ;;  %p194_p7 = scmp.lt.s32.totalorder %s1065_s24, 3 }
  0x11   : > { %p1146_p6 = por %p187_p3, %p47_p0  ;;  %s1067_s30 = smov [#allocation5]  }
  0x12   : > { %s1508_s27 = scalar_select %p1141_p4, 1, 0 }
  0x13   : > { %s1509_s28 = scalar_select %p1146_p6, 1, 0 }
  0x14   : > { %p1151_p8 = pnand %p648_p5, %p194_p7  ;;  %s207_s7 = sshll.u32 %s1067_s30, 4  ;;  %s208_s7 = int_to_ptr.vmem [resolvable:$true] %s207_s7 }
  0x15   : > { %s1068_s8 = smov [#allocation10]   ;;  %s1069_s11 = smov [#allocation7]  }
  0x16   : > { %s1510_s29 = scalar_select %p1151_p8, 1, 0 }
  0x17   : > { %p738_p10 = pneg %p1151_p8  ;;  %s229_s9 = sshll.u32 %s1068_s8, 4  ;;  %s1164_s9 = int_to_ptr.vmem [resolvable:$true] %s229_s9 }
  0x18   : > { %s218_s12 = sshll.u32 %s1069_s11, 4  ;;  %s1512_s1 = sld [smem:[#allocation21_spill]]  ;;  %s1166_s12 = int_to_ptr.vmem [resolvable:$true] %s218_s12 }
  0x19   : > { %p1160_p11 = pnand %p738_p10, %p1502_p1 }
  0x1b   : > { %p1176_p13 = pneg %p1160_p11 }
  0x1e   : > { %s811_s15 = scalar_lea.hbm %s1512_s1, 16 }
  0x1f   : > { %p812_p12 = scmp.ne.s32.totalorder %s1512_s1, %s811_s15  ;;  %p818_p5 = scmp.lt.u32.totalorder %s811_s15, %s1512_s1 }
  0x21   : > { %p814_p0 = pnand %p1176_p13, %p812_p12 }
  0x23   : > { %p815_p3 = pneg %p814_p0 }
  0x25   : > { %p820_p7 = pnand %p818_p5, %p815_p3 }
  0x27   : > { %823 = shalt.err (!%p820_p7)
}
  0x28   : > { %s824_s26 = scalar_lea.vmem %s208_s7, 16  ;;  %s831_s30 = scalar_lea.vmem %s208_s7, 32 }
  0x29   : > { %p825_p10 = scmp.ne.s32.totalorder %s208_s7, %s824_s26  ;;  %p832_p2 = scmp.lt.s32.totalorder %s208_s7, %s208_s7 }
  0x2a   : > { %p833_p6 = scmp.lt.s32.totalorder %s831_s30, %s824_s26 }
  0x2b   : > { %p827_p9 = pnand %p825_p10, %p1176_p13 }
  0x2c   : > { %p834_p4 = por %p833_p6, %p832_p2 }
  0x2d   : > { %p828_p1 = pneg %p827_p9 }
  0x2f   : > { %p835_p8 = pnand %p834_p4, %p828_p1 }
  0x31   : > { %838 = shalt.err (!%p835_p8)
}
  0x32   : > { %741 = dma.hbm_to_vmem [thread:$0]  (!%p1160_p11), %s1512_s1, 16, %s208_s7, [#allocation6]  }
  0x33   : > { %s839_s15 = scalar_lea.hbm %s1499_s4, 16 }
  0x34   : > { %p840_p9 = scmp.ne.s32.totalorder %s1499_s4, %s839_s15  ;;  %p846_p1 = scmp.lt.u32.totalorder %s839_s15, %s1499_s4 }
  0x36   : > { %p842_p12 = pnand %p840_p9, %p1176_p13 }
  0x38   : > { %p843_p2 = pneg %p842_p12 }
  0x3a   : > { %p848_p4 = pnand %p846_p1, %p843_p2 }
  0x3c   : > { %851 = shalt.err (!%p848_p4)
}
  0x3d   : > { %s852_s7 = scalar_lea.vmem %s1164_s9, 16  ;;  %s859_s26 = scalar_lea.vmem %s1164_s9, 32 }
  0x3e   : > { %p853_p6 = scmp.ne.s32.totalorder %s1164_s9, %s852_s7  ;;  %p860_p3 = scmp.lt.s32.totalorder %s1164_s9, %s1164_s9 }
  0x3f   : > { %p861_p5 = scmp.lt.s32.totalorder %s859_s26, %s852_s7 }
  0x40   : > { %p855_p8 = pnand %p853_p6, %p1176_p13 }
  0x41   : > { %p862_p7 = por %p861_p5, %p860_p3 }
  0x42   : > { %p856_p0 = pneg %p855_p8 }
  0x44   : > { %p863_p10 = pnand %p862_p7, %p856_p0 }
  0x46   : > { %866 = shalt.err (!%p863_p10)
}
  0x47   : > { %747 = dma.hbm_to_vmem [thread:$0]  (!%p1160_p11), %s1499_s4, 16, %s1164_s9, [#allocation9]  }
  0x48   : > { %s1514_s2 = sld [smem:[#allocation22_spill]] }
  0x4e   : > { %s867_s14 = scalar_lea.hbm %s1514_s2, 16 }
  0x4f   : > { %p868_p9 = scmp.ne.s32.totalorder %s1514_s2, %s867_s14  ;;  %p874_p1 = scmp.lt.u32.totalorder %s867_s14, %s1514_s2 }
  0x51   : > { %p870_p12 = pnand %p868_p9, %p1176_p13 }
  0x53   : > { %p871_p2 = pneg %p870_p12 }
  0x55   : > { %p876_p4 = pnand %p874_p1, %p871_p2 }
  0x57   : > { %879 = shalt.err (!%p876_p4)
}
  0x58   : > { %s880_s9 = scalar_lea.vmem %s1166_s12, 16  ;;  %s887_s20 = scalar_lea.vmem %s1166_s12, 32 }
  0x59   : > { %p881_p6 = scmp.ne.s32.totalorder %s1166_s12, %s880_s9  ;;  %p888_p3 = scmp.lt.s32.totalorder %s1166_s12, %s1166_s12 }
  0x5a   : > { %p889_p5 = scmp.lt.s32.totalorder %s887_s20, %s880_s9 }
  0x5b   : > { %p883_p8 = pnand %p881_p6, %p1176_p13 }
  0x5c   : > { %p890_p7 = por %p889_p5, %p888_p3 }
  0x5d   : > { %p884_p0 = pneg %p883_p8 }
  0x5f   : > { %p891_p10 = pnand %p890_p7, %p884_p0 }
  0x61   : > { %894 = shalt.err (!%p891_p10)
}
  0x62   : > { %744 = dma.hbm_to_vmem [thread:$0]  (!%p1160_p11), %s1514_s2, 16, %s1166_s12, [#allocation6]  }
  0x63   : > { %s1070_s30 = smov [#allocation11]   ;;  %s895_s14 = scalar_lea.hbm %s1500_s5, 16 }
  0x64   : > { %s240_s8 = sshll.u32 %s1070_s30, 4  ;;  %p896_p9 = scmp.ne.s32.totalorder %s1500_s5, %s895_s14  ;;  %s241_s8 = int_to_ptr.vmem [resolvable:$true] %s240_s8 }
  0x65   : > { %p902_p1 = scmp.lt.u32.totalorder %s895_s14, %s1500_s5 }
  0x66   : > { %p898_p12 = pnand %p896_p9, %p1176_p13 }
  0x68   : > { %p899_p2 = pneg %p898_p12 }
  0x6a   : > { %p904_p4 = pnand %p902_p1, %p899_p2 }
  0x6c   : > { %907 = shalt.err (!%p904_p4)
}
  0x6d   : > { %s908_s12 = scalar_lea.vmem %s241_s8, 16  ;;  %s915_s9 = scalar_lea.vmem %s241_s8, 32 }
  0x6e   : > { %p909_p6 = scmp.ne.s32.totalorder %s241_s8, %s908_s12  ;;  %p916_p3 = scmp.lt.s32.totalorder %s241_s8, %s241_s8 }
  0x6f   : > { %p917_p5 = scmp.lt.s32.totalorder %s915_s9, %s908_s12 }
  0x70   : > { %p911_p8 = pnand %p909_p6, %p1176_p13 }
  0x71   : > { %p918_p7 = por %p917_p5, %p916_p3 }
  0x72   : > { %p912_p0 = pneg %p911_p8 }
  0x74   : > { %p919_p10 = pnand %p918_p7, %p912_p0 }
  0x76   : > { %922 = shalt.err (!%p919_p10)
}
  0x77   : > { %750 = dma.hbm_to_vmem [thread:$0]  (!%p1160_p11), %s1500_s5, 16, %s241_s8, [#allocation12]  }
  0x78   : > { %s1259_s18 = sadd.s32 1, %s1065_s24   ;;  %s34_s10 = sadd.s32 1, %s1061_s23 }
  0x79   : > { %s31_s26 = ssub.s32 %s1065_s24, %s1259_s18  ;;  %p41_p13 = scmp.ne.s32.totalorder %s1061_s23, %s1057_s22 }
  0x7a   : > { %p32_p9 = scmp.eq.s32.totalorder %s31_s26, 0  ;;  %p42_p12 = scmp.eq.s32.totalorder %s1065_s24, 0 }
  0x7b   : > { %p1515_p2 = scmp.eq.s32.totalorder %s1132_s25, 1  ;;  %p766_p4 = scmp.lt.s32.totalorder %s1065_s24, 2 }
  0x7c   : > { %s1275_s11 = scalar_select %p32_p9, %s1061_s23, %s34_s10  }
  0x7d   : > { %p1269_p1 = por %p1515_p2, %p41_p13  ;;  %p43_p6 = por %p42_p12, %p41_p13 }
  0x7e   : > { %s251_s13 = sand.u32 1, %s1061_s23   ;;  %s676_s8 = sshll.u32 %s1065_s24, 9 }
  0x7f   : > { %s1278_s14 = sshll.u32 %s251_s13, 5  ;;  %s1517_s0 = sld [smem:[#allocation20_spill]] }
  0x80   : > { %s255_s19 = scalar_lea.vmem [#allocation2], %s1278_s14  ;;  %p1291_p11 = pnand %p766_p4, %p43_p6 }
  0x81   : > { %s262_s12 = sshll.u32 %s255_s19, 4  ;;  %s1295_s20 = scalar_lea.sflag [#allocation3], %s251_s13  ;;  %s1289_s12 = int_to_ptr.vmem [resolvable:$true] %s262_s12 }
  0x82   : > { %p925_p0 = pneg %p1291_p11 }
  0x85   : > { %s1286_s17 = scalar_lea.hbm %s1517_s0, %s676_s8  ;;  %s928_s15 = scalar_lea.hbm %s1517_s0, 1024 }
  0x86   : > { %s923_s7 = scalar_lea.hbm %s1286_s17, 512  ;;  %p929_p7 = scmp.lt.u32.totalorder %s1286_s17, %s1517_s0 }
  0x87   : > { %p924_p8 = scmp.ne.s32.totalorder %s1286_s17, %s923_s7  ;;  %p930_p10 = scmp.lt.u32.totalorder %s928_s15, %s923_s7 }
  0x88   : > { %p932_p9 = scmp.lt.u32.totalorder %s923_s7, %s1286_s17 }
  0x89   : > { %p926_p3 = pnand %p925_p0, %p924_p8  ;;  %p931_p13 = por %p930_p10, %p929_p7 }
  0x8b   : > { %p927_p5 = pneg %p926_p3  ;;  %p933_p12 = por %p932_p9, %p931_p13 }
  0x8d   : > { %p934_p2 = pnand %p933_p12, %p927_p5 }
  0x8f   : > { %937 = shalt.err (!%p934_p2)
}
  0x90   : > { %s938_s13 = scalar_lea.vmem %s1289_s12, 512  ;;  %s1071_s10 = smov [#allocation2]  }
  0x91   : > { %p939_p4 = scmp.ne.s32.totalorder %s1289_s12, %s938_s13  ;;  %s943_s26 = sshll.u32 %s1071_s10, 4  ;;  %s944_s26 = int_to_ptr.vmem [resolvable:$false] %s943_s26 }
  0x92   : > { %s945_s16 = scalar_lea.vmem %s944_s26, 1024  ;;  %p946_p3 = scmp.lt.s32.totalorder %s1289_s12, %s944_s26 }
  0x93   : > { %p941_p6 = pnand %p939_p4, %p925_p0  ;;  %p947_p7 = scmp.lt.s32.totalorder %s945_s16, %s938_s13 }
  0x95   : > { %p942_p8 = pneg %p941_p6  ;;  %p948_p10 = por %p947_p7, %p946_p3 }
  0x97   : > { %p949_p13 = pnand %p948_p10, %p942_p8 }
  0x99   : > { %952 = shalt.err (!%p949_p13)
}
  0x9a   : > { %s1072_s7 = smov 64   ;;  %s1073_s15 = smov 4  }
  0x9b   : > { %754 = dma.hbm_to_vmem [thread:$0]  (!%p1291_p11), %s1286_s17, 512, %s1289_s12, %s1295_s20, %s1072_s7, %s1072_s7, %s1073_s15  }
  0x9c   : > { %s1331_s10 = scalar_lea.hbm %s1498_s3, %s676_s8  ;;  %s276_s26 = scalar_lea.vmem [#allocation8], %s1278_s14 }
  0x9d   : > { %s283_s16 = sshll.u32 %s276_s26, 4  ;;  %s272_s0 = sand.u32 1, %s1065_s24   ;;  %s1334_s16 = int_to_ptr.vmem [resolvable:$true] %s283_s16 }
  0x9e   : > { %s1337_s1 = scalar_lea.sflag [#allocation9], %s272_s0  ;;  %s953_s2 = scalar_lea.hbm %s1331_s10, 512 }
  0x9f   : > { %p954_p5 = scmp.ne.s32.totalorder %s1331_s10, %s953_s2  ;;  %s958_s12 = scalar_lea.hbm %s1498_s3, 1024 }
  0xa0   : > { %p959_p2 = scmp.lt.u32.totalorder %s1331_s10, %s1498_s3  ;;  %p960_p4 = scmp.lt.u32.totalorder %s958_s12, %s953_s2 }
  0xa1   : > { %p956_p9 = pnand %p954_p5, %p925_p0  ;;  %p962_p8 = scmp.lt.u32.totalorder %s953_s2, %s1331_s10 }
  0xa2   : > { %p961_p6 = por %p960_p4, %p959_p2 }
  0xa3   : > { %p957_p12 = pneg %p956_p9 }
  0xa4   : > { %p963_p3 = por %p962_p8, %p961_p6 }
  0xa6   : > { %p964_p7 = pnand %p963_p3, %p957_p12 }
  0xa8   : > { %967 = shalt.err (!%p964_p7)
}
  0xa9   : > { %s968_s0 = scalar_lea.vmem %s1334_s16, 512  ;;  %s1074_s14 = smov [#allocation8]  }
  0xaa   : > { %p969_p10 = scmp.ne.s32.totalorder %s1334_s16, %s968_s0  ;;  %s973_s13 = sshll.u32 %s1074_s14, 4  ;;  %s974_s13 = int_to_ptr.vmem [resolvable:$false] %s973_s13 }
  0xab   : > { %s975_s26 = scalar_lea.vmem %s974_s13, 1024  ;;  %p976_p9 = scmp.lt.s32.totalorder %s1334_s16, %s974_s13 }
  0xac   : > { %p971_p13 = pnand %p969_p10, %p925_p0  ;;  %p977_p2 = scmp.lt.s32.totalorder %s975_s26, %s968_s0 }
  0xae   : > { %p972_p5 = pneg %p971_p13  ;;  %p978_p4 = por %p977_p2, %p976_p9 }
  0xb0   : > { %p979_p6 = pnand %p978_p4, %p972_p5 }
  0xb2   : > { %982 = shalt.err (!%p979_p6)
}
  0xb3   : > { %757 = dma.hbm_to_vmem [thread:$0]  (!%p1291_p11), %s1331_s10, 512, %s1334_s16, %s1337_s1, %s1072_s7, %s1072_s7, %s1073_s15  }
  0xb4   : > { %p1519_p0 = scmp.ne.s32.totalorder %s1510_s29, 0 }
  0xb5   : > { %s1369_s2 = sand.u32 (!%p1519_p0), 1, %s1057_s22   ;;  %p1520_p12 = scmp.ne.s32.totalorder (!%p1519_p0), %s1508_s27, 0 }
  0xb6   : > { %295 = sbr.rel (%p1519_p0) target bundleno = 357 (0x165), region = 44  ;;  %s661_s17 = sshll.u32 (!%p1519_p0), %s1369_s2, 5 }
  0xb7   : > { %s298_s8 = scalar_lea.sflag (!%p1519_p0), [#allocation3], %s1369_s2  ;;  %s1373_s12 = scalar_lea.vmem (!%p1519_p0), [#allocation2], %s661_s17 }
  0xbd   : > { %1028 = dma.done.wait (%p1520_p12), %s298_s8, 512  }
  0xbe   : > { %1030 = vsyncadd (%p1520_p12), %s298_s8, 4294966784  ;;  %p1521_p11 = scmp.eq.s32.totalorder %s1132_s25, 0 }
  0xc0   : > { %1032 = dma.done.wait (%p1521_p11), [#allocation6], 32   ;;  %p1522_p8 = pmov %p1521_p11 }
  0xc1   : > { %s314_s1 = sand.u32 1, %s1132_s25   ;;  %s1384_s9 = scalar_lea.vmem [#allocation8], %s661_s17 }
  0xc2   : > { %1034 = vsyncadd (%p1522_p8), [#allocation6], 4294967264  ;;  %s315_s29 = scalar_lea.sflag [#allocation9], %s314_s1 }
  0xc3   : > { %1036 = dma.done.wait (%p1520_p12), %s315_s29, 512  }
  0xc4   : > { %1038 = vsyncadd (%p1520_p12), %s315_s29, 4294966784  ;;  %p1523_p3 = pmov %p1522_p8 }
  0xc6   : > { %1040 = dma.done.wait (%p1523_p3), [#allocation9], 16   ;;  %p1524_p7 = pmov %p1523_p3 }
  0xc7   : > { %p1525_p10 = pmov %p1523_p3 }
  0xc8   : > { %1042 = vsyncadd (%p1524_p7), [#allocation9], 4294967280 }
  0xc9   : > { %1044 = dma.done.wait (%p1525_p10), [#allocation12], 16   ;;  %p1526_p13 = pmov %p1523_p3 }
  0xca   : > { %v679_v0 = vld [vmem:[%s1373_s12] sm:$0xff]   ;;  %v710_v9 = vld [vmem:[%s1373_s12 + $0x8] sm:$0xff]   ;;  %v711_v20 = vld [vmem:[%s1373_s12 + $0x10] sm:$0xff]   ;;  %s667_s27 = sshll.u32 %s1369_s2, 3  ;;  %s673_s7 = sshll.u32 %s1132_s25, 7  ;;  %vm500_vm0 = vcmask 523264  }
  0xcb   : > { %1046 = vsyncadd (%p1526_p13), [#allocation12], 4294967280  ;;  %v1399_v1 = vld [vmem:[#allocation5] ss:$0 sm:$0xff]  ;;  %v680_v2 = vunpack.c.l.bf16 %v679_v0  ;;  %v695_v3 = vld [vmem:[%s1384_s9] sm:$0xff]   ;;  %v681_v5 = vunpack.c.h.bf16 %v679_v0  ;;  %v684_v14 = vunpack.c.l.bf16 %v710_v9  ;;  %v685_v18 = vunpack.c.h.bf16 %v710_v9  ;;  %s359_s15 = scalar_lea.vmem [#allocation13], %s667_s27  ;;  %s1451_s19 = scalar_lea.hbm %s1501_s6, %s673_s7 }
  0xcc   : > { %v1402_v4 = vld [vmem:[#allocation10] ss:$0 sm:$0xff]  ;;  %v1404_v6 = vld [vmem:[#allocation7] ss:$0 sm:$0xff]  ;;  %v696_v7 = vunpack.c.l.bf16 %v695_v3  ;;  %v697_v8 = vunpack.c.h.bf16 %v695_v3  ;;  %v713_v10 = vld [vmem:[%s1384_s9 + $0x8] sm:$0xff]   ;;  %v688_v30 = vunpack.c.l.bf16 %v711_v20  ;;  %v689_v41 = vunpack.c.h.bf16 %v711_v20  ;;  %s516_s10 = sshll.u32 %s359_s15, 4  ;;  %s1453_s10 = int_to_ptr.vmem [resolvable:$true] %s516_s10 }
  0xcd   : > { %v383_v11 = vmul.f32 %v680_v2, %v1399_v1  ;;  %v1409_v12 = vld [vmem:[#allocation11] ss:$0 sm:$0xff]  ;;  %v384_v13 = vmul.f32 %v681_v5, %v1399_v1  ;;  %v700_v15 = vunpack.c.l.bf16 %v713_v10  ;;  %v701_v19 = vunpack.c.h.bf16 %v713_v10  ;;  %v714_v21 = vld [vmem:[%s1384_s9 + $0x10] sm:$0xff]   ;;  %v715_v46 = vld [vmem:[%s1384_s9 + $0x18] sm:$0xff]   ;;  %s503_s0 = scalar_lea.sflag [#allocation4], %s1369_s2  ;;  %s983_s14 = scalar_lea.vmem %s1453_s10, 128 }
  0xce   : > { %v429_v16 = vmul.f32 %v696_v7, %v1402_v4  ;;  %v430_v17 = vmul.f32 %v697_v8, %v1402_v4  ;;  %v385_v24 = vmul.f32 %v684_v14, %v1399_v1  ;;  %v386_v28 = vmul.f32 %v685_v18, %v1399_v1  ;;  %v712_v45 = vld [vmem:[%s1373_s12 + $0x18] sm:$0xff]   ;;  %p984_p5 = scmp.ne.s32.totalorder %s1453_s10, %s983_s14  ;;  %s1075_s25 = smov [#allocation13]  }
  0xcf   : > { %v398_v22 = vadd.f32 %v1404_v6, %v383_v11  ;;  %v399_v23 = vadd.f32 %v1404_v6, %v384_v13  ;;  %v431_v25 = vmul.f32 %v700_v15, %v1402_v4  ;;  %v432_v29 = vmul.f32 %v701_v19, %v1402_v4  ;;  %s987_s13 = sshll.u32 %s1075_s25, 4  ;;  %s988_s13 = int_to_ptr.vmem [resolvable:$false] %s987_s13 }
  0xd0   : > { %v444_v26 = vadd.f32 %v1409_v12, %v429_v16  ;;  %v445_v27 = vadd.f32 %v1409_v12, %v430_v17  ;;  %v704_v31 = vunpack.c.l.bf16 %v714_v21  ;;  %v400_v34 = vadd.f32 %v1404_v6, %v385_v24  ;;  %p985_p9 = pnand %p984_p5, %p1269_p1  ;;  %s989_s26 = scalar_lea.vmem %s988_s13, 256 }
  0xd1   : > { %v446_v35 = vadd.f32 %v1409_v12, %v431_v25  ;;  %v401_v37 = vadd.f32 %v1404_v6, %v386_v28  ;;  %v447_v38 = vadd.f32 %v1409_v12, %v432_v29  ;;  %v387_v39 = vmul.f32 %v688_v30, %v1399_v1  ;;  %p990_p4 = scmp.lt.s32.totalorder %s1453_s10, %s988_s13  ;;  %p991_p6 = scmp.lt.s32.totalorder %s989_s26, %s983_s14 }
  0xd2   : > { %v452_v32 = vadd.f32 %v444_v26, %v398_v22  ;;  %v453_v33 = vadd.f32 %v445_v27, %v399_v23  ;;  %v433_v40 = vmul.f32 %v704_v31, %v1402_v4  ;;  %v705_v44 = vunpack.c.h.bf16 %v714_v21  ;;  %p986_p2 = pneg %p985_p9 }
  0xd3   : > { %v454_v43 = vadd.f32 %v446_v35, %v400_v34  ;;  %v455_v47 = vadd.f32 %v447_v38, %v401_v37  ;;  %v402_v48 = vadd.f32 %v1404_v6, %v387_v39  ;;  %v388_v50 = vmul.f32 %v689_v41, %v1399_v1  ;;  %p992_p0 = por %p991_p6, %p990_p4 }
  0xd4   : > { %v460_v36 = vmax.f32 %v452_v32, 0.0  ;;  %v461_v42 = vmax.f32 %v453_v33, 0.0  ;;  %v448_v49 = vadd.f32 %v1409_v12, %v433_v40  ;;  %v434_v52 = vmul.f32 %v705_v44, %v1402_v4 }
  0xd5   : > { %v462_v51 = vmax.f32 %v454_v43, 0.0  ;;  %v692_v53 = vunpack.c.l.bf16 %v712_v45  ;;  %v708_v54 = vunpack.c.l.bf16 %v715_v46  ;;  %v463_v55 = vmax.f32 %v455_v47, 0.0  ;;  %p993_p12 = pnand %p992_p0, %p986_p2 }
  0xd6   : > { %468 = vxpose.xlu0.b32.start [1/8] (short) (narrow) %v460_v36, 8  ;;  %v456_v56 = vadd.f32 %v448_v49, %v402_v48  ;;  %v403_v57 = vadd.f32 %v1404_v6, %v388_v50  ;;  %v693_v58 = vunpack.c.h.bf16 %v712_v45  ;;  %v449_v59 = vadd.f32 %v1409_v12, %v434_v52 }
  0xd7   : > { %v389_v60 = vmul.f32 %v692_v53, %v1399_v1  ;;  %v435_v61 = vmul.f32 %v708_v54, %v1402_v4  ;;  %v709_v62 = vunpack.c.h.bf16 %v715_v46 }
  0xd8   : > { %v464_v63 = vmax.f32 %v456_v56, 0.0  ;;  %v390_v0 = vmul.f32 %v693_v58, %v1399_v1  ;;  %v457_v2 = vadd.f32 %v449_v59, %v403_v57 }
  0xd9   : > { %v404_v3 = vadd.f32 %v1404_v6, %v389_v60  ;;  %v450_v5 = vadd.f32 %v1409_v12, %v435_v61  ;;  %v436_v7 = vmul.f32 %v709_v62, %v1402_v4 }
  0xda   : > { %469 = vxpose.xlu0.b32.cont [2/8] (short) (narrow) %v461_v42, 8  ;;  %v465_v8 = vmax.f32 %v457_v2, 0.0  ;;  %v405_v10 = vadd.f32 %v1404_v6, %v390_v0 }
  0xdb   : > { %v458_v9 = vadd.f32 %v450_v5, %v404_v3  ;;  %v451_v11 = vadd.f32 %v1409_v12, %v436_v7 }
  0xdd   : > { %v466_v1 = vmax.f32 %v458_v9, 0.0  ;;  %v459_v13 = vadd.f32 %v451_v11, %v405_v10 }
  0xde   : > { %470 = vxpose.xlu0.b32.cont [3/8] (short) (narrow) %v462_v51, 8 }
  0xdf   : > { %v467_v14 = vmax.f32 %v459_v13, 0.0 }
  0xe2   : > { %471 = vxpose.xlu0.b32.cont [4/8] (short) (narrow) %v463_v55, 8 }
  0xe6   : > { %472 = vxpose.xlu0.b32.cont [5/8] (short) (narrow) %v464_v63, 8 }
  0xea   : > { %473 = vxpose.xlu0.b32.cont [6/8] (short) (narrow) %v465_v8, 8 }
  0xee   : > { %474 = vxpose.xlu0.b32.cont [7/8] (short) (narrow) %v466_v1, 8 }
  0xf2   : > { %475 = vxpose.xlu0.b32.end [8/8] (short) (narrow) %v467_v14, 8 }
 0x156   : > { %v484_v4 = vpop.trf.xlu0 }
 0x157   : > { %501 = vst.msk [vmem:[%s359_s15] sm:$0xff] %vm500_vm0, %v484_v4 }
 0x158   : > { %996 = shalt.err (!%p993_p12)
}
 0x159   : > { %s997_s2 = scalar_lea.hbm %s1451_s19, 128  ;;  %s1001_s12 = scalar_lea.hbm %s1501_s6, 256 }
 0x15a   : > { %p998_p11 = scmp.ne.s32.totalorder %s1451_s19, %s997_s2  ;;  %p1002_p7 = scmp.lt.u32.totalorder %s1451_s19, %s1501_s6 }
 0x15b   : > { %p1003_p10 = scmp.lt.u32.totalorder %s1001_s12, %s997_s2  ;;  %p1005_p5 = scmp.lt.u32.totalorder %s997_s2, %s1451_s19 }
 0x15c   : > { %p999_p8 = pnand %p998_p11, %p1269_p1 }
 0x15d   : > { %p1004_p13 = por %p1003_p10, %p1002_p7 }
 0x15e   : > { %p1000_p3 = pneg %p999_p8 }
 0x15f   : > { %p1006_p9 = por %p1005_p5, %p1004_p13 }
 0x161   : > { %p1007_p2 = pnand %p1006_p9, %p1000_p3 }
 0x163   : > { %1010 = shalt.err (!%p1007_p2)
}
 0x164   : > { %736 = dma.vmem_to_hbm [thread:$0]  (%p1269_p1), %s1453_s10, 128, %s1451_s19, %s503_s0  }
 0x165 PF: > { %s528_s9 = sand.u32 1, %s1053_s21   ;;  %p1527_p4 = scmp.ne.s32.totalorder %s1509_s28, 0 }
 0x166   : > { %p1528_p6 = scmp.ge.s32.totalorder %s1065_s24, 2  ;;  %s529_s27 = scalar_lea.sflag [#allocation4], %s528_s9 }
 0x168   : > { %p759_p0 = pnand %p1528_p6, %p1527_p4 }
 0x16a   : > { %1048 = dma.done.wait (!%p759_p0), %s529_s27, 128  }
 0x16b   : > { %1050 = vsyncadd (!%p759_p0), %s529_s27, 4294967168  ;;  %p24_p12 = scmp.ge.s32.totalorder %s1259_s18, 4   ;;  %s1529_s21 = smov %s1057_s22 }
 0x16c   : > { %s1530_s22 = smov %s1061_s23  ;;  %s1531_s23 = smov %s1275_s11 }
 0x16d   : > { %s1532_s24 = smov %s1259_s18  ;;  %26 = sbr.rel (!%p24_p12) target bundleno = 13 (0xd), region = 118 }
 0x174   :  { %534 = vsyncpa [#allocation3], 1 }
 0x175   :  { %536 = vsyncpa [#allocation3 + $0x1], 1 }
 0x176   :  { %537 = vsyncpa [#allocation6], 1 }
 0x177   :  { %538 = vsyncpa [#allocation9], 1 }
 0x178   :  { %540 = vsyncpa [#allocation9 + $0x1], 1 }
 0x179   :  { %541 = vsyncpa [#allocation12], 1 }
 0x17a   :  { %542 = vsyncpa [#allocation4], 1 }
 0x17b   :  { %544 = vsyncpa [#allocation4 + $0x1], 1 }

// kernel: _lambda_.4
= control target key start
LH: loop header
LB: loop body
LE: loop exit
PB: predicated region body
PF: predicated region fallthrough
CT: control target
= control target key end

     0   :  { %11 = vsyncpa [#allocation5], 0  ;;  %s3580_s0 = inlined_call_operand.hbm [shape: bf16[2,64,8], index: 0, kind: input, shape index: {}]   ;;  %s3581_s1 = inlined_call_operand.hbm [shape: f32[1,8], index: 1, kind: input, shape index: {}]   ;;  %s3582_s2 = inlined_call_operand.hbm [shape: f32[1,8], index: 2, kind: input, shape index: {}]   ;;  %s3583_s3 = inlined_call_operand.hbm [shape: bf16[72,8], index: 3, kind: input, shape index: {}]   ;;  %s3584_s4 = inlined_call_operand.hbm [shape: bf16[2,64,8], index: 4, kind: output, shape index: {0}]   ;;  %s3585_s5 = inlined_call_operand.hbm [shape: f32[2,2,8], index: 5, kind: output, shape index: {1}]  }
   0x1   :  { %13 = vsyncpa [#allocation5 + $0x1], 0 }
   0x2   :  { %14 = vsyncpa [#allocation8], 0 }
   0x3   :  { %15 = vsyncpa [#allocation11], 0 }
   0x4   :  { %16 = vsyncpa [#allocation6], 0 }
   0x5   :  { %18 = vsyncpa [#allocation6 + $0x1], 0 }
   0x6   :  { %19 = vsyncpa [#allocation14], 0 }
   0x7   :  { %21 = vsyncpa [#allocation14 + $0x1], 0  ;;  %s2756_s18 = smov 0   ;;  %s2758_s19 = smov 0  }
   0x8   :  { %s2760_s20 = smov 0   ;;  %s2762_s21 = smov 0  }
   0x9 LB: > { %s2777_s22 = sadd.s32 4294967295, %s2706_s21   ;;  %s2229_s23 = sadd.s32 4294967294, %s2706_s21   ;;  %s2706_s21 = sphi %s2762_s21, %s3616_s21   ;;  %s2702_s20 = sphi %s2760_s20, %s3615_s20   ;;  %s2698_s19 = sphi %s2758_s19, %s3614_s19   ;;  %s2694_s18 = sphi %s2756_s18, %s3613_s18  }
   0xa   : > { %p47_p0 = scmp.ne.s32.totalorder %s2698_s19, %s2694_s18  ;;  %p3586_p1 = scmp.eq.s32.totalorder %s2777_s22, 0 }
   0xb   : > { %p140_p3 = scmp.eq.s32.totalorder %s2229_s23, 1  ;;  %p2230_p5 = scmp.ge.s32.totalorder %s2706_s21, 1 }
   0xc   : > { %p2786_p4 = por %p3586_p1, %p47_p0  ;;  %p173_p7 = scmp.lt.s32.totalorder %s2706_s21, 3 }
   0xd   : > { %p2791_p6 = por %p140_p3, %p47_p0  ;;  %s2708_s27 = smov [#allocation7]  }
   0xe   : > { %s3589_s24 = scalar_select %p2786_p4, 1, 0 }
   0xf   : > { %s3590_s25 = scalar_select %p2791_p6, 1, 0 }
  0x10   : > { %p2796_p8 = pnand %p2230_p5, %p173_p7  ;;  %s186_s28 = sshll.u32 %s2708_s27, 4  ;;  %s187_s28 = int_to_ptr.vmem [resolvable:$true] %s186_s28 }
  0x11   : > { %s2709_s29 = smov [#allocation9]   ;;  %s2710_s7 = smov [#allocation10]  }
  0x12   : > { %s3591_s26 = scalar_select %p2796_p8, 1, 0 }
  0x13   : > { %p2401_p10 = pneg %p2796_p8  ;;  %s197_s30 = sshll.u32 %s2709_s29, 4  ;;  %s2809_s30 = int_to_ptr.vmem [resolvable:$true] %s197_s30 }
  0x14   : > { %s207_s8 = sshll.u32 %s2710_s7, 4  ;;  %s2486_s11 = scalar_lea.hbm %s3581_s1, 16  ;;  %s2811_s8 = int_to_ptr.vmem [resolvable:$true] %s207_s8 }
  0x15   : > { %p2805_p11 = pnand %p2401_p10, %p3586_p1  ;;  %p2487_p12 = scmp.ne.s32.totalorder %s3581_s1, %s2486_s11 }
  0x16   : > { %p2493_p5 = scmp.lt.u32.totalorder %s2486_s11, %s3581_s1 }
  0x17   : > { %p2821_p13 = pneg %p2805_p11 }
  0x19   : > { %p2489_p0 = pnand %p2821_p13, %p2487_p12 }
  0x1b   : > { %p2490_p3 = pneg %p2489_p0 }
  0x1d   : > { %p2495_p7 = pnand %p2493_p5, %p2490_p3 }
  0x1f   : > { %2498 = shalt.err (!%p2495_p7)
}
  0x20   : > { %s2499_s17 = scalar_lea.vmem %s187_s28, 16  ;;  %s2506_s23 = scalar_lea.vmem %s187_s28, 32 }
  0x21   : > { %p2500_p10 = scmp.ne.s32.totalorder %s187_s28, %s2499_s17  ;;  %p2507_p2 = scmp.lt.s32.totalorder %s187_s28, %s187_s28 }
  0x22   : > { %p2508_p6 = scmp.lt.s32.totalorder %s2506_s23, %s2499_s17 }
  0x23   : > { %p2502_p9 = pnand %p2500_p10, %p2821_p13 }
  0x24   : > { %p2509_p4 = por %p2508_p6, %p2507_p2 }
  0x25   : > { %p2503_p1 = pneg %p2502_p9 }
  0x27   : > { %p2510_p8 = pnand %p2509_p4, %p2503_p1 }
  0x29   : > { %2513 = shalt.err (!%p2510_p8)
}
  0x2a   : > { %2404 = dma.hbm_to_vmem [thread:$0]  (!%p2805_p11), %s3581_s1, 16, %s187_s28, [#allocation8]  }
  0x2b   : > { %s2514_s10 = scalar_lea.hbm %s3582_s2, 16 }
  0x2c   : > { %p2515_p9 = scmp.ne.s32.totalorder %s3582_s2, %s2514_s10  ;;  %p2521_p1 = scmp.lt.u32.totalorder %s2514_s10, %s3582_s2 }
  0x2e   : > { %p2517_p12 = pnand %p2515_p9, %p2821_p13 }
  0x30   : > { %p2518_p2 = pneg %p2517_p12 }
  0x32   : > { %p2523_p4 = pnand %p2521_p1, %p2518_p2 }
  0x34   : > { %2526 = shalt.err (!%p2523_p4)
}
  0x35   : > { %s2527_s28 = scalar_lea.vmem %s2809_s30, 16  ;;  %s2534_s16 = scalar_lea.vmem %s2809_s30, 32 }
  0x36   : > { %p2528_p6 = scmp.ne.s32.totalorder %s2809_s30, %s2527_s28  ;;  %p2535_p3 = scmp.lt.s32.totalorder %s2809_s30, %s2809_s30 }
  0x37   : > { %p2536_p5 = scmp.lt.s32.totalorder %s2534_s16, %s2527_s28 }
  0x38   : > { %p2530_p8 = pnand %p2528_p6, %p2821_p13 }
  0x39   : > { %p2537_p7 = por %p2536_p5, %p2535_p3 }
  0x3a   : > { %p2531_p0 = pneg %p2530_p8 }
  0x3c   : > { %p2538_p10 = pnand %p2537_p7, %p2531_p0 }
  0x3e   : > { %2541 = shalt.err (!%p2538_p10)
}
  0x3f   : > { %2407 = dma.hbm_to_vmem [thread:$0]  (!%p2805_p11), %s3582_s2, 16, %s2809_s30, [#allocation8]  }
  0x40   : > { %s2542_s7 = scalar_lea.hbm %s3583_s3, 576 }
  0x41   : > { %p2543_p9 = scmp.ne.s32.totalorder %s3583_s3, %s2542_s7  ;;  %p2549_p1 = scmp.lt.u32.totalorder %s2542_s7, %s3583_s3 }
  0x43   : > { %p2545_p12 = pnand %p2543_p9, %p2821_p13 }
  0x45   : > { %p2546_p2 = pneg %p2545_p12 }
  0x47   : > { %p2551_p4 = pnand %p2549_p1, %p2546_p2 }
  0x49   : > { %2554 = shalt.err (!%p2551_p4)
}
  0x4a   : > { %s2555_s30 = scalar_lea.vmem %s2811_s8, 576  ;;  %p2563_p3 = scmp.lt.s32.totalorder %s2811_s8, %s2811_s8 }
  0x4b   : > { %p2556_p6 = scmp.ne.s32.totalorder %s2811_s8, %s2555_s30  ;;  %p2564_p5 = scmp.lt.s32.totalorder %s2555_s30, %s2555_s30 }
  0x4d   : > { %p2558_p8 = pnand %p2556_p6, %p2821_p13  ;;  %p2565_p7 = por %p2564_p5, %p2563_p3 }
  0x4f   : > { %p2559_p0 = pneg %p2558_p8 }
  0x51   : > { %p2566_p10 = pnand %p2565_p7, %p2559_p0 }
  0x53   : > { %2569 = shalt.err (!%p2566_p10)
}
  0x54   : > { %s2711_s13 = smov 64   ;;  %s2712_s14 = smov 4  }
  0x55   : > { %2410 = dma.hbm_to_vmem [thread:$0]  (!%p2805_p11), %s3583_s3, 576, %s2811_s8, [#allocation11], %s2711_s13, %s2711_s13, %s2712_s14  }
  0x56   : > { %s2888_s16 = sadd.s32 1, %s2706_s21   ;;  %s34_s23 = sadd.s32 1, %s2702_s20 }
  0x57   : > { %s31_s17 = ssub.s32 %s2706_s21, %s2888_s16  ;;  %p41_p9 = scmp.ne.s32.totalorder %s2702_s20, %s2698_s19 }
  0x58   : > { %p32_p13 = scmp.eq.s32.totalorder %s31_s17, 0  ;;  %p42_p12 = scmp.eq.s32.totalorder %s2706_s21, 0 }
  0x59   : > { %p2425_p2 = scmp.lt.s32.totalorder %s2706_s21, 2  ;;  %p3594_p4 = scmp.eq.s32.totalorder %s2777_s22, 1 }
  0x5a   : > { %s2898_s27 = scalar_select %p32_p13, %s2702_s20, %s34_s23  }
  0x5b   : > { %p43_p1 = por %p42_p12, %p41_p9  ;;  %p2902_p6 = por %p3594_p4, %p41_p9 }
  0x5c   : > { %s221_s29 = sand.u32 1, %s2702_s20   ;;  %s2307_s7 = sshll.u32 %s2706_s21, 9 }
  0x5d   : > { %s2235_s8 = sshll.u32 %s221_s29, 5  ;;  %s2911_s11 = scalar_lea.hbm %s3580_s0, %s2307_s7 }
  0x5e   : > { %s225_s12 = scalar_lea.vmem [#allocation4], %s2235_s8  ;;  %p2913_p11 = pnand %p2425_p2, %p43_p1 }
  0x5f   : > { %s232_s30 = sshll.u32 %s225_s12, 4  ;;  %s2919_s28 = scalar_lea.sflag [#allocation5], %s221_s29  ;;  %s2917_s30 = int_to_ptr.vmem [resolvable:$true] %s232_s30 }
  0x60   : > { %s2570_s17 = scalar_lea.hbm %s2911_s11, 512  ;;  %p2572_p0 = pneg %p2913_p11 }
  0x61   : > { %p2571_p8 = scmp.ne.s32.totalorder %s2911_s11, %s2570_s17  ;;  %s2575_s8 = scalar_lea.hbm %s3580_s0, 1024 }
  0x62   : > { %p2576_p7 = scmp.lt.u32.totalorder %s2911_s11, %s3580_s0  ;;  %p2577_p10 = scmp.lt.u32.totalorder %s2575_s8, %s2570_s17 }
  0x63   : > { %p2573_p3 = pnand %p2572_p0, %p2571_p8  ;;  %p2579_p9 = scmp.lt.u32.totalorder %s2570_s17, %s2911_s11 }
  0x64   : > { %p2578_p13 = por %p2577_p10, %p2576_p7 }
  0x65   : > { %p2574_p5 = pneg %p2573_p3 }
  0x66   : > { %p2580_p12 = por %p2579_p9, %p2578_p13 }
  0x68   : > { %p2581_p2 = pnand %p2580_p12, %p2574_p5 }
  0x6a   : > { %2584 = shalt.err (!%p2581_p2)
}
  0x6b   : > { %s2585_s29 = scalar_lea.vmem %s2917_s30, 512  ;;  %s2713_s12 = smov [#allocation4]  }
  0x6c   : > { %p2586_p1 = scmp.ne.s32.totalorder %s2917_s30, %s2585_s29  ;;  %s2590_s23 = sshll.u32 %s2713_s12, 4  ;;  %s2591_s23 = int_to_ptr.vmem [resolvable:$false] %s2590_s23 }
  0x6d   : > { %s2592_s7 = scalar_lea.vmem %s2591_s23, 1024  ;;  %p2593_p3 = scmp.lt.s32.totalorder %s2917_s30, %s2591_s23 }
  0x6e   : > { %p2588_p4 = pnand %p2586_p1, %p2572_p0  ;;  %p2594_p7 = scmp.lt.s32.totalorder %s2592_s7, %s2585_s29 }
  0x70   : > { %p2589_p8 = pneg %p2588_p4  ;;  %p2595_p10 = por %p2594_p7, %p2593_p3 }
  0x72   : > { %p2596_p13 = pnand %p2595_p10, %p2589_p8 }
  0x74   : > { %2599 = shalt.err (!%p2596_p13)
}
  0x75   : > { %2414 = dma.hbm_to_vmem [thread:$0]  (!%p2913_p11), %s2911_s11, 512, %s2917_s30, %s2919_s28, %s2711_s13, %s2711_s13, %s2712_s14  }
  0x76   : > { %p3597_p0 = scmp.ne.s32.totalorder %s3591_s26, 0 }
  0x77   : > { %s2953_s17 = sand.u32 (!%p3597_p0), 1, %s2698_s19   ;;  %p3598_p5 = scmp.ne.s32.totalorder (!%p3597_p0), %s3589_s24, 0 }
  0x78   : > { %244 = sbr.rel (%p3597_p0) target bundleno = 694 (0x2b6), region = 36  ;;  %s2239_s8 = sshll.u32 (!%p3597_p0), %s2953_s17, 5 }
  0x79   : > { %s247_s9 = scalar_lea.sflag (!%p3597_p0), [#allocation5], %s2953_s17  ;;  %s2959_s15 = scalar_lea.vmem (!%p3597_p0), [#allocation4], %s2239_s8 }
  0x7f   : > { %2673 = dma.done.wait (%p3598_p5), %s247_s9, 512  }
  0x80   : > { %2675 = vsyncadd (%p3598_p5), %s247_s9, 4294966784  ;;  %p3599_p11 = scmp.eq.s32.totalorder %s2777_s22, 0 }
  0x82   : > { %2677 = dma.done.wait (%p3599_p11), [#allocation8], 32   ;;  %p3600_p9 = pmov %p3599_p11 }
  0x84   : > { %2679 = vsyncadd (%p3600_p9), [#allocation8], 4294967264  ;;  %p3601_p12 = pmov %p3600_p9 }
  0x85   : > { %p3602_p2 = pmov %p3600_p9 }
  0x86   : > { %2681 = dma.done.wait (%p3601_p12), [#allocation11], 576  }
  0x87   : > { %2683 = vsyncadd (%p3602_p2), [#allocation11], 4294966720  ;;  %vm295_vm0 = vcmask 60416   ;;  %v2714_v0 = vmov 0   ;;  %vm297_vm1 = vcmask 58368   ;;  %vm655_vm4 = vcmask 1042432  }
  0x88   : > { %296 = vst.msk [vmem:[#allocation2] sm:$0xf] %vm295_vm0, %v2714_v0  ;;  %303 = vst.msk [vmem:[#allocation2 + $0x8] sm:$0xf] %vm295_vm0, %v2714_v0  ;;  %vm298_vm2 = vsmask.f32 1280 }
  0x89   : > { %307 = vst.msk [vmem:[#allocation2 + $0x10] sm:$0xf] %vm295_vm0, %v2714_v0  ;;  %311 = vst.msk [vmem:[#allocation2 + $0x18] sm:$0xf] %vm295_vm0, %v2714_v0  ;;  %v300_v2 = vld [vmem:[#allocation2 + $0x4] sm:$0x3] }
  0x8a   : > { %315 = vst.msk [vmem:[#allocation2 + $0x20] sm:$0xf] %vm295_vm0, %v2714_v0  ;;  %319 = vst.msk [vmem:[#allocation2 + $0x28] sm:$0xf] %vm295_vm0, %v2714_v0  ;;  %vm656_vm5 = vcmask 1046532   ;;  %v2326_v4 = vld [vmem:[%s2959_s15] sm:$0xff]  }
  0x8b   : > { %323 = vst.msk [vmem:[#allocation2 + $0x30] sm:$0xf] %vm295_vm0, %v2714_v0  ;;  %327 = vst.msk [vmem:[#allocation2 + $0x38] sm:$0xf] %vm295_vm0, %v2714_v0  ;;  %v308_v3 = vld [vmem:[#allocation2 + $0x14] sm:$0x3]  ;;  %v2328_v9 = vunpack.c.h.bf16 %v2326_v4  ;;  %v2327_v10 = vunpack.c.l.bf16 %v2326_v4 }
  0x8c   : > { %331 = vst.msk [vmem:[#allocation2 + $0x40] sm:$0xf] %vm295_vm0, %v2714_v0  ;;  %335 = vst.msk [vmem:[#allocation2 + $0x48] sm:$0xf] %vm295_vm0, %v2714_v0  ;;  %vm739_vm6 = vsmask.f32 2304 }
  0x8d   : > { %vm2984_vm3 = vmand %vm297_vm1, %vm298_vm2  ;;  %vm740_vm7 = vsmask.f32 6416  ;;  %v2996_v14 = vld [vmem:[#allocation7] ss:$0 sm:$0xff]  ;;  %vm458_vm8 = vcmask 60417   ;;  %v2341_v15 = vld [vmem:[%s2959_s15 + $0x8] sm:$0xff]  }
  0x8e   : > { %v301_v5 = vsel %vm2984_vm3, 0, %v300_v2  ;;  %v309_v8 = vsel %vm2984_vm3, 0, %v308_v3  ;;  %v363_v16 = vmul.f32 %v2328_v9, %v2996_v14  ;;  %v3000_v17 = vld [vmem:[#allocation9] ss:$0 sm:$0xff]  ;;  %v304_v18 = vld [vmem:[#allocation2 + $0xc] sm:$0x3]  ;;  %v362_v19 = vmul.f32 %v2327_v10, %v2996_v14  ;;  %vm3027_vm10 = vmor %vm655_vm4, %vm656_vm5 }
  0x8f   : > { %v2991_v6 = vld [vmem:[#allocation2] sm:$0xe]  ;;  %302 = vst [vmem:[#allocation2 + $0x4] sm:$0x3] %v301_v5  ;;  %310 = vst [vmem:[#allocation2 + $0x14] sm:$0x3] %v309_v8  ;;  %v2331_v21 = vunpack.c.l.bf16 %v2341_v15  ;;  %v2332_v22 = vunpack.c.h.bf16 %v2341_v15 }
  0x90   : > { %v723_v7 = vld [vmem:[#allocation2] sm:$0xe]  ;;  %v2255_v11 = vrot.slane %v2991_v6, 9  ;;  %v312_v20 = vld [vmem:[#allocation2 + $0x1c] sm:$0x3]  ;;  %vm460_vm9 = vcmask 57344   ;;  %v378_v28 = vadd.f32 %v3000_v17, %v363_v16  ;;  %v377_v29 = vadd.f32 %v3000_v17, %v362_v19  ;;  %vm3039_vm11 = vmor %vm739_vm6, %vm740_vm7 }
  0x91   : > { %v743_v12 = vshrl.u32 %v723_v7, 16  ;;  %v746_v13 = vshll.u32 %v723_v7, 16  ;;  %v305_v25 = vsel %vm2984_vm3, 0, %v304_v18  ;;  %v313_v26 = vsel %vm2984_vm3, 0, %v312_v20  ;;  %v316_v27 = vld [vmem:[#allocation2 + $0x24] sm:$0x3] }
  0x92   : > { %306 = vst [vmem:[#allocation2 + $0xc] sm:$0x3] %v305_v25  ;;  %314 = vst [vmem:[#allocation2 + $0x1c] sm:$0x3] %v313_v26  ;;  %v364_v30 = vmul.f32 %v2331_v21, %v2996_v14  ;;  %v317_v31 = vsel %vm2984_vm3, 0, %v316_v27  ;;  %v3013_v33 = vld [vmem:[%s2959_s15 + $0x10] sm:$0xff]   ;;  %v365_v36 = vmul.f32 %v2332_v22, %v2996_v14 }
  0x93   : > { %v745_v23 = vrot.slane %v743_v12, 5  ;;  %v748_v24 = vrot.slane %v746_v13, 6  ;;  %v320_v32 = vld [vmem:[#allocation2 + $0x2c] sm:$0x3]  ;;  %v328_v34 = vld [vmem:[#allocation2 + $0x3c] sm:$0x3]  ;;  %v2335_v38 = vunpack.c.l.bf16 %v3013_v33  ;;  %v2336_v19 = vunpack.c.h.bf16 %v3013_v33 }
  0x94   : > { %318 = vst [vmem:[#allocation2 + $0x24] sm:$0x3] %v317_v31  ;;  %v321_v37 = vsel %vm2984_vm3, 0, %v320_v32  ;;  %v2343_v39 = vld [vmem:[%s2959_s15 + $0x18] sm:$0xff]   ;;  %v386_v40 = vmax.f32 %v378_v28, 0.0  ;;  %v385_v41 = vmax.f32 %v377_v29, 0.0  ;;  %v379_v42 = vadd.f32 %v3000_v17, %v364_v30 }
  0x95   : > { %v749_v35 = vor.u32 %v748_v24, %v745_v23  ;;  %322 = vst [vmem:[#allocation2 + $0x2c] sm:$0x3] %v321_v37  ;;  %v329_v43 = vsel %vm2984_vm3, 0, %v328_v34  ;;  %v380_v45 = vadd.f32 %v3000_v17, %v365_v36  ;;  %v366_v46 = vmul.f32 %v2335_v38, %v2996_v14  ;;  %v324_v55 = vld [vmem:[#allocation2 + $0x34] sm:$0x3]  ;;  %s2715_s24 = smov 8  }
  0x96   : > { %330 = vst [vmem:[#allocation2 + $0x3c] sm:$0x3] %v329_v43  ;;  %v2339_v47 = vunpack.c.l.bf16 %v2343_v39  ;;  %v624_v48 = vld [vmem:[#allocation2 + $0x4] sm:$0x1]  ;;  %v2309_v51 = vpack.c.bf16 %v386_v40, %v386_v40  ;;  %v2308_v52 = vpack.c.bf16 %v385_v41, %v385_v41  ;;  %v387_v53 = vmax.f32 %v379_v42, 0.0  ;;  %s2716_s26 = smov 16  }
  0x97   : > { %v750_v44 = vrot.slane %v749_v35, 4  ;;  %v724_v50 = vld [vmem:[#allocation2 + $0x4] sm:$0x3]  ;;  %v2340_v54 = vunpack.c.h.bf16 %v2343_v39  ;;  %v660_v56 = vrot.slane %v624_v48, 5  ;;  %v388_v59 = vmax.f32 %v380_v45, 0.0  ;;  %s2717_s13 = smov 32  }
  0x98   : > { %v752_v57 = vshrl.u32 %v724_v50, 16  ;;  %v755_v58 = vshll.u32 %v724_v50, 16  ;;  %v332_v60 = vld [vmem:[#allocation2 + $0x44] sm:$0x3]  ;;  %v427_v61 = vrot.slane %v2309_v51, 7  ;;  %v425_v62 = vrot.slane %v2308_v52, 7 }
  0x99   : > { %v2310_v63 = vpack.c.bf16 %v387_v53, %v387_v53  ;;  %v381_v0 = vadd.f32 %v3000_v17, %v366_v46  ;;  %v661_v2 = vsel %vm3027_vm10, %v2255_v11, %v660_v56  ;;  %v2311_v5 = vpack.c.bf16 %v388_v59, %v388_v59  ;;  %v3059_v25 = vld [vmem:[#allocation2 + $0x4] sm:$0x1]  ;;  %v336_v26 = vld [vmem:[#allocation2 + $0x4c] sm:$0x3]  ;;  %s2718_s14 = smov 24   ;;  %s2719_s11 = smov 40  }
  0x9a   : > { %v754_v3 = vrot.slane %v752_v57, 5  ;;  %v757_v4 = vrot.slane %v755_v58, 6  ;;  %690 = vrot.lane.b32.xlu0 %v661_v2, %s2715_s24  ;;  %v428_v8 = vrot.slane %v427_v61, 4  ;;  %462 = vst.msk [vmem:[#allocation2 + $0x10] sm:$0xe] %vm458_vm8, %v427_v61  ;;  %v426_v9 = vrot.slane %v425_v62, 4 }
  0x9b   : > { %459 = vst.msk [vmem:[#allocation2 + $0x8] sm:$0xe] %vm458_vm8, %v425_v62  ;;  %v429_v6 = vrot.slane %v2310_v63, 7  ;;  %v389_v10 = vmax.f32 %v381_v0, 0.0  ;;  %v431_v12 = vrot.slane %v2311_v5, 7  ;;  %v368_v13 = vmul.f32 %v2339_v47, %v2996_v14  ;;  %s2720_s30 = smov 48  }
  0x9c   : > { %v758_v11 = vor.u32 %v757_v4, %v754_v3  ;;  %v325_v15 = vsel %vm2984_vm3, 0, %v324_v55  ;;  %463 = vst.msk [vmem:[#allocation2 + $0x14] sm:$0x1] %vm460_vm9, %v428_v8  ;;  %461 = vst.msk [vmem:[#allocation2 + $0xc] sm:$0x1] %vm460_vm9, %v426_v9  ;;  %v333_v20 = vsel %vm2984_vm3, 0, %v332_v60  ;;  %v369_v24 = vmul.f32 %v2340_v54, %v2996_v14 }
  0x9d   : > { %v430_v16 = vrot.slane %v429_v6, 4  ;;  %464 = vst.msk [vmem:[#allocation2 + $0x18] sm:$0xe] %vm458_vm8, %v429_v6  ;;  %v2312_v18 = vpack.c.bf16 %v389_v10, %v389_v10  ;;  %326 = vst [vmem:[#allocation2 + $0x34] sm:$0x3] %v325_v15  ;;  %v432_v22 = vrot.slane %v431_v12, 4  ;;  %v383_v23 = vadd.f32 %v3000_v17, %v368_v13 }
  0x9e   : > { %v759_v21 = vsel %vm3039_vm11, %v750_v44, %v758_v11  ;;  %466 = vst.msk [vmem:[#allocation2 + $0x20] sm:$0xe] %vm458_vm8, %v431_v12  ;;  %334 = vst [vmem:[#allocation2 + $0x44] sm:$0x3] %v333_v20  ;;  %v367_v28 = vmul.f32 %v2336_v19, %v2996_v14  ;;  %v3066_v30 = vadd.f32 %v3000_v17, %v369_v24  ;;  %v505_v33 = vshll.u32 %v3059_v25, 16  ;;  %s2721_s28 = smov 56  }
  0x9f   : > { %886 = vrot.lane.b32.xlu0 %v759_v21, %s2716_s26  ;;  %465 = vst.msk [vmem:[#allocation2 + $0x1c] sm:$0x1] %vm460_vm9, %v430_v16  ;;  %v433_v27 = vrot.slane %v2312_v18, 7  ;;  %467 = vst.msk [vmem:[#allocation2 + $0x24] sm:$0x1] %vm460_vm9, %v432_v22  ;;  %v391_v29 = vmax.f32 %v383_v23, 0.0 }
  0xa0   : > { %v3070_v32 = vadd.f32 %v3000_v17, %v367_v28  ;;  %v337_v34 = vsel %vm2984_vm3, 0, %v336_v26  ;;  %vm492_vm12 = vsmask.f32 3328  ;;  %vm493_vm13 = vsmask.f32 7440  ;;  %s2722_s10 = smov 64  }
  0xa1   : > { %v434_v31 = vrot.slane %v433_v27, 4  ;;  %468 = vst.msk [vmem:[#allocation2 + $0x28] sm:$0xe] %vm458_vm8, %v433_v27  ;;  %v627_v35 = vld [vmem:[#allocation2 + $0x10] sm:$0xe]  ;;  %v3075_v37 = vpack.c.bf16 %v391_v29, %v391_v29  ;;  %vm3109_vm14 = vmor %vm492_vm12, %vm493_vm13  ;;  %vm714_vm15 = vcmask 126016  }
  0xa2   : > { %v625_v36 = vld [vmem:[#allocation2 + $0x8] sm:$0xe]  ;;  %338 = vst [vmem:[#allocation2 + $0x4c] sm:$0x3] %v337_v34  ;;  %v2257_v38 = vrot.slane %v627_v35, 9  ;;  %v390_v17 = vmax.f32 %v3070_v32, 0.0 }
  0xa3   : > { %v1080_v14 = vld [vmem:[#allocation2 + $0x8] sm:$0xe]  ;;  %v2256_v39 = vrot.slane %v625_v36, 9  ;;  %v1082_v41 = vld [vmem:[#allocation2 + $0x10] sm:$0xe]  ;;  %v437_v53 = vrot.slane %v3075_v37, 7 }
  0xa4   : > { %v2263_v40 = vrot.slane %v1080_v14, 9  ;;  %469 = vst.msk [vmem:[#allocation2 + $0x2c] sm:$0x1] %vm460_vm9, %v434_v31  ;;  %v628_v42 = vld [vmem:[#allocation2 + $0x14] sm:$0x1]  ;;  %v2264_v48 = vrot.slane %v1082_v41, 9 }
  0xa5   : > { %v626_v43 = vld [vmem:[#allocation2 + $0xc] sm:$0x1]  ;;  %v629_v44 = vld [vmem:[#allocation2 + $0x18] sm:$0xe]  ;;  %v668_v45 = vrot.slane %v628_v42, 5  ;;  %vm910_vm2 = vcmask 191616  }
  0xa6   : > { %v664_v1 = vrot.slane %v626_v43, 5  ;;  %v2258_v46 = vrot.slane %v629_v44, 9  ;;  %v1081_v47 = vld [vmem:[#allocation2 + $0xc] sm:$0x1]  ;;  %v630_v50 = vld [vmem:[#allocation2 + $0x1c] sm:$0x1] }
  0xa7   : > { %v1114_v51 = vrot.slane %v1081_v47, 5  ;;  %v1083_v52 = vld [vmem:[#allocation2 + $0x14] sm:$0x1]  ;;  %v669_v54 = vsel %vm3027_vm10, %v2257_v38, %v668_v45  ;;  %v672_v56 = vrot.slane %v630_v50, 5  ;;  %v1084_v58 = vld [vmem:[#allocation2 + $0x18] sm:$0xe] }
  0xa8   : > { %v665_v55 = vsel %vm3027_vm10, %v2256_v39, %v664_v1  ;;  %v1118_v57 = vrot.slane %v1083_v52, 5  ;;  %v1085_v59 = vld [vmem:[#allocation2 + $0x1c] sm:$0x1]  ;;  %694 = vrot.lane.b32.xlu1 %v669_v54, %s2715_s24  ;;  %v2265_v61 = vrot.slane %v1084_v58, 9  ;;  %v1086_v63 = vld [vmem:[#allocation2 + $0x20] sm:$0xe] }
  0xa9   : > { %692 = vrot.lane.b32.xlu0 %v665_v55, %s2715_s24  ;;  %v1115_v60 = vsel %vm3027_vm10, %v2263_v40, %v1114_v51  ;;  %v1122_v62 = vrot.slane %v1085_v59, 5  ;;  %v1087_v0 = vld [vmem:[#allocation2 + $0x24] sm:$0x1]  ;;  %472 = vst.msk [vmem:[#allocation2 + $0x38] sm:$0xe] %vm458_vm8, %v437_v53  ;;  %v673_v2 = vsel %vm3027_vm10, %v2258_v46, %v672_v56  ;;  %v2266_v4 = vrot.slane %v1086_v63, 9 }
  0xaa   : > { %v1119_v3 = vsel %vm3027_vm10, %v2264_v48, %v1118_v57  ;;  %v1126_v5 = vrot.slane %v1087_v0, 5  ;;  %v727_v8 = vld [vmem:[#allocation2 + $0x10] sm:$0xe]  ;;  %v728_v9 = vld [vmem:[#allocation2 + $0x14] sm:$0x3]  ;;  %vm1071_vm3 = vcmask 257216  }
  0xab   : > { %v1123_v6 = vsel %vm3027_vm10, %v2265_v61, %v1122_v62  ;;  %v779_v10 = vshrl.u32 %v727_v8, 16  ;;  %v782_v11 = vshll.u32 %v727_v8, 16  ;;  %v788_v12 = vshrl.u32 %v728_v9, 16  ;;  %v725_v13 = vld [vmem:[#allocation2 + $0x8] sm:$0xe]  ;;  %s3461_s29 = scalar_lea.vmem [#allocation12], %s2239_s8 }
  0xac   : > { %v1127_v15 = vsel %vm3027_vm10, %v2266_v4, %v1126_v5  ;;  %v791_v16 = vshll.u32 %v728_v9, 16  ;;  %v726_v18 = vld [vmem:[#allocation2 + $0xc] sm:$0x3]  ;;  %v761_v19 = vshrl.u32 %v725_v13, 16  ;;  %v764_v20 = vshll.u32 %v725_v13, 16  ;;  %696 = vrot.lane.b32.xlu1 %v673_v2, %s2715_s24  ;;  %s2324_s12 = sshll.u32 %s2777_s22, 9 }
  0xad   : > { %1144 = vrot.lane.b32.xlu0 %v1115_v60, %s2717_s13  ;;  %v781_v21 = vrot.slane %v779_v10, 5  ;;  %v784_v22 = vrot.slane %v782_v11, 6  ;;  %v790_v23 = vrot.slane %v788_v12, 5  ;;  %v770_v24 = vshrl.u32 %v726_v18, 16  ;;  %v919_v26 = vld [vmem:[#allocation2 + $0x8] sm:$0xf]  ;;  %s3487_s9 = scalar_lea.hbm %s3584_s4, %s2324_s12 }
  0xae   : > { %v793_v27 = vrot.slane %v791_v16, 6  ;;  %v763_v28 = vrot.slane %v761_v19, 5  ;;  %v766_v29 = vrot.slane %v764_v20, 6  ;;  %v773_v31 = vshll.u32 %v726_v18, 16  ;;  %v920_v34 = vld [vmem:[#allocation2 + $0xc] sm:$0x1] }
  0xaf   : > { %v785_v35 = vor.u32 %v784_v22, %v781_v21  ;;  %v772_v36 = vrot.slane %v770_v24, 5  ;;  %v936_v14 = vshrl.u32 %v919_v26, 16  ;;  %v939_v38 = vshll.u32 %v919_v26, 16  ;;  %v729_v39 = vld [vmem:[#allocation2 + $0x18] sm:$0xe]  ;;  %s2082_s23 = sshll.u32 %s3461_s29, 4  ;;  %s3493_s23 = int_to_ptr.vmem [resolvable:$true] %s2082_s23 }
  0xb0   : > { %v794_v40 = vor.u32 %v793_v27, %v790_v23  ;;  %v767_v41 = vor.u32 %v766_v29, %v763_v28  ;;  %v775_v42 = vrot.slane %v773_v31, 6  ;;  %v945_v43 = vshll.u32 %v920_v34, 16  ;;  %v730_v44 = vld [vmem:[#allocation2 + $0x1c] sm:$0x3]  ;;  %1146 = vrot.lane.b32.xlu1 %v1119_v3, %s2717_s13  ;;  %v923_v48 = vld [vmem:[#allocation2 + $0x18] sm:$0xf] }
  0xb1   : > { %1148 = vrot.lane.b32.xlu0 %v1123_v6, %s2717_s13  ;;  %v786_v45 = vrot.slane %v785_v35, 4  ;;  %v938_v1 = vrot.slane %v936_v14, 4  ;;  %v941_v46 = vrot.slane %v939_v38, 5  ;;  %v797_v47 = vshrl.u32 %v729_v39, 16  ;;  %v924_v55 = vld [vmem:[#allocation2 + $0x1c] sm:$0x1] }
  0xb2   : > { %v768_v50 = vrot.slane %v767_v41, 4  ;;  %v776_v51 = vor.u32 %v775_v42, %v772_v36  ;;  %v947_v52 = vrot.slane %v945_v43, 5  ;;  %v800_v54 = vshll.u32 %v729_v39, 16  ;;  %v921_v60 = vld [vmem:[#allocation2 + $0x10] sm:$0xf]  ;;  %s2064_s15 = scalar_lea.sflag [#allocation6], %s2953_s17 }
  0xb3   : > { %v795_v56 = vsel %vm3039_vm11, %v786_v45, %v794_v40  ;;  %v942_v57 = vor.u32 %v941_v46, %v938_v1  ;;  %v799_v58 = vrot.slane %v797_v47, 5  ;;  %v806_v59 = vshrl.u32 %v730_v44, 16  ;;  %v922_v3 = vld [vmem:[#allocation2 + $0x14] sm:$0x1]  ;;  %v925_v6 = vld [vmem:[#allocation2 + $0x20] sm:$0xf] }
  0xb4   : > { %v777_v61 = vsel %vm3039_vm11, %v768_v50, %v776_v51  ;;  %v802_v63 = vrot.slane %v800_v54, 6  ;;  %v809_v0 = vshll.u32 %v730_v44, 16  ;;  %v964_v2 = vshrl.u32 %v923_v48, 16  ;;  %1150 = vrot.lane.b32.xlu1 %v1127_v15, %s2717_s13  ;;  %v926_v16 = vld [vmem:[#allocation2 + $0x24] sm:$0x1] }
  0xb5   : > { %890 = vrot.lane.b32.xlu0 %v795_v56, %s2716_s26  ;;  %v943_v4 = vrot.slane %v942_v57, 4  ;;  %v808_v5 = vrot.slane %v806_v59, 5  ;;  %v967_v8 = vshll.u32 %v923_v48, 16  ;;  %v973_v9 = vshll.u32 %v924_v55, 16  ;;  %v1179_v22 = vld [vmem:[#allocation2 + $0x10] sm:$0xe] }
  0xb6   : > { %v803_v10 = vor.u32 %v802_v63, %v799_v58  ;;  %v811_v11 = vrot.slane %v809_v0, 6  ;;  %v966_v12 = vrot.slane %v964_v2, 4  ;;  %v950_v13 = vshrl.u32 %v921_v60, 16  ;;  %v1180_v34 = vld [vmem:[#allocation2 + $0x14] sm:$0x3] }
  0xb7   : > { %v948_v18 = vsel %vm3109_vm14, %v943_v4, %v947_v52  ;;  %v969_v19 = vrot.slane %v967_v8, 5  ;;  %v975_v20 = vrot.slane %v973_v9, 5  ;;  %v953_v21 = vshll.u32 %v921_v60, 16  ;;  %v1177_v43 = vld [vmem:[#allocation2 + $0x8] sm:$0xe] }
  0xb8   : > { %v804_v15 = vrot.slane %v803_v10, 4  ;;  %v812_v23 = vor.u32 %v811_v11, %v808_v5  ;;  %v952_v24 = vrot.slane %v950_v13, 4  ;;  %v959_v26 = vshll.u32 %v922_v3, 16  ;;  %888 = vrot.lane.b32.xlu1 %v777_v61, %s2716_s26  ;;  %v1178_v47 = vld [vmem:[#allocation2 + $0xc] sm:$0x3] }
  0xb9   : > { %1047 = vrot.lane.b32.xlu0 %v948_v18, %s2718_s14  ;;  %v970_v27 = vor.u32 %v969_v19, %v966_v12  ;;  %v955_v28 = vrot.slane %v953_v21, 5  ;;  %v978_v29 = vshrl.u32 %v925_v6, 16  ;;  %v981_v31 = vshll.u32 %v925_v6, 16  ;;  %v1183_v58 = vld [vmem:[#allocation2 + $0x20] sm:$0xe] }
  0xba   : > { %v813_v35 = vsel %vm3039_vm11, %v804_v15, %v812_v23  ;;  %v961_v36 = vrot.slane %v959_v26, 5  ;;  %v987_v14 = vshll.u32 %v926_v16, 16  ;;  %v1212_v38 = vshrl.u32 %v1179_v22, 16  ;;  %v1184_v0 = vld [vmem:[#allocation2 + $0x24] sm:$0x3] }
  0xbb   : > { %v971_v39 = vrot.slane %v970_v27, 4  ;;  %v956_v40 = vor.u32 %v955_v28, %v952_v24  ;;  %v980_v41 = vrot.slane %v978_v29, 4  ;;  %v983_v42 = vrot.slane %v981_v31, 5  ;;  %v1181_v8 = vld [vmem:[#allocation2 + $0x18] sm:$0xe] }
  0xbc   : > { %v989_v44 = vrot.slane %v987_v14, 5  ;;  %v1214_v45 = vrot.slane %v1212_v38, 5  ;;  %v1215_v1 = vshll.u32 %v1179_v22, 16  ;;  %v1221_v46 = vshrl.u32 %v1180_v34, 16  ;;  %892 = vrot.lane.b32.xlu1 %v813_v35, %s2716_s26  ;;  %v1182_v22 = vld [vmem:[#allocation2 + $0x1c] sm:$0x3] }
  0xbd   : > { %v976_v48 = vsel %vm3109_vm14, %v971_v39, %v975_v20  ;;  %v957_v50 = vrot.slane %v956_v40, 4  ;;  %v984_v51 = vor.u32 %v983_v42, %v980_v41  ;;  %v1224_v52 = vshll.u32 %v1180_v34, 16  ;;  %v1373_v28 = vld [vmem:[#allocation2 + $0x18] sm:$0xf]  ;;  %v1371_v41 = vld [vmem:[#allocation2 + $0x10] sm:$0xf] }
  0xbe   : > { %1051 = vrot.lane.b32.xlu0 %v976_v48, %s2718_s14  ;;  %v1217_v54 = vrot.slane %v1215_v1, 6  ;;  %v1223_v55 = vrot.slane %v1221_v46, 5  ;;  %v1194_v56 = vshrl.u32 %v1177_v43, 16  ;;  %v1197_v57 = vshll.u32 %v1177_v43, 16  ;;  %v1372_v1 = vld [vmem:[#allocation2 + $0x14] sm:$0x1] }
  0xbf   : > { %v962_v59 = vsel %vm3109_vm14, %v957_v50, %v961_v36  ;;  %v985_v60 = vrot.slane %v984_v51, 4  ;;  %v1226_v61 = vrot.slane %v1224_v52, 6  ;;  %v1203_v63 = vshrl.u32 %v1178_v47, 16  ;;  %v1374_v36 = vld [vmem:[#allocation2 + $0x1c] sm:$0x1] }
  0xc0   : > { %v1218_v2 = vor.u32 %v1217_v54, %v1214_v45  ;;  %v1196_v3 = vrot.slane %v1194_v56, 5  ;;  %v1199_v4 = vrot.slane %v1197_v57, 6  ;;  %v1206_v5 = vshll.u32 %v1178_v47, 16  ;;  %1049 = vrot.lane.b32.xlu1 %v962_v59, %s2718_s14  ;;  %v1377_v51 = vld [vmem:[#allocation2 + $0x28] sm:$0xf] }
  0xc1   : > { %v990_v9 = vsel %vm3109_vm14, %v985_v60, %v989_v44  ;;  %v1227_v6 = vor.u32 %v1226_v61, %v1223_v55  ;;  %v1205_v10 = vrot.slane %v1203_v63, 5  ;;  %v1248_v11 = vshrl.u32 %v1183_v58, 16  ;;  %v1378_v57 = vld [vmem:[#allocation2 + $0x2c] sm:$0x1]  ;;  %v1375_v63 = vld [vmem:[#allocation2 + $0x20] sm:$0xf] }
  0xc2   : > { %v1219_v12 = vrot.slane %v1218_v2, 4  ;;  %v1200_v13 = vor.u32 %v1199_v4, %v1196_v3  ;;  %v1208_v16 = vrot.slane %v1206_v5, 6  ;;  %v1251_v18 = vshll.u32 %v1183_v58, 16 }
  0xc3   : > { %v1250_v19 = vrot.slane %v1248_v11, 5  ;;  %v1257_v20 = vshrl.u32 %v1184_v0, 16  ;;  %v1260_v21 = vshll.u32 %v1184_v0, 16  ;;  %v1230_v15 = vshrl.u32 %v1181_v8, 16  ;;  %v1376_v0 = vld [vmem:[#allocation2 + $0x24] sm:$0x1] }
  0xc4   : > { %v1228_v23 = vsel %vm3039_vm11, %v1219_v12, %v1227_v6  ;;  %v1201_v24 = vrot.slane %v1200_v13, 4  ;;  %v1209_v26 = vor.u32 %v1208_v16, %v1205_v10  ;;  %v1253_v27 = vrot.slane %v1251_v18, 6  ;;  %1053 = vrot.lane.b32.xlu1 %v990_v9, %s2718_s14  ;;  %v1535_v12 = vld [vmem:[#allocation2 + $0x1c] sm:$0x1]  ;;  %v3139_v13 = vld [vmem:[#allocation2] sm:$0xf] }
  0xc5   : > { %v1259_v29 = vrot.slane %v1257_v20, 5  ;;  %v1262_v31 = vrot.slane %v1260_v21, 6  ;;  %v1232_v34 = vrot.slane %v1230_v15, 5  ;;  %v1233_v35 = vshll.u32 %v1181_v8, 16  ;;  %v1534_v8 = vld [vmem:[#allocation2 + $0x18] sm:$0xe] }
  0xc6   : > { %v1210_v14 = vsel %vm3039_vm11, %v1201_v24, %v1209_v26  ;;  %v1254_v38 = vor.u32 %v1253_v27, %v1250_v19  ;;  %v1239_v39 = vshrl.u32 %v1182_v22, 16  ;;  %v1242_v40 = vshll.u32 %v1182_v22, 16  ;;  %v1532_v21 = vld [vmem:[#allocation2 + $0x10] sm:$0xe]  ;;  %v1533_v26 = vld [vmem:[#allocation2 + $0x14] sm:$0x1] }
  0xc7   : > { %1337 = vrot.lane.b32.xlu0 %v1210_v14, %s2719_s11  ;;  %v1263_v42 = vor.u32 %v1262_v31, %v1259_v29  ;;  %v1235_v43 = vrot.slane %v1233_v35, 6  ;;  %v1402_v44 = vshrl.u32 %v1373_v28, 16  ;;  %v1405_v45 = vshll.u32 %v1373_v28, 16 }
  0xc8   : > { %v1255_v46 = vrot.slane %v1254_v38, 4  ;;  %v1241_v47 = vrot.slane %v1239_v39, 5  ;;  %v1244_v48 = vrot.slane %v1242_v40, 6  ;;  %v1411_v50 = vshll.u32 %v1374_v36, 16  ;;  %1339 = vrot.lane.b32.xlu1 %v1228_v23, %s2719_s11  ;;  %v3149_v39 = vld [vmem:[#allocation2 + $0x2c] sm:$0x1] }
  0xc9   : > { %v1236_v52 = vor.u32 %v1235_v43, %v1232_v34  ;;  %v1404_v54 = vrot.slane %v1402_v44, 4  ;;  %v1407_v55 = vrot.slane %v1405_v45, 5  ;;  %v1388_v56 = vshrl.u32 %v1371_v41, 16  ;;  %v3147_v34 = vld [vmem:[#allocation2 + $0x28] sm:$0xe] }
  0xca   : > { %v1264_v58 = vsel %vm3039_vm11, %v1255_v46, %v1263_v42  ;;  %v1245_v59 = vor.u32 %v1244_v48, %v1241_v47  ;;  %v1413_v60 = vrot.slane %v1411_v50, 5  ;;  %v1391_v61 = vshll.u32 %v1371_v41, 16  ;;  %v1631_v43 = vld [vmem:[#allocation2 + $0x18] sm:$0xe]  ;;  %v1536_v47 = vld [vmem:[#allocation2 + $0x20] sm:$0xe] }
  0xcb   : > { %v1237_v2 = vrot.slane %v1236_v52, 4  ;;  %v1408_v3 = vor.u32 %v1407_v55, %v1404_v54  ;;  %v1390_v4 = vrot.slane %v1388_v56, 4  ;;  %v1397_v5 = vshll.u32 %v1372_v1, 16  ;;  %v1632_v48 = vld [vmem:[#allocation2 + $0x1c] sm:$0x3] }
  0xcc   : > { %v1393_v9 = vrot.slane %v1391_v61, 5  ;;  %v1430_v6 = vshrl.u32 %v1377_v51, 16  ;;  %v1433_v10 = vshll.u32 %v1377_v51, 16  ;;  %v1439_v11 = vshll.u32 %v1378_v57, 16  ;;  %1343 = vrot.lane.b32.xlu1 %v1264_v58, %s2719_s11  ;;  %v1537_v56 = vld [vmem:[#allocation2 + $0x24] sm:$0x1] }
  0xcd   : > { %v1246_v16 = vsel %vm3039_vm11, %v1237_v2, %v1245_v59  ;;  %v1409_v18 = vrot.slane %v1408_v3, 4  ;;  %v1399_v19 = vrot.slane %v1397_v5, 5  ;;  %v1416_v20 = vshrl.u32 %v1375_v63, 16  ;;  %v1629_v57 = vld [vmem:[#allocation2 + $0x10] sm:$0xe]  ;;  %v2477_v61 = vld [vmem:[#allocation10] sm:$0xff]  }
  0xce   : > { %1341 = vrot.lane.b32.xlu0 %v1246_v16, %s2719_s11  ;;  %v1394_v22 = vor.u32 %v1393_v9, %v1390_v4  ;;  %v1432_v15 = vrot.slane %v1430_v6, 4  ;;  %v1435_v23 = vrot.slane %v1433_v10, 5  ;;  %v1441_v24 = vrot.slane %v1439_v11, 5  ;;  %v633_v4 = vld [vmem:[#allocation2 + $0x28] sm:$0xe]  ;;  %2353 = vmatprep.subr.bf16.mxu0 %v2477_v61 }
  0xcf   : > { %v1414_v27 = vsel %vm3109_vm14, %v1409_v18, %v1413_v60  ;;  %v1418_v28 = vrot.slane %v1416_v20, 4  ;;  %v1419_v29 = vshll.u32 %v1375_v63, 16  ;;  %v1425_v31 = vshll.u32 %v1376_v0, 16  ;;  %v1630_v60 = vld [vmem:[#allocation2 + $0x14] sm:$0x3]  ;;  %2371 = vmatprep.subr.bf16.mxu1 %v2477_v61  ;;  %2354 = vmatpush3.bf16.msra.mxu0 %v2477_v61  ;;  %v2478_v20 = vld [vmem:[#allocation10 + $0x8] sm:$0xff]  }
  0xd0   : > { %v1395_v35 = vrot.slane %v1394_v22, 4  ;;  %v1436_v36 = vor.u32 %v1435_v23, %v1432_v15  ;;  %v2272_v14 = vrot.slane %v1534_v8, 9  ;;  %v1570_v38 = vrot.slane %v1535_v12, 5  ;;  %1501 = vrot.lane.b32.xlu1 %v1414_v27, %s2720_s30  ;;  %v634_v10 = vld [vmem:[#allocation2 + $0x2c] sm:$0x1]  ;;  %2376 = vmatpush3.bf16.msra.mxu1 %v2477_v61 }
  0xd1   : > { %v1421_v40 = vrot.slane %v1419_v29, 5  ;;  %v2271_v41 = vrot.slane %v1532_v21, 9  ;;  %v1566_v42 = vrot.slane %v1533_v26, 5  ;;  %v496_v44 = vshrl.u32 %v3139_v13, 16  ;;  %2355 = vmatprep.subr.bf16.mxu0 %v2478_v20  ;;  %2372 = vmatprep.subr.bf16.mxu1 %v2478_v20 }
  0xd2   : > { %v1400_v45 = vsel %vm3109_vm14, %v1395_v35, %v1399_v19  ;;  %v1437_v1 = vrot.slane %v1436_v36, 4  ;;  %v1427_v46 = vrot.slane %v1425_v31, 5  ;;  %v3158_v50 = vpack.c.bf16 %v390_v17, %v390_v17  ;;  %v3172_v19 = vld [vmem:[#allocation2 + $0x20] sm:$0xe]  ;;  %v1636_v31 = vld [vmem:[#allocation2 + $0x2c] sm:$0x3] }
  0xd3   : > { %1499 = vrot.lane.b32.xlu0 %v1400_v45, %s2720_s30  ;;  %v1422_v51 = vor.u32 %v1421_v40, %v1418_v28  ;;  %v1571_v52 = vsel %vm3027_vm10, %v2272_v14, %v1570_v38  ;;  %v1567_v54 = vsel %vm3027_vm10, %v2271_v41, %v1566_v42  ;;  %v2274_v55 = vrot.slane %v3147_v34, 9  ;;  %v1633_v42 = vld [vmem:[#allocation2 + $0x20] sm:$0xe]  ;;  %2356 = vmatpush3.bf16.msra.mxu0 %v2478_v20 }
  0xd4   : > { %v1442_v58 = vsel %vm3109_vm14, %v1437_v1, %v1441_v24  ;;  %v1578_v32 = vrot.slane %v3149_v39, 5  ;;  %v1664_v17 = vshrl.u32 %v1631_v43, 16  ;;  %v1667_v59 = vshll.u32 %v1631_v43, 16  ;;  %v1635_v24 = vld [vmem:[#allocation2 + $0x28] sm:$0xe]  ;;  %2377 = vmatpush3.bf16.msra.mxu1 %v2478_v20 }
  0xd5   : > { %1505 = vrot.lane.b32.xlu1 %v1442_v58, %s2720_s30  ;;  %v1423_v63 = vrot.slane %v1422_v51, 4  ;;  %v2273_v0 = vrot.slane %v1536_v47, 9  ;;  %v1673_v2 = vshrl.u32 %v1632_v48, 16  ;;  %v1676_v3 = vshll.u32 %v1632_v48, 16  ;;  %v632_v1 = vld [vmem:[#allocation2 + $0x24] sm:$0x1] }
  0xd6   : > { %v1574_v5 = vrot.slane %v1537_v56, 5  ;;  %v1666_v8 = vrot.slane %v1664_v17, 5  ;;  %v1669_v9 = vrot.slane %v1667_v59, 6  ;;  %v1646_v6 = vshrl.u32 %v1629_v57, 16  ;;  %v1634_v48 = vld [vmem:[#allocation2 + $0x24] sm:$0x3] }
  0xd7   : > { %v1428_v11 = vsel %vm3109_vm14, %v1423_v63, %v1427_v46  ;;  %v1675_v12 = vrot.slane %v1673_v2, 5  ;;  %v1678_v16 = vrot.slane %v1676_v3, 6  ;;  %v1649_v18 = vshll.u32 %v1629_v57, 16  ;;  %v2479_v57 = vld [vmem:[#allocation10 + $0x10] sm:$0xff]   ;;  %v2480_v2 = vld [vmem:[#allocation10 + $0x18] sm:$0xff]  }
  0xd8   : > { %1503 = vrot.lane.b32.xlu0 %v1428_v11, %s2720_s30  ;;  %v1670_v21 = vor.u32 %v1669_v9, %v1666_v8  ;;  %v1648_v22 = vrot.slane %v1646_v6, 5  ;;  %v1655_v15 = vshrl.u32 %v1630_v60, 16  ;;  %v1658_v23 = vshll.u32 %v1630_v60, 16  ;;  %v733_v59 = vld [vmem:[#allocation2 + $0x28] sm:$0xe]  ;;  %2357 = vmatprep.subr.bf16.mxu0 %v2479_v57 }
  0xd9   : > { %1598 = vrot.lane.b32.xlu1 %v1571_v52, %s2721_s28  ;;  %v1679_v26 = vor.u32 %v1678_v16, %v1675_v12  ;;  %v1651_v27 = vrot.slane %v1649_v18, 6  ;;  %v2260_v28 = vrot.slane %v633_v4, 9  ;;  %v680_v29 = vrot.slane %v634_v10, 5  ;;  %2373 = vmatprep.subr.bf16.mxu1 %v2479_v57  ;;  %v734_v9 = vld [vmem:[#allocation2 + $0x2c] sm:$0x3] }
  0xda   : > { %v1579_v34 = vsel %vm3027_vm10, %v2274_v55, %v1578_v32  ;;  %v1671_v35 = vrot.slane %v1670_v21, 4  ;;  %v1657_v36 = vrot.slane %v1655_v15, 5  ;;  %v1660_v14 = vrot.slane %v1658_v23, 6  ;;  %2358 = vmatpush3.bf16.msra.mxu0 %v2479_v57  ;;  %v731_v20 = vld [vmem:[#allocation2 + $0x20] sm:$0xe]  ;;  %2378 = vmatpush3.bf16.msra.mxu1 %v2479_v57 }
  0xdb   : > { %v1575_v38 = vsel %vm3027_vm10, %v2273_v0, %v1574_v5  ;;  %v1652_v39 = vor.u32 %v1651_v27, %v1648_v22  ;;  %v2259_v40 = vrot.slane %v3172_v19, 9  ;;  %v1700_v41 = vshrl.u32 %v1635_v24, 16  ;;  %2359 = vmatprep.subr.bf16.mxu0 %v2480_v2  ;;  %v637_v19 = vld [vmem:[#allocation2 + $0x38] sm:$0xe]  ;;  %2374 = vmatprep.subr.bf16.mxu1 %v2480_v2 }
  0xdc   : > { %1596 = vrot.lane.b32.xlu0 %v1567_v54, %s2721_s28  ;;  %v1680_v43 = vsel %vm3039_vm11, %v1671_v35, %v1679_v26  ;;  %v681_v45 = vsel %vm3027_vm10, %v2260_v28, %v680_v29  ;;  %v1703_v46 = vshll.u32 %v1635_v24, 16  ;;  %v1709_v47 = vshrl.u32 %v1636_v31, 16  ;;  %v732_v24 = vld [vmem:[#allocation2 + $0x24] sm:$0x3] }
  0xdd   : > { %1602 = vrot.lane.b32.xlu1 %v1579_v34, %s2721_s28  ;;  %v1653_v51 = vrot.slane %v1652_v39, 4  ;;  %v1661_v52 = vor.u32 %v1660_v14, %v1657_v36  ;;  %v1702_v55 = vrot.slane %v1700_v41, 5  ;;  %v1712_v56 = vshll.u32 %v1636_v31, 16 }
  0xde   : > { %v1705_v58 = vrot.slane %v1703_v46, 6  ;;  %v1711_v32 = vrot.slane %v1709_v47, 5  ;;  %v1682_v54 = vshrl.u32 %v1633_v42, 16  ;;  %v1685_v17 = vshll.u32 %v1633_v42, 16  ;;  %2360 = vmatpush3.bf16.msra.mxu0 %v2480_v2  ;;  %2379 = vmatpush3.bf16.msra.mxu1 %v2480_v2 }
  0xdf   : > { %v676_v60 = vrot.slane %v632_v1, 5  ;;  %v1714_v61 = vrot.slane %v1712_v56, 6  ;;  %v1691_v63 = vshrl.u32 %v1634_v48, 16  ;;  %v1694_v0 = vshll.u32 %v1634_v48, 16 }
  0xe0   : > { %1600 = vrot.lane.b32.xlu0 %v1575_v38, %s2721_s28  ;;  %v1706_v3 = vor.u32 %v1705_v58, %v1702_v55  ;;  %v1684_v4 = vrot.slane %v1682_v54, 5  ;;  %v1687_v5 = vrot.slane %v1685_v17, 6  ;;  %v438_v8 = vrot.slane %v437_v53, 4 }
  0xe1   : > { %1791 = vrot.lane.b32.xlu1 %v1680_v43, %s2722_s10  ;;  %v1662_v6 = vsel %vm3039_vm11, %v1653_v51, %v1661_v52  ;;  %v1715_v10 = vor.u32 %v1714_v61, %v1711_v32  ;;  %v1693_v11 = vrot.slane %v1691_v63, 5  ;;  %v1696_v12 = vrot.slane %v1694_v0, 6 }
  0xe2   : > { %v1707_v16 = vrot.slane %v1706_v3, 4  ;;  %v1688_v18 = vor.u32 %v1687_v5, %v1684_v4  ;;  %473 = vst.msk [vmem:[#allocation2 + $0x3c] sm:$0x1] %vm460_vm9, %v438_v8  ;;  %v435_v37 = vrot.slane %v3158_v50, 7  ;;  %v833_v53 = vshrl.u32 %v733_v59, 16 }
  0xe3   : > { %v677_v21 = vsel %vm3027_vm10, %v2259_v40, %v676_v60  ;;  %v836_v22 = vshll.u32 %v733_v59, 16  ;;  %v842_v15 = vshrl.u32 %v734_v9, 16  ;;  %v845_v23 = vshll.u32 %v734_v9, 16  ;;  %v737_v50 = vld [vmem:[#allocation2 + $0x38] sm:$0xe] }
  0xe4   : > { %1789 = vrot.lane.b32.xlu0 %v1662_v6, %s2722_s10  ;;  %v1689_v26 = vrot.slane %v1688_v18, 4  ;;  %v1697_v27 = vor.u32 %v1696_v12, %v1693_v11  ;;  %v436_v28 = vrot.slane %v435_v37, 4  ;;  %470 = vst.msk [vmem:[#allocation2 + $0x30] sm:$0xe] %vm458_vm8, %v435_v37  ;;  %v835_v29 = vrot.slane %v833_v53, 5 }
  0xe5   : > { %700 = vrot.lane.b32.xlu1 %v681_v45, %s2715_s24  ;;  %v838_v31 = vrot.slane %v836_v22, 6  ;;  %v844_v34 = vrot.slane %v842_v15, 5  ;;  %v847_v35 = vrot.slane %v845_v23, 6  ;;  %v815_v36 = vshrl.u32 %v731_v20, 16  ;;  %v927_v53 = vld [vmem:[#allocation2 + $0x28] sm:$0xf] }
  0xe6   : > { %v1716_v14 = vsel %vm3039_vm11, %v1707_v16, %v1715_v10  ;;  %471 = vst.msk [vmem:[#allocation2 + $0x34] sm:$0x1] %vm460_vm9, %v436_v28  ;;  %v818_v38 = vshll.u32 %v731_v20, 16  ;;  %v824_v39 = vshrl.u32 %v732_v24, 16  ;;  %v827_v40 = vshll.u32 %v732_v24, 16 }
  0xe7   : > { %v2262_v41 = vrot.slane %v637_v19, 9  ;;  %v839_v42 = vor.u32 %v838_v31, %v835_v29  ;;  %v817_v43 = vrot.slane %v815_v36, 5  ;;  %v869_v1 = vshrl.u32 %v737_v50, 16  ;;  %v928_v29 = vld [vmem:[#allocation2 + $0x2c] sm:$0x1] }
  0xe8   : > { %698 = vrot.lane.b32.xlu0 %v677_v21, %s2715_s24  ;;  %v820_v45 = vrot.slane %v818_v38, 6  ;;  %v826_v46 = vrot.slane %v824_v39, 5  ;;  %v829_v47 = vrot.slane %v827_v40, 6  ;;  %v872_v48 = vshll.u32 %v737_v50, 16  ;;  %v931_v40 = vld [vmem:[#allocation2 + $0x38] sm:$0xf] }
  0xe9   : > { %1795 = vrot.lane.b32.xlu1 %v1716_v14, %s2722_s10  ;;  %v1698_v51 = vsel %vm3039_vm11, %v1689_v26, %v1697_v27  ;;  %v638_v52 = vld [vmem:[#allocation2 + $0x3c] sm:$0x1]  ;;  %v840_v55 = vrot.slane %v839_v42, 4  ;;  %v848_v56 = vor.u32 %v847_v35, %v844_v34  ;;  %v871_v58 = vrot.slane %v869_v1, 5 }
  0xea   : > { %v738_v57 = vld [vmem:[#allocation2 + $0x3c] sm:$0x3]  ;;  %v688_v32 = vrot.slane %v638_v52, 5  ;;  %v821_v54 = vor.u32 %v820_v45, %v817_v43  ;;  %v830_v17 = vor.u32 %v829_v47, %v826_v46  ;;  %v874_v59 = vrot.slane %v872_v48, 6 }
  0xeb   : > { %v635_v60 = vld [vmem:[#allocation2 + $0x30] sm:$0xe]  ;;  %v878_v61 = vshrl.u32 %v738_v57, 16  ;;  %v881_v63 = vshll.u32 %v738_v57, 16  ;;  %v849_v6 = vsel %vm3039_vm11, %v840_v55, %v848_v56  ;;  %v992_v39 = vshrl.u32 %v927_v53, 16 }
  0xec   : > { %v735_v0 = vld [vmem:[#allocation2 + $0x30] sm:$0xe]  ;;  %1793 = vrot.lane.b32.xlu0 %v1698_v51, %s2722_s10  ;;  %v689_v2 = vsel %vm3027_vm10, %v2262_v41, %v688_v32  ;;  %v2261_v3 = vrot.slane %v635_v60, 9  ;;  %v822_v4 = vrot.slane %v821_v54, 4  ;;  %v875_v5 = vor.u32 %v874_v59, %v871_v58  ;;  %v932_v45 = vld [vmem:[#allocation2 + $0x3c] sm:$0x1] }
  0xed   : > { %v929_v8 = vld [vmem:[#allocation2 + $0x30] sm:$0xf]  ;;  %704 = vrot.lane.b32.xlu1 %v689_v2, %s2715_s24  ;;  %v636_v9 = vld [vmem:[#allocation2 + $0x34] sm:$0x1]  ;;  %v880_v10 = vrot.slane %v878_v61, 5  ;;  %v883_v11 = vrot.slane %v881_v63, 6 }
  0xee   : > { %v736_v12 = vld [vmem:[#allocation2 + $0x34] sm:$0x3]  ;;  %v684_v16 = vrot.slane %v636_v9, 5  ;;  %v831_v18 = vsel %vm3039_vm11, %v822_v4, %v830_v17  ;;  %v876_v19 = vrot.slane %v875_v5, 4  ;;  %v851_v37 = vshrl.u32 %v735_v0, 16 }
  0xef   : > { %v884_v20 = vor.u32 %v883_v11, %v880_v10  ;;  %v854_v21 = vshll.u32 %v735_v0, 16  ;;  %v860_v22 = vshrl.u32 %v736_v12, 16  ;;  %v863_v15 = vshll.u32 %v736_v12, 16  ;;  %v930_v23 = vld [vmem:[#allocation2 + $0x34] sm:$0x1] }
  0xf0   : > { %v685_v24 = vsel %vm3027_vm10, %v2261_v3, %v684_v16  ;;  %v853_v26 = vrot.slane %v851_v37, 5  ;;  %v1006_v27 = vshrl.u32 %v929_v8, 16  ;;  %v1009_v28 = vshll.u32 %v929_v8, 16  ;;  %v1090_v57 = vld [vmem:[#allocation2 + $0x30] sm:$0xe] }
  0xf1   : > { %702 = vrot.lane.b32.xlu0 %v685_v24, %s2715_s24  ;;  %896 = vrot.lane.b32.xlu1 %v849_v6, %s2716_s26  ;;  %v885_v50 = vsel %vm3039_vm11, %v876_v19, %v884_v20  ;;  %v856_v31 = vrot.slane %v854_v21, 6  ;;  %v862_v34 = vrot.slane %v860_v22, 5  ;;  %v865_v35 = vrot.slane %v863_v15, 6  ;;  %v1088_v58 = vld [vmem:[#allocation2 + $0x28] sm:$0xe]  ;;  %s2600_s24 = scalar_lea.vmem %s3493_s23, 512 }
  0xf2   : > { %v1008_v36 = vrot.slane %v1006_v27, 4  ;;  %v1011_v14 = vrot.slane %v1009_v28, 5  ;;  %v1015_v38 = vshll.u32 %v930_v23, 16  ;;  %v995_v43 = vshll.u32 %v927_v53, 16  ;;  %v1089_v32 = vld [vmem:[#allocation2 + $0x2c] sm:$0x1]  ;;  %p2601_p1 = scmp.ne.s32.totalorder %s3493_s23, %s2600_s24 }
  0xf3   : > { %v857_v41 = vor.u32 %v856_v31, %v853_v26  ;;  %v866_v42 = vor.u32 %v865_v35, %v862_v34  ;;  %v1001_v1 = vshll.u32 %v928_v29, 16  ;;  %v994_v48 = vrot.slane %v992_v39, 4  ;;  %v1091_v63 = vld [vmem:[#allocation2 + $0x34] sm:$0x1]  ;;  %v3227_v4 = vld [vmem:[#allocation2 + $0x38] sm:$0xe] }
  0xf4   : > { %v1012_v46 = vor.u32 %v1011_v14, %v1008_v36  ;;  %v1017_v47 = vrot.slane %v1015_v38, 5  ;;  %v392_v51 = vmax.f32 %v3066_v30, 0.0  ;;  %v997_v55 = vrot.slane %v995_v43, 5  ;;  %v3229_v5 = vld [vmem:[#allocation2 + $0x3c] sm:$0x1]  ;;  %p2602_p4 = pnand %p2601_p1, %p2902_p6 }
  0xf5   : > { %894 = vrot.lane.b32.xlu0 %v831_v18, %s2716_s26  ;;  %900 = vrot.lane.b32.xlu1 %v885_v50, %s2716_s26  ;;  %v858_v52 = vrot.slane %v857_v41, 4  ;;  %v1020_v56 = vshrl.u32 %v931_v40, 16  ;;  %v499_v54 = vshll.u32 %v3139_v13, 16  ;;  %v1023_v60 = vshll.u32 %v931_v40, 16  ;;  %v1187_v11 = vld [vmem:[#allocation2 + $0x30] sm:$0xe] }
  0xf6   : > { %v1013_v17 = vrot.slane %v1012_v46, 4  ;;  %v2315_v59 = vpack.c.bf16 %v392_v51, %v392_v51  ;;  %v1029_v61 = vshll.u32 %v932_v45, 16  ;;  %v998_v0 = vor.u32 %v997_v55, %v994_v48  ;;  %v1188_v19 = vld [vmem:[#allocation2 + $0x34] sm:$0x3]  ;;  %v1185_v15 = vld [vmem:[#allocation2 + $0x28] sm:$0xe]  ;;  %p2603_p8 = pneg %p2602_p4 }
  0xf7   : > { %v867_v30 = vsel %vm3039_vm11, %v858_v52, %v866_v42  ;;  %v1003_v2 = vrot.slane %v1001_v1, 5  ;;  %v1022_v3 = vrot.slane %v1020_v56, 4  ;;  %v1025_v6 = vrot.slane %v1023_v60, 5  ;;  %v1186_v28 = vld [vmem:[#allocation2 + $0x2c] sm:$0x3] }
  0xf8   : > { %v1018_v8 = vsel %vm3109_vm14, %v1013_v17, %v1017_v47  ;;  %v439_v9 = vrot.slane %v2315_v59, 7  ;;  %v2268_v10 = vrot.slane %v1090_v57, 9  ;;  %v999_v12 = vrot.slane %v998_v0, 4  ;;  %v1189_v14 = vld [vmem:[#allocation2 + $0x38] sm:$0xe] }
  0xf9   : > { %898 = vrot.lane.b32.xlu0 %v867_v30, %s2716_s26  ;;  %1057 = vrot.lane.b32.xlu1 %v1018_v8, %s2718_s14  ;;  %v1031_v16 = vrot.slane %v1029_v61, 5  ;;  %v1134_v18 = vrot.slane %v1091_v63, 5  ;;  %v3237_v37 = vrot.slane %v505_v33, 5  ;;  %v1026_v20 = vor.u32 %v1025_v6, %v1022_v3  ;;  %v1190_v46 = vld [vmem:[#allocation2 + $0x3c] sm:$0x3]  ;;  %s2723_s26 = smov [#allocation12]  }
  0xfa   : > { %v440_v53 = vrot.slane %v439_v9, 4  ;;  %474 = vst.msk [vmem:[#allocation2 + $0x40] sm:$0xe] %vm458_vm8, %v439_v9  ;;  %v2267_v21 = vrot.slane %v1088_v58, 9  ;;  %v1130_v22 = vrot.slane %v1089_v32, 5  ;;  %v1004_v23 = vsel %vm3109_vm14, %v999_v12, %v1003_v2 }
  0xfb   : > { %v2269_v24 = vrot.slane %v3227_v4, 9  ;;  %v1138_v26 = vrot.slane %v3229_v5, 5  ;;  %v1284_v27 = vshrl.u32 %v1187_v11, 16  ;;  %v1027_v25 = vrot.slane %v1026_v20, 4 }
  0xfc   : > { %475 = vst.msk [vmem:[#allocation2 + $0x44] sm:$0x1] %vm460_vm9, %v440_v53  ;;  %v3247_v33 = vsel %vm3027_vm10, %v2268_v10, %v1134_v18  ;;  %v1287_v29 = vshll.u32 %v1187_v11, 16  ;;  %v1293_v50 = vshrl.u32 %v1188_v19, 16  ;;  %v1296_v34 = vshll.u32 %v1188_v19, 16 }
  0xfd   : > { %1055 = vrot.lane.b32.xlu0 %v1004_v23, %s2718_s14  ;;  %v1286_v31 = vrot.slane %v1284_v27, 5  ;;  %v1266_v35 = vshrl.u32 %v1185_v15, 16  ;;  %v1269_v36 = vshll.u32 %v1185_v15, 16  ;;  %v1032_v38 = vsel %vm3109_vm14, %v1027_v25, %v1031_v16  ;;  %v1381_v23 = vld [vmem:[#allocation2 + $0x38] sm:$0xf] }
  0xfe   : > { %v1289_v39 = vrot.slane %v1287_v29, 6  ;;  %v1295_v40 = vrot.slane %v1293_v50, 5  ;;  %v1275_v41 = vshrl.u32 %v1186_v28, 16  ;;  %v1298_v42 = vrot.slane %v1296_v34, 6  ;;  %v1382_v25 = vld [vmem:[#allocation2 + $0x3c] sm:$0x1] }
  0xff   : > { %v1268_v43 = vrot.slane %v1266_v35, 5  ;;  %v1271_v1 = vrot.slane %v1269_v36, 6  ;;  %v1278_v45 = vshll.u32 %v1186_v28, 16  ;;  %v1131_v47 = vsel %vm3027_vm10, %v2267_v21, %v1130_v22 }
 0x100   : > { %v1290_v48 = vor.u32 %v1289_v39, %v1286_v31  ;;  %v1277_v51 = vrot.slane %v1275_v41, 5  ;;  %v1302_v52 = vshrl.u32 %v1189_v14, 16  ;;  %v1299_v57 = vor.u32 %v1298_v42, %v1295_v40  ;;  %v1379_v39 = vld [vmem:[#allocation2 + $0x30] sm:$0xf] }
 0x101   : > { %v933_v55 = vld [vmem:[#allocation2 + $0x40] sm:$0xf]  ;;  %1059 = vrot.lane.b32.xlu0 %v1032_v38, %s2718_s14  ;;  %v1272_v58 = vor.u32 %v1271_v1, %v1268_v43  ;;  %v1280_v32 = vrot.slane %v1278_v45, 6  ;;  %v1305_v17 = vshll.u32 %v1189_v14, 16  ;;  %v1311_v30 = vshrl.u32 %v1190_v46, 16 }
 0x102   : > { %v1094_v56 = vld [vmem:[#allocation2 + $0x40] sm:$0xe]  ;;  %v1034_v59 = vshrl.u32 %v933_v55, 16  ;;  %v1037_v60 = vshll.u32 %v933_v55, 16  ;;  %v1291_v61 = vrot.slane %v1290_v48, 4  ;;  %v1139_v3 = vsel %vm3027_vm10, %v2269_v24, %v1138_v26 }
 0x103   : > { %v1191_v63 = vld [vmem:[#allocation2 + $0x40] sm:$0xe]  ;;  %v934_v0 = vld [vmem:[#allocation2 + $0x44] sm:$0x1]  ;;  %v1273_v4 = vrot.slane %v1272_v58, 4  ;;  %v1281_v5 = vor.u32 %v1280_v32, %v1277_v51  ;;  %v2270_v11 = vrot.slane %v1094_v56, 9 }
 0x104   : > { %v1095_v2 = vld [vmem:[#allocation2 + $0x44] sm:$0x1]  ;;  %v1320_v8 = vshrl.u32 %v1191_v63, 16  ;;  %v1036_v9 = vrot.slane %v1034_v59, 4  ;;  %v1039_v6 = vrot.slane %v1037_v60, 5  ;;  %v1043_v10 = vshll.u32 %v934_v0, 16 }
 0x105   : > { %v1192_v12 = vld [vmem:[#allocation2 + $0x44] sm:$0x3]  ;;  %1152 = vrot.lane.b32.xlu0 %v1131_v47, %s2717_s13  ;;  %v1142_v16 = vrot.slane %v1095_v2, 5  ;;  %v3260_v18 = vsel %vm3039_vm11, %v1291_v61, %v1299_v57  ;;  %v1323_v53 = vshll.u32 %v1191_v63, 16  ;;  %v1282_v22 = vsel %vm3039_vm11, %v1273_v4, %v1281_v5  ;;  %v1380_v1 = vld [vmem:[#allocation2 + $0x34] sm:$0x1] }
 0x106   : > { %v1322_v19 = vrot.slane %v1320_v8, 5  ;;  %v1040_v20 = vor.u32 %v1039_v6, %v1036_v9  ;;  %v1045_v21 = vrot.slane %v1043_v10, 5  ;;  %v1329_v15 = vshrl.u32 %v1192_v12, 16  ;;  %v1385_v57 = vld [vmem:[#allocation2 + $0x48] sm:$0xf] }
 0x107   : > { %v1325_v24 = vrot.slane %v1323_v53, 6  ;;  %v1332_v26 = vshll.u32 %v1192_v12, 16  ;;  %v1304_v27 = vrot.slane %v1302_v52, 5  ;;  %v1307_v28 = vrot.slane %v1305_v17, 6  ;;  %v1386_v58 = vld [vmem:[#allocation2 + $0x4c] sm:$0x1] }
 0x108   : > { %v1041_v29 = vrot.slane %v1040_v20, 4  ;;  %v1331_v50 = vrot.slane %v1329_v15, 5  ;;  %v1313_v31 = vrot.slane %v1311_v30, 5  ;;  %v1314_v34 = vshll.u32 %v1190_v46, 16  ;;  %v1383_v61 = vld [vmem:[#allocation2 + $0x40] sm:$0xf] }
 0x109   : > { %1156 = vrot.lane.b32.xlu0 %v1139_v3, %s2717_s13  ;;  %v1326_v35 = vor.u32 %v1325_v24, %v1322_v19  ;;  %v1334_v36 = vrot.slane %v1332_v26, 6  ;;  %v1308_v14 = vor.u32 %v1307_v28, %v1304_v27  ;;  %v1458_v38 = vshrl.u32 %v1381_v23, 16  ;;  %v1542_v9 = vld [vmem:[#allocation2 + $0x38] sm:$0xe]  ;;  %v1384_v12 = vld [vmem:[#allocation2 + $0x44] sm:$0x1] }
 0x10a   : > { %v1046_v40 = vsel %vm3109_vm14, %v1041_v29, %v1045_v21  ;;  %v1316_v41 = vrot.slane %v1314_v34, 6  ;;  %v1461_v42 = vshll.u32 %v1381_v23, 16  ;;  %v1467_v43 = vshll.u32 %v1382_v25, 16  ;;  %v1543_v53 = vld [vmem:[#allocation2 + $0x3c] sm:$0x1] }
 0x10b   : > { %1061 = vrot.lane.b32.xlu1 %v1046_v40, %s2718_s14  ;;  %v1327_v45 = vrot.slane %v1326_v35, 4  ;;  %v1335_v47 = vor.u32 %v1334_v36, %v1331_v50  ;;  %v1309_v48 = vrot.slane %v1308_v14, 4  ;;  %v1460_v46 = vrot.slane %v1458_v38, 4  ;;  %v481_v20 = vld [vmem:[#allocation2 + $0x14] sm:$0x1] }
 0x10c   : > { %v1143_v51 = vsel %vm3027_vm10, %v2270_v11, %v1142_v16  ;;  %v1317_v52 = vor.u32 %v1316_v41, %v1313_v31  ;;  %v1463_v55 = vrot.slane %v1461_v42, 5  ;;  %v1444_v56 = vshrl.u32 %v1379_v39, 16  ;;  %v691_v5 = vpop.permute.xlu0 %690  ;;  %v1540_v24 = vld [vmem:[#allocation2 + $0x30] sm:$0xe]  ;;  %v1541_v50 = vld [vmem:[#allocation2 + $0x34] sm:$0x1] }
 0x10d   : > { %1345 = vrot.lane.b32.xlu0 %v1282_v22, %s2719_s11  ;;  %v3271_v32 = vrot.slane %v1467_v43, 5  ;;  %v1447_v17 = vshll.u32 %v1379_v39, 16  ;;  %v1453_v59 = vshll.u32 %v1380_v1, 16  ;;  %v498_v60 = vrot.slane %v496_v44, 4  ;;  %v480_v26 = vld [vmem:[#allocation2 + $0x10] sm:$0xf] }
 0x10e   : > { %v1318_v63 = vsel %vm3039_vm11, %v1309_v48, %v1317_v52  ;;  %v1464_v30 = vor.u32 %v1463_v55, %v1460_v46  ;;  %v1446_v0 = vrot.slane %v1444_v56, 4  ;;  %v501_v2 = vrot.slane %v499_v54, 5  ;;  %v478_v36 = vld [vmem:[#allocation2 + $0x8] sm:$0xf]  ;;  %v479_v42 = vld [vmem:[#allocation2 + $0xc] sm:$0x1] }
 0x10f   : > { %1154 = vrot.lane.b32.xlu1 %v3247_v33, %s2717_s13  ;;  %v3283_v3 = vsel %vm3039_vm11, %v1327_v45, %v1335_v47  ;;  %v1449_v4 = vrot.slane %v1447_v17, 5  ;;  %v1486_v8 = vshrl.u32 %v1385_v57, 16  ;;  %v1489_v44 = vshll.u32 %v1385_v57, 16  ;;  %v3299_v43 = vld [vmem:[#allocation2 + $0x48] sm:$0xe] }
 0x110   : > { %v1455_v6 = vrot.slane %v1453_v59, 5  ;;  %v502_v10 = vor.u32 %v501_v2, %v498_v60  ;;  %v1495_v11 = vshll.u32 %v1386_v58, 16  ;;  %v1472_v16 = vshrl.u32 %v1383_v61, 16  ;;  %v3307_v48 = vld [vmem:[#allocation2 + $0x4c] sm:$0x1] }
 0x111   : > { %1349 = vrot.lane.b32.xlu0 %v1318_v63, %s2719_s11  ;;  %v1450_v13 = vor.u32 %v1449_v4, %v1446_v0  ;;  %v1488_v54 = vrot.slane %v1486_v8, 4  ;;  %v1491_v19 = vrot.slane %v1489_v44, 5  ;;  %v1475_v33 = vshll.u32 %v1383_v61, 16  ;;  %v887_v41 = vpop.permute.xlu0 %886  ;;  %v482_v56 = vld [vmem:[#allocation2 + $0x18] sm:$0xf] }
 0x112   : > { %v3286_v21 = vrot.slane %v1464_v30, 4  ;;  %v503_v22 = vrot.slane %v502_v10, 4  ;;  %v3288_v15 = vrot.slane %v1495_v11, 5  ;;  %v1474_v23 = vrot.slane %v1472_v16, 4  ;;  %v1544_v17 = vld [vmem:[#allocation2 + $0x40] sm:$0xe] }
 0x113   : > { %1158 = vrot.lane.b32.xlu1 %v1143_v51, %s2717_s13  ;;  %v1451_v27 = vrot.slane %v1450_v13, 4  ;;  %v1492_v28 = vor.u32 %v1491_v19, %v1488_v54  ;;  %v1477_v25 = vrot.slane %v1475_v33, 5  ;;  %v1481_v29 = vshll.u32 %v1384_v12, 16  ;;  %v1545_v59 = vld [vmem:[#allocation2 + $0x44] sm:$0x1]  ;;  %s2604_s13 = sshll.u32 %s2723_s26, 4  ;;  %s2605_s13 = int_to_ptr.vmem [resolvable:$false] %s2604_s13 }
 0x114   : > { %v508_v31 = vsel %vm3109_vm14, %v503_v22, %v3237_v37  ;;  %v2276_v34 = vrot.slane %v1542_v9, 9  ;;  %v1586_v35 = vrot.slane %v1543_v53, 5  ;;  %v1470_v37 = vsel %vm3109_vm14, %v3286_v21, %v3271_v32  ;;  %v483_v0 = vld [vmem:[#allocation2 + $0x1c] sm:$0x1]  ;;  %v1639_v44 = vld [vmem:[#allocation2 + $0x38] sm:$0xe]  ;;  %p2607_p3 = scmp.lt.s32.totalorder %s3493_s23, %s2605_s13 }
 0x115   : > { %v1456_v14 = vsel %vm3109_vm14, %v1451_v27, %v1455_v6  ;;  %615 = vst.msk [vmem:[#allocation3] sm:$0xf] %vm295_vm0, %v508_v31  ;;  %v3297_v38 = vrot.slane %v1492_v28, 4  ;;  %v1478_v39 = vor.u32 %v1477_v25, %v1474_v23  ;;  %v1483_v40 = vrot.slane %v1481_v29, 5  ;;  %v1640_v53 = vld [vmem:[#allocation2 + $0x3c] sm:$0x3] }
 0x116   : > { %1507 = vrot.lane.b32.xlu0 %v1456_v14, %s2720_s30  ;;  %715 = vst.msk [vmem:[#allocation3] sm:$0xf] %vm714_vm15, %v691_v5  ;;  %v2275_v1 = vrot.slane %v1540_v24, 9  ;;  %v1582_v45 = vrot.slane %v1541_v50, 5  ;;  %v533_v47 = vshll.u32 %v481_v20, 16  ;;  %v3314_v51 = vsel %vm3027_vm10, %v2276_v34, %v1586_v35  ;;  %s2606_s14 = scalar_lea.vmem %s2605_s13, 1024 }
 0x117   : > { %1347 = vrot.lane.b32.xlu1 %v3260_v18, %s2719_s11  ;;  %v1479_v46 = vrot.slane %v1478_v39, 4  ;;  %911 = vst.msk [vmem:[#allocation3] sm:$0xf] %vm910_vm2, %v887_v41  ;;  %v524_v52 = vshrl.u32 %v480_v26, 16  ;;  %v527_v55 = vshll.u32 %v480_v26, 16  ;;  %v1498_v57 = vsel %vm3109_vm14, %v3297_v38, %v3288_v15  ;;  %p2608_p7 = scmp.lt.s32.totalorder %s2606_s14, %s2600_s24 }
 0x118   : > { %v1583_v58 = vsel %vm3027_vm10, %v2275_v1, %v1582_v45  ;;  %v510_v32 = vshrl.u32 %v478_v36, 16  ;;  %v513_v18 = vshll.u32 %v478_v36, 16  ;;  %v519_v30 = vshll.u32 %v479_v42, 16  ;;  %v1637_v24 = vld [vmem:[#allocation2 + $0x30] sm:$0xe] }
 0x119   : > { %v1484_v60 = vsel %vm3109_vm14, %v1479_v46, %v1483_v40  ;;  %v526_v61 = vrot.slane %v524_v52, 4  ;;  %v529_v63 = vrot.slane %v527_v55, 5  ;;  %v535_v2 = vrot.slane %v533_v47, 5  ;;  %v1638_v25 = vld [vmem:[#allocation2 + $0x34] sm:$0x3]  ;;  %p2609_p10 = por %p2608_p7, %p2607_p3 }
 0x11a   : > { %1511 = vrot.lane.b32.xlu0 %v1484_v60, %s2720_s30  ;;  %v512_v4 = vrot.slane %v510_v32, 4  ;;  %v515_v5 = vrot.slane %v513_v18, 5  ;;  %v2278_v8 = vrot.slane %v3299_v43, 9  ;;  %v695_v9 = vpop.permute.xlu1 %694  ;;  %v1594_v11 = vrot.slane %v3307_v48, 5  ;;  %v1643_v42 = vld [vmem:[#allocation2 + $0x48] sm:$0xe] }
 0x11b   : > { %1351 = vrot.lane.b32.xlu1 %v3283_v3, %s2719_s11  ;;  %v530_v6 = vor.u32 %v529_v63, %v526_v61  ;;  %v693_v10 = vpop.permute.xlu0 %692  ;;  %v2277_v12 = vrot.slane %v1544_v17, 9  ;;  %v1590_v16 = vrot.slane %v1545_v59, 5  ;;  %v521_v54 = vrot.slane %v519_v30, 5  ;;  %v1644_v55 = vld [vmem:[#allocation2 + $0x4c] sm:$0x3]  ;;  %p2610_p13 = pnand %p2609_p10, %p2603_p8 }
 0x11c   : > { %v516_v13 = vor.u32 %v515_v5, %v512_v4  ;;  %v538_v19 = vshrl.u32 %v482_v56, 16  ;;  %v541_v33 = vshll.u32 %v482_v56, 16  ;;  %v547_v22 = vshll.u32 %v483_v0, 16  ;;  %v1641_v60 = vld [vmem:[#allocation2 + $0x40] sm:$0xe] }
 0x11d   : > { %v531_v20 = vrot.slane %v530_v6, 4  ;;  %v1591_v21 = vsel %vm3027_vm10, %v2277_v12, %v1590_v16  ;;  %v1736_v23 = vshrl.u32 %v1639_v44, 16  ;;  %v1739_v28 = vshll.u32 %v1639_v44, 16  ;;  %v1642_v4 = vld [vmem:[#allocation2 + $0x44] sm:$0x3] }
 0x11e   : > { %1604 = vrot.lane.b32.xlu0 %v1583_v58, %s2721_s28  ;;  %v517_v3 = vrot.slane %v516_v13, 4  ;;  %v540_v26 = vrot.slane %v538_v19, 4  ;;  %v543_v27 = vrot.slane %v541_v33, 5  ;;  %v549_v50 = vrot.slane %v547_v22, 5  ;;  %v697_v31 = vpop.permute.xlu1 %696 }
 0x11f   : > { %1509 = vrot.lane.b32.xlu1 %v1470_v37, %s2720_s30  ;;  %v536_v29 = vsel %vm3109_vm14, %v531_v20, %v535_v2  ;;  %v3335_v34 = vpop.permute.xlu0 %1144  ;;  %v1738_v35 = vrot.slane %v1736_v23, 5  ;;  %v1745_v36 = vshrl.u32 %v1640_v53, 16  ;;  %v1741_v40 = vrot.slane %v1739_v28, 6 }
 0x120   : > { %617 = vst.msk [vmem:[#allocation3 + $0x8] sm:$0xf] %vm295_vm0, %v536_v29  ;;  %v522_v14 = vsel %vm3109_vm14, %v517_v3, %v521_v54  ;;  %v544_v39 = vor.u32 %v543_v27, %v540_v26  ;;  %v1748_v41 = vshll.u32 %v1640_v53, 16  ;;  %v1718_v37 = vshrl.u32 %v1637_v24, 16  ;;  %v484_v29 = vld [vmem:[#allocation2 + $0x20] sm:$0xf] }
 0x121   : > { %717 = vst.msk [vmem:[#allocation3 + $0x8] sm:$0xf] %vm714_vm15, %v695_v9  ;;  %v3342_v43 = vrot.slane %v1745_v36, 5  ;;  %v1721_v1 = vshll.u32 %v1637_v24, 16  ;;  %v1727_v45 = vshrl.u32 %v1638_v25, 16  ;;  %v1742_v48 = vor.u32 %v1741_v40, %v1738_v35 }
 0x122   : > { %616 = vst.msk [vmem:[#allocation3 + $0x4] sm:$0xf] %vm295_vm0, %v522_v14  ;;  %1608 = vrot.lane.b32.xlu0 %v1591_v21, %s2721_s28  ;;  %v545_v47 = vrot.slane %v544_v39, 4  ;;  %v1750_v46 = vrot.slane %v1748_v41, 6  ;;  %v1730_v52 = vshll.u32 %v1638_v25, 16  ;;  %v1720_v56 = vrot.slane %v1718_v37, 5  ;;  %v3352_v18 = vpop.permute.xlu1 %1146 }
 0x123   : > { %716 = vst.msk [vmem:[#allocation3 + $0x4] sm:$0xf] %vm714_vm15, %v693_v10  ;;  %1513 = vrot.lane.b32.xlu1 %v1498_v57, %s2720_s30  ;;  %v1723_v58 = vrot.slane %v1721_v1, 6  ;;  %v1729_v32 = vrot.slane %v1727_v45, 5  ;;  %v3354_v17 = vpop.permute.xlu0 %1148  ;;  %v1772_v59 = vshrl.u32 %v1643_v42, 16  ;;  %v1595_v61 = vsel %vm3027_vm10, %v2278_v8, %v1594_v11 }
 0x124   : > { %v550_v63 = vsel %vm3109_vm14, %v545_v47, %v549_v50  ;;  %v1743_v30 = vrot.slane %v1742_v48, 4  ;;  %v1732_v0 = vrot.slane %v1730_v52, 6  ;;  %v1775_v57 = vshll.u32 %v1643_v42, 16  ;;  %v487_v24 = vld [vmem:[#allocation2 + $0x2c] sm:$0x1] }
 0x125   : > { %618 = vst.msk [vmem:[#allocation3 + $0xc] sm:$0xf] %vm295_vm0, %v550_v63  ;;  %v1724_v15 = vor.u32 %v1723_v58, %v1720_v56  ;;  %v1774_v38 = vrot.slane %v1772_v59, 5  ;;  %v1781_v2 = vshrl.u32 %v1644_v55, 16  ;;  %v1751_v5 = vor.u32 %v1750_v46, %v3342_v43  ;;  %v485_v50 = vld [vmem:[#allocation2 + $0x24] sm:$0x1] }
 0x126   : > { %718 = vst.msk [vmem:[#allocation3 + $0xc] sm:$0xf] %vm714_vm15, %v697_v31  ;;  %v1733_v44 = vor.u32 %v1732_v0, %v1729_v32  ;;  %v1784_v9 = vshll.u32 %v1644_v55, 16  ;;  %v1754_v49 = vshrl.u32 %v1641_v60, 16  ;;  %v1777_v6 = vrot.slane %v1775_v57, 6  ;;  %v3365_v12 = vpop.permute.xlu1 %1150 }
 0x127   : > { %1606 = vrot.lane.b32.xlu1 %v3314_v51, %s2721_s28  ;;  %v1725_v8 = vrot.slane %v1724_v15, 4  ;;  %v1783_v10 = vrot.slane %v1781_v2, 5  ;;  %v1757_v11 = vshll.u32 %v1641_v60, 16  ;;  %v891_v16 = vpop.permute.xlu0 %890  ;;  %v1763_v19 = vshrl.u32 %v1642_v4, 16  ;;  %v486_v51 = vld [vmem:[#allocation2 + $0x28] sm:$0xf] }
 0x128   : > { %v1786_v13 = vrot.slane %v1784_v9, 6  ;;  %v1756_v54 = vrot.slane %v1754_v49, 5  ;;  %v1766_v33 = vshll.u32 %v1642_v4, 16  ;;  %913 = vst.msk [vmem:[#allocation3 + $0x8] sm:$0xf] %vm910_vm2, %v891_v16  ;;  %v1778_v20 = vor.u32 %v1777_v6, %v1774_v38 }
 0x129   : > { %v1734_v53 = vsel %vm3039_vm11, %v1725_v8, %v1733_v44  ;;  %v1759_v21 = vrot.slane %v1757_v11, 6  ;;  %v1765_v22 = vrot.slane %v1763_v19, 5  ;;  %vm1168_vm4 = vcmask 322816   ;;  %v490_v14 = vld [vmem:[#allocation2 + $0x38] sm:$0xf] }
 0x12a   : > { %1797 = vrot.lane.b32.xlu0 %v1734_v53, %s2722_s10  ;;  %v1768_v23 = vrot.slane %v1766_v33, 6  ;;  %v1779_v3 = vrot.slane %v1778_v20, 4  ;;  %v1787_v26 = vor.u32 %v1786_v13, %v1783_v10  ;;  %v889_v28 = vpop.permute.xlu1 %888  ;;  %v1752_v31 = vsel %vm3039_vm11, %v1743_v30, %v1751_v5  ;;  %v491_v42 = vld [vmem:[#allocation2 + $0x3c] sm:$0x1]  ;;  %v488_v47 = vld [vmem:[#allocation2 + $0x30] sm:$0xf] }
 0x12b   : > { %1610 = vrot.lane.b32.xlu1 %v1595_v61, %s2721_s28  ;;  %v1760_v27 = vor.u32 %v1759_v21, %v1756_v54  ;;  %v1048_v25 = vpop.permute.xlu0 %1047  ;;  %912 = vst.msk [vmem:[#allocation3 + $0x4] sm:$0xf] %vm910_vm2, %v889_v28  ;;  %v566_v36 = vshrl.u32 %v486_v51, 16  ;;  %v569_v40 = vshll.u32 %v486_v51, 16  ;;  %v575_v41 = vshll.u32 %v487_v24, 16 }
 0x12c   : > { %v1769_v35 = vor.u32 %v1768_v23, %v1765_v22  ;;  %1072 = vst.msk [vmem:[#allocation3] sm:$0xf] %vm1071_vm3, %v1048_v25  ;;  %v552_v37 = vshrl.u32 %v484_v29, 16  ;;  %v555_v1 = vshll.u32 %v484_v29, 16  ;;  %v561_v45 = vshll.u32 %v485_v50, 16 }
 0x12d   : > { %v1761_v39 = vrot.slane %v1760_v27, 4  ;;  %1169 = vst.msk [vmem:[#allocation3] sm:$0xf] %vm1168_vm4, %v3335_v34  ;;  %v568_v43 = vrot.slane %v566_v36, 4  ;;  %v1788_v48 = vsel %vm3039_vm11, %v1779_v3, %v1787_v26  ;;  %v571_v55 = vrot.slane %v569_v40, 5 }
 0x12e   : > { %v893_v52 = vpop.permute.xlu1 %892  ;;  %v577_v56 = vrot.slane %v575_v41, 5  ;;  %v489_v34 = vld [vmem:[#allocation2 + $0x34] sm:$0x1]  ;;  %v554_v32 = vrot.slane %v552_v37, 4  ;;  %v557_v59 = vrot.slane %v555_v1, 5  ;;  %v563_v60 = vrot.slane %v561_v45, 5 }
 0x12f   : > { %1799 = vrot.lane.b32.xlu1 %v1752_v31, %s2722_s10  ;;  %v1770_v46 = vsel %vm3039_vm11, %v1761_v39, %v1769_v35  ;;  %914 = vst.msk [vmem:[#allocation3 + $0xc] sm:$0xf] %vm910_vm2, %v893_v52  ;;  %v594_v61 = vshrl.u32 %v490_v14, 16  ;;  %v572_v63 = vor.u32 %v571_v55, %v568_v43  ;;  %v597_v30 = vshll.u32 %v490_v14, 16  ;;  %v2482_v15 = vld [vmem:[#allocation10 + $0x20] ss:$0 sps:$4 sm:$0xff]  }
 0x130   : > { %1801 = vrot.lane.b32.xlu0 %v1770_v46, %s2722_s10  ;;  %v1052_v58 = vpop.permute.xlu0 %1051  ;;  %v603_v0 = vshll.u32 %v491_v42, 16  ;;  %v580_v7 = vshrl.u32 %v488_v47, 16  ;;  %v558_v38 = vor.u32 %v557_v59, %v554_v32  ;;  %v583_v2 = vshll.u32 %v488_v47, 16 }
 0x131   : > { %1074 = vst.msk [vmem:[#allocation3 + $0x8] sm:$0xf] %vm1071_vm3, %v1052_v58  ;;  %v596_v57 = vrot.slane %v594_v61, 4  ;;  %v589_v4 = vshll.u32 %v489_v34, 16  ;;  %v573_v44 = vrot.slane %v572_v63, 4  ;;  %v599_v9 = vrot.slane %v597_v30, 5 }
 0x132   : > { %1171 = vst.msk [vmem:[#allocation3 + $0x8] sm:$0xf] %vm1168_vm4, %v3354_v17  ;;  %v1050_v5 = vpop.permute.xlu1 %1049  ;;  %v582_v49 = vrot.slane %v580_v7, 4  ;;  %v559_v8 = vrot.slane %v558_v38, 4  ;;  %v585_v6 = vrot.slane %v583_v2, 5  ;;  %vm1899_vm5 = vcmask 1043456  }
 0x133   : > { %1803 = vrot.lane.b32.xlu1 %v1788_v48, %s2722_s10  ;;  %1073 = vst.msk [vmem:[#allocation3 + $0x4] sm:$0xf] %vm1071_vm3, %v1050_v5  ;;  %v578_v17 = vsel %vm3109_vm14, %v573_v44, %v577_v56  ;;  %v600_v10 = vor.u32 %v599_v9, %v596_v57  ;;  %v605_v11 = vrot.slane %v603_v0, 5  ;;  %2381 = vmatprep.subr.msk.bf16.mxu0 %vm1899_vm5, %v2482_v15  ;;  %v1901_v16 = vsel %vm1899_vm5, %v2482_v15, 0 }
 0x134   : > { %1170 = vst.msk [vmem:[#allocation3 + $0x4] sm:$0xf] %vm1168_vm4, %v3352_v18  ;;  %2382 = vmatprep.subr.msk.bf16.mxu1 %vm1899_vm5, %v2482_v15  ;;  %v564_v13 = vsel %vm3109_vm14, %v559_v8, %v563_v60  ;;  %v586_v54 = vor.u32 %v585_v6, %v582_v49  ;;  %v591_v19 = vrot.slane %v589_v4, 5  ;;  %2362 = vmatpush3.bf16.msra.mxu0 %v1901_v16  ;;  %vm1361_vm6 = vcmask 388416  }
 0x135   : > { %620 = vst.msk [vmem:[#allocation3 + $0x14] sm:$0xf] %vm295_vm0, %v578_v17  ;;  %2380 = vmatpush3.bf16.msra.mxu1 %v1901_v16  ;;  %619 = vst.msk [vmem:[#allocation3 + $0x10] sm:$0xf] %vm295_vm0, %v564_v13  ;;  %v601_v18 = vrot.slane %v600_v10, 4  ;;  %vm1523_vm7 = vcmask 454016  }
 0x136   : > { %v1054_v33 = vpop.permute.xlu1 %1053  ;;  %v587_v53 = vrot.slane %v586_v54, 4  ;;  %vm1620_vm8 = vcmask 519616   ;;  %vm1813_vm9 = vcmask 585216   ;;  %vm1886_vm10 = vcmask 588800  }
 0x137   : > { %1075 = vst.msk [vmem:[#allocation3 + $0xc] sm:$0xf] %vm1071_vm3, %v1054_v33  ;;  %v606_v21 = vsel %vm3109_vm14, %v601_v18, %v605_v11  ;;  %vm2008_vm11 = vcmask 64512  }
 0x138   : > { %1172 = vst.msk [vmem:[#allocation3 + $0xc] sm:$0xf] %vm1168_vm4, %v3365_v12  ;;  %v592_v51 = vsel %vm3109_vm14, %v587_v53, %v591_v19 }
 0x139   : > { %v1338_v20 = vpop.permute.xlu0 %1337  ;;  %622 = vst.msk [vmem:[#allocation3 + $0x1c] sm:$0xf] %vm295_vm0, %v606_v21  ;;  %621 = vst.msk [vmem:[#allocation3 + $0x18] sm:$0xf] %vm295_vm0, %v592_v51 }
 0x13a   : > { %1362 = vst.msk [vmem:[#allocation3] sm:$0xf] %vm1361_vm6, %v1338_v20  ;;  %v1340_v22 = vpop.permute.xlu1 %1339 }
 0x13b   : > { %1363 = vst.msk [vmem:[#allocation3 + $0x4] sm:$0xf] %vm1361_vm6, %v1340_v22 }
 0x13e   : > { %v1344_v23 = vpop.permute.xlu1 %1343 }
 0x13f   : > { %1365 = vst.msk [vmem:[#allocation3 + $0xc] sm:$0xf] %vm1361_vm6, %v1344_v23 }
 0x140   : > { %v1342_v12 = vpop.permute.xlu0 %1341 }
 0x141   : > { %1364 = vst.msk [vmem:[#allocation3 + $0x8] sm:$0xf] %vm1361_vm6, %v1342_v12 }
 0x142   : > { %v1502_v24 = vpop.permute.xlu1 %1501 }
 0x143   : > { %1525 = vst.msk [vmem:[#allocation3 + $0x4] sm:$0xf] %vm1523_vm7, %v1502_v24 }
 0x145   : > { %v1500_v3 = vpop.permute.xlu0 %1499 }
 0x146   : > { %1524 = vst.msk [vmem:[#allocation3] sm:$0xf] %vm1523_vm7, %v1500_v3 }
 0x147   : > { %v1506_v62 = vpop.permute.xlu1 %1505 }
 0x148   : > { %1527 = vst.msk [vmem:[#allocation3 + $0xc] sm:$0xf] %vm1523_vm7, %v1506_v62 }
 0x14a   : > { %v1504_v26 = vpop.permute.xlu0 %1503 }
 0x14b   : > { %1526 = vst.msk [vmem:[#allocation3 + $0x8] sm:$0xf] %vm1523_vm7, %v1504_v26  ;;  %v1599_v27 = vpop.permute.xlu1 %1598 }
 0x14c   : > { %1622 = vst.msk [vmem:[#allocation3 + $0x4] sm:$0xf] %vm1620_vm8, %v1599_v27 }
 0x14e   : > { %v1597_v28 = vpop.permute.xlu0 %1596 }
 0x14f   : > { %1621 = vst.msk [vmem:[#allocation3] sm:$0xf] %vm1620_vm8, %v1597_v28  ;;  %v1603_v25 = vpop.permute.xlu1 %1602 }
 0x150   : > { %1624 = vst.msk [vmem:[#allocation3 + $0xc] sm:$0xf] %vm1620_vm8, %v1603_v25 }
 0x152   : > { %v1601_v29 = vpop.permute.xlu0 %1600 }
 0x153   : > { %1623 = vst.msk [vmem:[#allocation3 + $0x8] sm:$0xf] %vm1620_vm8, %v1601_v29  ;;  %v1792_v50 = vpop.permute.xlu1 %1791 }
 0x154   : > { %1815 = vst.msk [vmem:[#allocation3 + $0x4] sm:$0xf] %vm1813_vm9, %v1792_v50 }
 0x156   : > { %v1790_v31 = vpop.permute.xlu0 %1789 }
 0x157   : > { %1814 = vst.msk [vmem:[#allocation3] sm:$0xf] %vm1813_vm9, %v1790_v31  ;;  %v701_v35 = vpop.permute.xlu1 %700 }
 0x158   : > { %720 = vst.msk [vmem:[#allocation3 + $0x14] sm:$0xf] %vm714_vm15, %v701_v35 }
 0x15a   : > { %v699_v36 = vpop.permute.xlu0 %698 }
 0x15b   : > { %719 = vst.msk [vmem:[#allocation3 + $0x10] sm:$0xf] %vm714_vm15, %v699_v36  ;;  %v1796_v14 = vpop.permute.xlu1 %1795 }
 0x15c   : > { %1817 = vst.msk [vmem:[#allocation3 + $0xc] sm:$0xf] %vm1813_vm9, %v1796_v14 }
 0x15e   : > { %v1794_v39 = vpop.permute.xlu0 %1793  ;;  %v2481_v40 = vld [vmem:[#allocation3] sm:$0xff]  }
 0x15f   : > { %1816 = vst.msk [vmem:[#allocation3 + $0x8] sm:$0xf] %vm1813_vm9, %v1794_v39  ;;  %v705_v41 = vpop.permute.xlu1 %704  ;;  %2363 = vmatprep.mubr.msk.bf16.mxu0 %vm1886_vm10, %v2481_v40 }
 0x160   : > { %722 = vst.msk [vmem:[#allocation3 + $0x1c] sm:$0xf] %vm714_vm15, %v705_v41 }
 0x163   : > { %v703_v42 = vpop.permute.xlu0 %702  ;;  %v897_v43 = vpop.permute.xlu1 %896 }
 0x164   : > { %721 = vst.msk [vmem:[#allocation3 + $0x18] sm:$0xf] %vm714_vm15, %v703_v42 }
 0x165   : > { %916 = vst.msk [vmem:[#allocation3 + $0x14] sm:$0xf] %vm910_vm2, %v897_v43 }
 0x166   : > { %v2483_v37 = vld [vmem:[#allocation3 + $0x8] sm:$0xff]  }
 0x167   : > { %v895_v1 = vpop.permute.xlu0 %894  ;;  %v901_v45 = vpop.permute.xlu1 %900  ;;  %2364 = vmatmul.mubr.msk.bf16.vlgmr.msra.gmra.mrb[0].mxu0 %vm1886_vm10, %v2483_v37 }
 0x168   : > { %915 = vst.msk [vmem:[#allocation3 + $0x10] sm:$0xf] %vm910_vm2, %v895_v1  ;;  %918 = vst.msk [vmem:[#allocation3 + $0x1c] sm:$0xf] %vm910_vm2, %v901_v45 }
 0x16b   : > { %v899_v47 = vpop.permute.xlu0 %898  ;;  %v1058_v48 = vpop.permute.xlu1 %1057 }
 0x16c   : > { %917 = vst.msk [vmem:[#allocation3 + $0x18] sm:$0xf] %vm910_vm2, %v899_v47 }
 0x16d   : > { %1077 = vst.msk [vmem:[#allocation3 + $0x14] sm:$0xf] %vm1071_vm3, %v1058_v48 }
 0x16f   : > { %v1056_v46 = vpop.permute.xlu0 %1055 }
 0x170   : > { %1076 = vst.msk [vmem:[#allocation3 + $0x10] sm:$0xf] %vm1071_vm3, %v1056_v46 }
 0x173   : > { %v1060_v52 = vpop.permute.xlu0 %1059 }
 0x174   : > { %1078 = vst.msk [vmem:[#allocation3 + $0x18] sm:$0xf] %vm1071_vm3, %v1060_v52 }
 0x177   : > { %v1153_v55 = vpop.permute.xlu0 %1152 }
 0x178   : > { %1173 = vst.msk [vmem:[#allocation3 + $0x10] sm:$0xf] %vm1168_vm4, %v1153_v55 }
 0x17b   : > { %v1157_v56 = vpop.permute.xlu0 %1156 }
 0x17c   : > { %1175 = vst.msk [vmem:[#allocation3 + $0x18] sm:$0xf] %vm1168_vm4, %v1157_v56 }
 0x17d   : > { %v1062_v34 = vpop.permute.xlu1 %1061 }
 0x17e   : > { %1079 = vst.msk [vmem:[#allocation3 + $0x1c] sm:$0xf] %vm1071_vm3, %v1062_v34 }
 0x17f   : > { %v1346_v58 = vpop.permute.xlu0 %1345 }
 0x180   : > { %1366 = vst.msk [vmem:[#allocation3 + $0x10] sm:$0xf] %vm1361_vm6, %v1346_v58 }
 0x181   : > { %v1155_v32 = vpop.permute.xlu1 %1154 }
 0x182   : > { %1174 = vst.msk [vmem:[#allocation3 + $0x14] sm:$0xf] %vm1168_vm4, %v1155_v32 }
 0x183   : > { %v1350_v59 = vpop.permute.xlu0 %1349 }
 0x184   : > { %1368 = vst.msk [vmem:[#allocation3 + $0x18] sm:$0xf] %vm1361_vm6, %v1350_v59 }
 0x185   : > { %v1159_v60 = vpop.permute.xlu1 %1158 }
 0x186   : > { %1176 = vst.msk [vmem:[#allocation3 + $0x1c] sm:$0xf] %vm1168_vm4, %v1159_v60 }
 0x188   : > { %v1508_v61 = vpop.permute.xlu0 %1507 }
 0x189   : > { %v1348_v63 = vpop.permute.xlu1 %1347  ;;  %1528 = vst.msk [vmem:[#allocation3 + $0x10] sm:$0xf] %vm1523_vm7, %v1508_v61 }
 0x18a   : > { %1367 = vst.msk [vmem:[#allocation3 + $0x14] sm:$0xf] %vm1361_vm6, %v1348_v63 }
 0x18c   : > { %v1512_v30 = vpop.permute.xlu0 %1511 }
 0x18d   : > { %v1352_v0 = vpop.permute.xlu1 %1351  ;;  %1530 = vst.msk [vmem:[#allocation3 + $0x18] sm:$0xf] %vm1523_vm7, %v1512_v30 }
 0x18e   : > { %1369 = vst.msk [vmem:[#allocation3 + $0x1c] sm:$0xf] %vm1361_vm6, %v1352_v0 }
 0x190   : > { %v1605_v7 = vpop.permute.xlu0 %1604 }
 0x191   : > { %v1510_v15 = vpop.permute.xlu1 %1509  ;;  %1625 = vst.msk [vmem:[#allocation3 + $0x10] sm:$0xf] %vm1620_vm8, %v1605_v7 }
 0x192   : > { %1529 = vst.msk [vmem:[#allocation3 + $0x14] sm:$0xf] %vm1523_vm7, %v1510_v15 }
 0x194   : > { %v1609_v38 = vpop.permute.xlu0 %1608 }
 0x195   : > { %v1514_v57 = vpop.permute.xlu1 %1513  ;;  %1627 = vst.msk [vmem:[#allocation3 + $0x18] sm:$0xf] %vm1620_vm8, %v1609_v38 }
 0x196   : > { %1531 = vst.msk [vmem:[#allocation3 + $0x1c] sm:$0xf] %vm1523_vm7, %v1514_v57 }
 0x199   : > { %v1607_v2 = vpop.permute.xlu1 %1606 }
 0x19a   : > { %1626 = vst.msk [vmem:[#allocation3 + $0x14] sm:$0xf] %vm1620_vm8, %v1607_v2 }
 0x19c   : > { %v1798_v4 = vpop.permute.xlu0 %1797 }
 0x19d   : > { %v1611_v5 = vpop.permute.xlu1 %1610  ;;  %1818 = vst.msk [vmem:[#allocation3 + $0x10] sm:$0xf] %vm1813_vm9, %v1798_v4 }
 0x19e   : > { %1628 = vst.msk [vmem:[#allocation3 + $0x1c] sm:$0xf] %vm1620_vm8, %v1611_v5 }
 0x1a1   : > { %v1800_v44 = vpop.permute.xlu1 %1799 }
 0x1a2   : > { %1819 = vst.msk [vmem:[#allocation3 + $0x14] sm:$0xf] %vm1813_vm9, %v1800_v44  ;;  %v1802_v9 = vpop.permute.xlu0 %1801 }
 0x1a3   : > { %1820 = vst.msk [vmem:[#allocation3 + $0x18] sm:$0xf] %vm1813_vm9, %v1802_v9 }
 0x1a5   : > { %v1804_v49 = vpop.permute.xlu1 %1803 }
 0x1a6   : > { %1821 = vst.msk [vmem:[#allocation3 + $0x1c] sm:$0xf] %vm1813_vm9, %v1804_v49 }
 0x1a9   : > { %v2484_v8 = vld [vmem:[#allocation3 + $0x10] sm:$0xff]  }
 0x1aa   : > { %2367 = vmatprep.mubr.msk.bf16.mxu1 %vm1886_vm10, %v2484_v8 }
 0x1ad   : > { %v2485_v6 = vld [vmem:[#allocation3 + $0x18] sm:$0xff]  }
 0x1ae   : > { %2368 = vmatmul.mubr.msk.bf16.vlgmr.msra.gmra.mrb[0].mxu1 %vm1886_vm10, %v2485_v6 }
 0x23a   : > { %v2365_v17 = vpop.f32.mrb[0].mxu0 }
 0x23b   : > { %v2318_v10 = vpack.c.bf16 %v2365_v17, %v2365_v17  ;;  %v1937_v11 = vpop.f32.mrb[1].mxu0  ;;  %v2032_v19 = vmul.f32 %v2365_v17, %v2365_v17  ;;  %v2012_v23 = vsel %vm2008_vm11, %v2365_v17, 0.0 }
 0x23c   : > { %v2316_v16 = vpack.c.bf16 %v1937_v11, %v1937_v11  ;;  %v2030_v13 = vmul.f32 %v1937_v11, %v1937_v11  ;;  %v2366_v54 = vpop.f32.mrb[2].mxu0  ;;  %v2009_v53 = vsel %vm2008_vm11, %v1937_v11, 0.0 }
 0x23d   : > { %2002 = vst.msk [vmem:[%s3461_s29 + $0x8] sm:$0xf] %vm295_vm0, %v2318_v10  ;;  %v2319_v33 = vpack.c.bf16 %v2366_v54, %v2366_v54  ;;  %v1940_v18 = vpop.f32.mrb[3].mxu0  ;;  %v2033_v24 = vmul.f32 %v2366_v54, %v2366_v54  ;;  %v2041_v27 = vsel %vm2008_vm11, %v2032_v19, 0.0  ;;  %v2014_v28 = vsel %vm2008_vm11, %v2366_v54, 0.0 }
 0x23e   : > { %2000 = vst.msk [vmem:[%s3461_s29] sm:$0xf] %vm295_vm0, %v2316_v16  ;;  %v2317_v20 = vpack.c.bf16 %v1940_v18, %v1940_v18  ;;  %v2010_v21 = vsel %vm2008_vm11, %v1940_v18, 0.0  ;;  %v2031_v51 = vmul.f32 %v1940_v18, %v1940_v18  ;;  %v2038_v12 = vsel %vm2008_vm11, %v2030_v13, 0.0 }
 0x23f   : > { %2003 = vst.msk [vmem:[%s3461_s29 + $0xc] sm:$0xf] %vm295_vm0, %v2319_v33  ;;  %v2011_v22 = vadd.f32 %v2010_v21, %v2009_v53  ;;  %v2043_v50 = vsel %vm2008_vm11, %v2033_v24, 0.0 }
 0x240   : > { %2001 = vst.msk [vmem:[%s3461_s29 + $0x4] sm:$0xf] %vm295_vm0, %v2317_v20  ;;  %v2039_v3 = vsel %vm2008_vm11, %v2031_v51, 0.0 }
 0x241   : > { %v2013_v62 = vadd.f32 %v2012_v23, %v2011_v22  ;;  %v2040_v26 = vadd.f32 %v2039_v3, %v2038_v12 }
 0x243   : > { %v2042_v25 = vadd.f32 %v2041_v27, %v2040_v26  ;;  %v2015_v29 = vadd.f32 %v2014_v28, %v2013_v62 }
 0x245   : > { %v2044_v31 = vadd.f32 %v2043_v50, %v2042_v25 }
 0x281   : > { %v2369_v35 = vpop.f32.mrb[0].mxu1 }
 0x282   : > { %v2322_v36 = vpack.c.bf16 %v2369_v35, %v2369_v35  ;;  %v1953_v14 = vpop.f32.mrb[1].mxu1  ;;  %v2036_v46 = vmul.f32 %v2369_v35, %v2369_v35  ;;  %v2020_v34 = vsel %vm2008_vm11, %v2369_v35, 0.0 }
 0x283   : > { %v2320_v39 = vpack.c.bf16 %v1953_v14, %v1953_v14  ;;  %v2016_v40 = vsel %vm2008_vm11, %v1953_v14, 0.0  ;;  %v2034_v41 = vmul.f32 %v1953_v14, %v1953_v14  ;;  %v2370_v42 = vpop.f32.mrb[2].mxu1 }
 0x284   : > { %2006 = vst.msk [vmem:[%s3461_s29 + $0x18] sm:$0xf] %vm295_vm0, %v2322_v36  ;;  %v2017_v43 = vadd.f32 %v2016_v40, %v2015_v29  ;;  %v2323_v37 = vpack.c.bf16 %v2370_v42, %v2370_v42  ;;  %v1956_v1 = vpop.f32.mrb[3].mxu1  ;;  %v2037_v58 = vmul.f32 %v2370_v42, %v2370_v42 }
 0x285   : > { %2004 = vst.msk [vmem:[%s3461_s29 + $0x10] sm:$0xf] %vm295_vm0, %v2320_v39  ;;  %v2045_v45 = vsel %vm2008_vm11, %v2034_v41, 0.0  ;;  %v2321_v47 = vpack.c.bf16 %v1956_v1, %v1956_v1  ;;  %v2018_v48 = vsel %vm2008_vm11, %v1956_v1, 0.0  ;;  %v2035_v56 = vmul.f32 %v1956_v1, %v1956_v1 }
 0x286   : > { %v2046_v52 = vadd.f32 %v2045_v45, %v2044_v31  ;;  %2007 = vst.msk [vmem:[%s3461_s29 + $0x1c] sm:$0xf] %vm295_vm0, %v2323_v37  ;;  %v2019_v55 = vadd.f32 %v2018_v48, %v2017_v43 }
 0x287   : > { %2005 = vst.msk [vmem:[%s3461_s29 + $0x14] sm:$0xf] %vm295_vm0, %v2321_v47  ;;  %v2047_v59 = vsel %vm2008_vm11, %v2035_v56, 0.0 }
 0x288   : > { %v2021_v32 = vadd.f32 %v2020_v34, %v2019_v55 }
 0x289   : > { %2613 = shalt.err (!%p2610_p13)
}
 0x28a   : > { %s2614_s11 = scalar_lea.hbm %s3487_s9, 512  ;;  %s2618_s29 = scalar_lea.hbm %s3584_s4, 1024 }
 0x28b   : > { %p2615_p0 = scmp.ne.s32.totalorder %s3487_s9, %s2614_s11  ;;  %p2619_p9 = scmp.lt.u32.totalorder %s3487_s9, %s3584_s4 }
 0x28c   : > { %p2620_p12 = scmp.lt.u32.totalorder %s2618_s29, %s2614_s11  ;;  %p2622_p1 = scmp.lt.u32.totalorder %s2614_s11, %s3487_s9 }
 0x28d   : > { %p2616_p5 = pnand %p2615_p0, %p2902_p6 }
 0x28e   : > { %p2621_p2 = por %p2620_p12, %p2619_p9 }
 0x28f   : > { %p2617_p11 = pneg %p2616_p5 }
 0x290   : > { %p2623_p4 = por %p2622_p1, %p2621_p2 }
 0x292   : > { %p2624_p8 = pnand %p2623_p4, %p2617_p11 }
 0x294   : > { %2627 = shalt.err (!%p2624_p8)
}
 0x295   : > { %s2724_s8 = smov 4   ;;  %v2022_v60 = vsel %vm2008_vm11, %v2370_v42, 0.0  ;;  %v2048_v61 = vadd.f32 %v2047_v59, %v2046_v52  ;;  %v2049_v63 = vsel %vm2008_vm11, %v2036_v46, 0.0  ;;  %v2051_v7 = vsel %vm2008_vm11, %v2037_v58, 0.0  ;;  %s2244_s24 = sshll.u32 %s2953_s17, 1 }
 0x296   : > { %2397 = dma.vmem_to_hbm [thread:$0]  (%p2902_p6), %s3493_s23, 512, %s3487_s9, %s2064_s15, %s2722_s10, %s2722_s10, %s2724_s8   ;;  %v2023_v30 = vadd.f32 %v2022_v60, %v2021_v32  ;;  %vm2059_vm0 = vcmask 1040384  }
 0x297   : > { %v2050_v0 = vadd.f32 %v2049_v63, %v2048_v61  ;;  %s2304_s10 = sshll.u32 %s2777_s22, 5  ;;  %s293_s23 = scalar_lea.vmem [#allocation13], %s2244_s24 }
 0x298   : > { %v2024_v15 = vrot.slane %v2023_v30, 4  ;;  %s2098_s9 = sshll.u32 %s293_s23, 4  ;;  %s3535_s13 = scalar_lea.hbm %s3585_s5, %s2304_s10  ;;  %s3537_s9 = int_to_ptr.vmem [resolvable:$true] %s2098_s9 }
 0x299   : > { %v2052_v38 = vadd.f32 %v2051_v7, %v2050_v0  ;;  %s2069_s14 = scalar_lea.sflag [#allocation14], %s2953_s17  ;;  %s2628_s22 = scalar_lea.vmem %s3537_s9, 32 }
 0x29a   : > { %v2025_v57 = vadd.f32 %v2024_v15, %v2023_v30  ;;  %p2629_p3 = scmp.ne.s32.totalorder %s3537_s9, %s2628_s22  ;;  %s2725_s11 = smov [#allocation13]  }
 0x29b   : > { %v2053_v2 = vrot.slane %v2052_v38, 4  ;;  %s2632_s30 = sshll.u32 %s2725_s11, 4  ;;  %s2633_s30 = int_to_ptr.vmem [resolvable:$false] %s2632_s30 }
 0x29c   : > { %v2026_v4 = vrot.slane %v2025_v57, 2  ;;  %p2630_p7 = pnand %p2629_p3, %p2902_p6  ;;  %s2634_s28 = scalar_lea.vmem %s2633_s30, 64 }
 0x29d   : > { %v2054_v5 = vadd.f32 %v2053_v2, %v2052_v38  ;;  %p2635_p13 = scmp.lt.s32.totalorder %s3537_s9, %s2633_s30  ;;  %p2636_p0 = scmp.lt.s32.totalorder %s2634_s28, %s2628_s22 }
 0x29e   : > { %v2027_v44 = vadd.f32 %v2026_v4, %v2025_v57  ;;  %p2631_p10 = pneg %p2630_p7 }
 0x29f   : > { %v2055_v9 = vrot.slane %v2054_v5, 2  ;;  %p2637_p5 = por %p2636_p0, %p2635_p13 }
 0x2a0   : > { %v2028_v49 = vrot.slane %v2027_v44, 1 }
 0x2a1   : > { %v2056_v8 = vadd.f32 %v2055_v9, %v2054_v5  ;;  %p2638_p11 = pnand %p2637_p5, %p2631_p10 }
 0x2a2   : > { %v2029_v17 = vadd.f32 %v2028_v49, %v2027_v44 }
 0x2a3   : > { %v2057_v6 = vrot.slane %v2056_v8, 1 }
 0x2a5   : > { %v2058_v10 = vadd.f32 %v2057_v6, %v2056_v8 }
 0x2a7   : > { %v2060_v11 = vsel %vm2059_vm0, %v2029_v17, %v2058_v10 }
 0x2a8   : > { %2062 = vst.msk [vmem:[%s293_s23] sm:$0x3] %vm297_vm1, %v2060_v11 }
 0x2a9   : > { %2641 = shalt.err (!%p2638_p11)
}
 0x2aa   : > { %s2642_s17 = scalar_lea.hbm %s3535_s13, 32  ;;  %s2646_s7 = scalar_lea.hbm %s3585_s5, 64 }
 0x2ab   : > { %p2643_p9 = scmp.ne.s32.totalorder %s3535_s13, %s2642_s17  ;;  %p2647_p1 = scmp.lt.u32.totalorder %s3535_s13, %s3585_s5 }
 0x2ac   : > { %p2648_p4 = scmp.lt.u32.totalorder %s2646_s7, %s2642_s17  ;;  %p2650_p3 = scmp.lt.u32.totalorder %s2642_s17, %s3535_s13 }
 0x2ad   : > { %p2644_p12 = pnand %p2643_p9, %p2902_p6 }
 0x2ae   : > { %p2649_p8 = por %p2648_p4, %p2647_p1 }
 0x2af   : > { %p2645_p2 = pneg %p2644_p12 }
 0x2b0   : > { %p2651_p7 = por %p2650_p3, %p2649_p8 }
 0x2b2   : > { %p2652_p10 = pnand %p2651_p7, %p2645_p2 }
 0x2b4   : > { %2655 = shalt.err (!%p2652_p10)
}
 0x2b5   : > { %2398 = dma.vmem_to_hbm [thread:$0]  (%p2902_p6), %s3537_s9, 32, %s3535_s13, %s2069_s14  }
 0x2b6 PF: > { %s2110_s10 = sand.u32 1, %s2694_s18   ;;  %p3611_p13 = scmp.ne.s32.totalorder %s3590_s25, 0 }
 0x2b7   : > { %p3612_p0 = scmp.ge.s32.totalorder %s2706_s21, 2  ;;  %s2111_s23 = scalar_lea.sflag [#allocation6], %s2110_s10 }
 0x2b9   : > { %p2416_p5 = pnand %p3612_p0, %p3611_p13 }
 0x2bb   : > { %2685 = dma.done.wait (!%p2416_p5), %s2111_s23, 512  }
 0x2bc   : > { %2687 = vsyncadd (!%p2416_p5), %s2111_s23, 4294966784  ;;  %s2120_s15 = scalar_lea.sflag [#allocation14], %s2110_s10 }
 0x2bd   : > { %2689 = dma.done.wait (!%p2416_p5), %s2120_s15, 32  }
 0x2be   : > { %2691 = vsyncadd (!%p2416_p5), %s2120_s15, 4294967264  ;;  %p24_p6 = scmp.ge.s32.totalorder %s2888_s16, 4   ;;  %s3613_s18 = smov %s2698_s19 }
 0x2bf   : > { %s3614_s19 = smov %s2702_s20  ;;  %s3615_s20 = smov %s2898_s27 }
 0x2c0   : > { %s3616_s21 = smov %s2888_s16  ;;  %26 = sbr.rel (!%p24_p6) target bundleno = 9 (0x9), region = 112 }
 0x2c7   :  { %2125 = vsyncpa [#allocation5], 1 }
 0x2c8   :  { %2127 = vsyncpa [#allocation5 + $0x1], 1 }
 0x2c9   :  { %2128 = vsyncpa [#allocation8], 1 }
 0x2ca   :  { %2129 = vsyncpa [#allocation11], 1 }
 0x2cb   :  { %2130 = vsyncpa [#allocation6], 1 }
 0x2cc   :  { %2132 = vsyncpa [#allocation6 + $0x1], 1 }
 0x2cd   :  { %2133 = vsyncpa [#allocation14], 1 }
 0x2ce   :  { %2135 = vsyncpa [#allocation14 + $0x1], 1 }

</bundles_post_ra>
